<compile_context>
chip_gen: v7x
topology: tpu7x:2x2x1
jax: 0.10.0
libtpu: 0.0.40
codegen_flags: <defaults>
</compile_context>

<pallas_src>
import functools

import jax
import jax.numpy as jnp
from jax.experimental import pallas as pl
from jax.experimental.pallas import tpu as pltpu

LANE = 128


def _pick_vmem_limit():
    try:
        kind = jax.devices()[0].device_kind.lower()
    except Exception:
        kind = ""
    if "v6" in kind:
        return 96 * 1024 * 1024   # 128 MiB physical
    if "v5" in kind:
        return 64 * 1024 * 1024   # 128 MiB physical (default scoped is small)
    return 48 * 1024 * 1024       # v7x has 64 MiB/TC; also safe default


VMEM_LIMIT = _pick_vmem_limit()


def _round_up(x, m):
    return (x + m - 1) // m * m


def _pad2(a, rows, cols):
    r, c = a.shape
    return jnp.pad(a, ((0, rows - r), (0, cols - c)))


def _pick_tile(total, *, min_tiles=1, candidates=(512, 256, 128)):
    """Largest candidate that divides `total` and leaves >= min_tiles tiles."""
    for c in candidates:
        if total % c == 0 and total // c >= min_tiles:
            return c
    return 128


# ---------------------------------------------------------------------------
# pipeline_mode=pl.Buffered(1) support probe (constant blocks need no double
# buffering).  Falls back cleanly to plain BlockSpec if unsupported.
# ---------------------------------------------------------------------------
_BUFFERED_OK = None


def _buffered_supported():
    global _BUFFERED_OK
    if _BUFFERED_OK is None:
        try:
            def _probe(x_ref, o_ref):
                o_ref[...] = x_ref[...] + 1.0

            out = pl.pallas_call(
                _probe,
                out_shape=jax.ShapeDtypeStruct((8, LANE), jnp.float32),
                grid=(2,),
                in_specs=[pl.BlockSpec((8, LANE), lambda i: (0, 0),
                                       pipeline_mode=pl.Buffered(1))],
                out_specs=pl.BlockSpec((8, LANE), lambda i: (0, 0)),
            )(jnp.zeros((8, LANE), jnp.float32))
            jax.block_until_ready(out)
            _BUFFERED_OK = True
        except Exception:
            _BUFFERED_OK = False
    return _BUFFERED_OK


def _const_spec(shape, index_map):
    """BlockSpec for a block whose index never changes (weights, resident y)."""
    if _buffered_supported():
        return pl.BlockSpec(shape, index_map, pipeline_mode=pl.Buffered(1))
    return pl.BlockSpec(shape, index_map)


# ---------------------------------------------------------------------------
# Kernel 1: feature transform  y = x @ w1   (computed once, weight resident)
# ---------------------------------------------------------------------------
def _transform_kernel(x_ref, w_ref, o_ref):
    o_ref[...] = jnp.dot(x_ref[...], w_ref[...],
                         preferred_element_type=jnp.float32).astype(o_ref.dtype)


def _transform(x, w, *, tm):
    n, k = x.shape
    _, f = w.shape
    return pl.pallas_call(
        _transform_kernel,
        out_shape=jax.ShapeDtypeStruct((n, f), jnp.bfloat16),
        grid_spec=pltpu.PrefetchScalarGridSpec(
            num_scalar_prefetch=0,
            grid=(n // tm,),
            in_specs=[pl.BlockSpec((tm, k), lambda i: (i, 0)),
                      _const_spec((k, f), lambda i: (0, 0))],
            out_specs=pl.BlockSpec((tm, f), lambda i: (i, 0)),
        ),
        compiler_params=pltpu.CompilerParams(
            dimension_semantics=("parallel",),
            vmem_limit_bytes=VMEM_LIMIT),
    )(x, w)


# ---------------------------------------------------------------------------
# Kernel 2: graph propagation
#   acc += adj_tile @ y_chunk  over k (arbitrary reduction, f32 accumulator)
#   finalize: relu(acc + b)            [optionally fused with "@ w2"]
#   y can be VMEM-resident (constant-index block, k-chunk sliced in-kernel).
# ---------------------------------------------------------------------------
def _propagate_kernel(tk, y_resident, fuse_w2, *refs):
    if fuse_w2:
        adj_ref, y_ref, b_ref, w_ref, o_ref, acc_ref = refs
    else:
        adj_ref, y_ref, b_ref, o_ref, acc_ref = refs
        w_ref = None

    k = pl.program_id(1)

    @pl.when(k == 0)
    def _():
        acc_ref[...] = jnp.zeros_like(acc_ref)

    if y_resident:
        start = pl.multiple_of(k * tk, tk)
        y_blk = y_ref[pl.ds(start, tk), :]
    else:
        y_blk = y_ref[...]

    acc_ref[...] += jnp.dot(adj_ref[...], y_blk,
                            preferred_element_type=jnp.float32)

    @pl.when(k == pl.num_programs(1) - 1)
    def _():
        act = jnp.maximum(acc_ref[...] + b_ref[...], 0.0)
        if fuse_w2:
            act = jnp.dot(act.astype(jnp.bfloat16), w_ref[...],
                          preferred_element_type=jnp.float32)
        o_ref[...] = act.astype(o_ref.dtype)


def _propagate(adj, y, b, w=None, *, tm, tk, y_resident):
    n = adj.shape[0]
    f_in = y.shape[1]
    fuse_w2 = w is not None
    f_out = w.shape[1] if fuse_w2 else f_in

    if y_resident:
        y_spec = _const_spec((n, f_in), lambda i, k: (0, 0))
    else:
        y_spec = pl.BlockSpec((tk, f_in), lambda i, k: (k, 0))

    in_specs = [pl.BlockSpec((tm, tk), lambda i, k: (i, k)),
                y_spec,
                _const_spec((1, f_in), lambda i, k: (0, 0))]
    operands = [adj, y, b]
    if fuse_w2:
        in_specs.append(_const_spec((f_in, f_out), lambda i, k: (0, 0)))
        operands.append(w)

    return pl.pallas_call(
        functools.partial(_propagate_kernel, tk, y_resident, fuse_w2),
        out_shape=jax.ShapeDtypeStruct((n, f_out), jnp.bfloat16),
        grid_spec=pltpu.PrefetchScalarGridSpec(
            num_scalar_prefetch=0,
            grid=(n // tm, n // tk),
            in_specs=in_specs,
            out_specs=pl.BlockSpec((tm, f_out), lambda i, k: (i, 0)),
            scratch_shapes=[pltpu.VMEM((tm, f_in), jnp.float32)],
        ),
        compiler_params=pltpu.CompilerParams(
            dimension_semantics=("parallel", "arbitrary"),
            vmem_limit_bytes=VMEM_LIMIT),
    )(*operands)


# ---------------------------------------------------------------------------
# Kernel 3: fused MLP head (+log_softmax) and pairwise sigmoid(h @ q).
#   grid = (h row tiles, q column tiles); MLP runs once per row tile (j==0).
# ---------------------------------------------------------------------------
def _head_pairwise_kernel(n_classes, h_ref, w1_ref, b1_ref, w2_ref, b2_ref,
                          w3_ref, b3_ref, q_ref, logp_ref, m_ref):
    j = pl.program_id(1)

    @pl.when(j == 0)
    def _():
        z = jnp.dot(h_ref[...], w1_ref[...],
                    preferred_element_type=jnp.float32) + b1_ref[...]
        z = jnp.maximum(z, 0.0).astype(jnp.bfloat16)
        z = jnp.dot(z, w2_ref[...],
                    preferred_element_type=jnp.float32) + b2_ref[...]
        z = jnp.maximum(z, 0.0).astype(jnp.bfloat16)
        z = jnp.dot(z, w3_ref[...],
                    preferred_element_type=jnp.float32) + b3_ref[...]
        # Mask padded class lanes (z is f32 here, so -1e30 is safe) so the
        # softmax ignores them; output stays lane-dense and is sliced outside.
        col = jax.lax.broadcasted_iota(jnp.int32, z.shape, 1)
        z = jnp.where(col < n_classes, z, -1e30)
        zmax = jnp.max(z, axis=-1, keepdims=True)
        zs = z - zmax
        lse = jnp.log(jnp.sum(jnp.exp(zs), axis=-1, keepdims=True))
        logp_ref[...] = zs - lse

    s = jnp.dot(h_ref[...], q_ref[...], preferred_element_type=jnp.float32)
    # sigmoid via a single EUP push: sigmoid(s) = 0.5 * tanh(0.5 s) + 0.5
    m_ref[...] = 0.5 * jnp.tanh(0.5 * s) + 0.5


def _head_pairwise(h, fc1w, fc1b, fc2w, fc2b, fc3w, fc3b, q, n_classes,
                   *, tm, tn):
    n, o = h.shape
    d1 = fc1w.shape[1]
    d2 = fc2w.shape[1]
    cp = fc3w.shape[1]
    nq = q.shape[1]
    const = lambda i, j: (0, 0)
    return pl.pallas_call(
        functools.partial(_head_pairwise_kernel, n_classes),
        out_shape=(jax.ShapeDtypeStruct((n, cp), jnp.float32),
                   jax.ShapeDtypeStruct((n, nq), jnp.float32)),
        grid_spec=pltpu.PrefetchScalarGridSpec(
            num_scalar_prefetch=0,
            grid=(n // tm, nq // tn),
            in_specs=[pl.BlockSpec((tm, o), lambda i, j: (i, 0)),
                      _const_spec((o, d1), const),
                      _const_spec((1, d1), const),
                      _const_spec((d1, d2), const),
                      _const_spec((1, d2), const),
                      _const_spec((d2, cp), const),
                      _const_spec((1, cp), const),
                      pl.BlockSpec((o, tn), lambda i, j: (0, j))],
            out_specs=[pl.BlockSpec((tm, cp), lambda i, j: (i, 0)),
                       pl.BlockSpec((tm, tn), lambda i, j: (i, j))],
        ),
        compiler_params=pltpu.CompilerParams(
            dimension_semantics=("parallel", "arbitrary"),
            vmem_limit_bytes=VMEM_LIMIT),
    )(h, fc1w, fc1b, fc2w, fc2b, fc3w, fc3b, q)


# ---------------------------------------------------------------------------
# Full forward.
# ---------------------------------------------------------------------------
def gcn_forward(x, adj, params, *, tm=None, tk=None, tn=None):
    (w1, b1, w2, b2, fc1w, fc1b, fc2w, fc2b, fc3w, fc3b, q) = params
    n, in_f = x.shape
    hid_f = w1.shape[1]
    out_f = w2.shape[1]
    d1 = fc1w.shape[1]
    d2 = fc2w.shape[1]
    n_classes = fc3w.shape[1]

    # Pad only to lane multiples (128); tiles are chosen to divide padded N so
    # adj carries no tile-size padding waste on the dominant HBM stream.
    np_ = _round_up(n, LANE)
    inp = _round_up(in_f, LANE)
    hidp = _round_up(hid_f, LANE)
    outp = _round_up(out_f, LANE)
    d1p = _round_up(d1, LANE)
    d2p = _round_up(d2, LANE)
    cp = _round_up(n_classes, LANE)

    # Largest tiles (<=512) dividing padded N; keep >=2 row tiles so the
    # "parallel" grid axis can spread over 2 TensorCores on v7x.
    # TODO(synk): pltpu.CORE_PARALLEL on the row axis could force per-core
    #             sharding on v7x if plain "parallel" does not.
    if tm is None:
        tm = _pick_tile(np_, min_tiles=2)
    if tk is None:
        tk = _pick_tile(np_, min_tiles=1)   # 512/256 fills the MXU K dim on v6e+
    if tn is None:
        tn = _pick_tile(np_, min_tiles=1)   # wide lane-dense m stores

    bf16 = jnp.bfloat16
    # Cast matmul operands to bf16 ONCE here (adj is streamed twice by the
    # propagate kernels -> halved DMA bytes); biases stay f32.
    x_p = _pad2(x, np_, inp).astype(bf16)
    adj_p = _pad2(adj, np_, np_).astype(bf16)
    w1_p = _pad2(w1, inp, hidp).astype(bf16)
    b1_p = _pad2(b1.reshape(1, -1), 1, hidp)
    w2_p = _pad2(w2, hidp, outp).astype(bf16)
    b2_p = _pad2(b2.reshape(1, -1), 1, outp)
    fc1w_p = _pad2(fc1w, outp, d1p).astype(bf16)
    fc1b_p = _pad2(fc1b.reshape(1, -1), 1, d1p)
    fc2w_p = _pad2(fc2w, d1p, d2p).astype(bf16)
    fc2b_p = _pad2(fc2b.reshape(1, -1), 1, d2p)
    fc3w_p = _pad2(fc3w, d2p, cp).astype(bf16)
    fc3b_p = _pad2(fc3b.reshape(1, -1), 1, cp)
    q_p = _pad2(q, outp, np_).astype(bf16)

    # Keep the transformed features resident in VMEM when they fit -> no
    # per-row-tile re-stream of y from HBM.
    y_resident_max = min(16 * 1024 * 1024, VMEM_LIMIT // 4)
    yres1 = (np_ * hidp * 2) <= y_resident_max
    yres2 = (np_ * outp * 2) <= y_resident_max

    xw1 = _transform(x_p, w1_p, tm=tm)                       # x @ w1 (hoisted once)
    # gc1 propagate fused with gc2's transform:  (relu(adj @ xw1 + b1)) @ w2
    g1w2 = _propagate(adj_p, xw1, b1_p, w2_p, tm=tm, tk=tk, y_resident=yres1)
    # gc2 propagate:  h = relu(adj @ g1w2 + b2)
    h = _propagate(adj_p, g1w2, b2_p, None, tm=tm, tk=tk, y_resident=yres2)
    # fused MLP head + log_softmax and pairwise sigmoid(h @ q)
    logp, m = _head_pairwise(h, fc1w_p, fc1b_p, fc2w_p, fc2b_p, fc3w_p, fc3b_p,
                             q_p, n_classes, tm=tm, tn=tn)
    return logp[:n, :n_classes], m[:n, :n]


# ---------------------------------------------------------------------------
# Parameters / reference / test.
# ---------------------------------------------------------------------------
def init_params(key, in_features, hidden_features, out_features, n_classes, n_samples):
    ks = jax.random.split(key, 11)
    # Module init is uniform_/normal_ (same distributions here); scales reduced
    # so the example stays numerically well conditioned. Forward math identical.
    w1 = jax.random.uniform(ks[0], (in_features, hidden_features), jnp.float32) * 0.2
    b1 = jax.random.uniform(ks[1], (hidden_features,), jnp.float32) * 0.2
    w2 = jax.random.uniform(ks[2], (hidden_features, out_features), jnp.float32) * 0.2
    b2 = jax.random.uniform(ks[3], (out_features,), jnp.float32) * 0.2
    fc1w = jax.random.normal(ks[4], (out_features, 256), jnp.float32) / jnp.sqrt(float(out_features))
    fc1b = jax.random.uniform(ks[5], (256,), jnp.float32, minval=-0.1, maxval=0.1)
    fc2w = jax.random.normal(ks[6], (256, 128), jnp.float32) / jnp.sqrt(256.0)
    fc2b = jax.random.uniform(ks[7], (128,), jnp.float32, minval=-0.1, maxval=0.1)
    fc3w = jax.random.normal(ks[8], (128, n_classes), jnp.float32) / jnp.sqrt(128.0)
    fc3b = jax.random.uniform(ks[9], (n_classes,), jnp.float32, minval=-0.1, maxval=0.1)
    q = jax.random.normal(ks[10], (out_features, n_samples), jnp.float32) * 0.5
    return (w1, b1, w2, b2, fc1w, fc1b, fc2w, fc2b, fc3w, fc3b, q)


def ref_forward(x, adj, params):
    """Pure-JAX reference mirroring the kernel's bf16-operand / f32-accumulate math."""
    (w1, b1, w2, b2, fc1w, fc1b, fc2w, fc2b, fc3w, fc3b, q) = params
    bf = jnp.bfloat16

    def mm(a, b):
        return jnp.dot(a.astype(bf), b.astype(bf), preferred_element_type=jnp.float32)

    xw1 = mm(x, w1).astype(bf)
    g1 = jnp.maximum(mm(adj, xw1) + b1[None, :], 0.0).astype(bf)
    g1w2 = mm(g1, w2).astype(bf)
    h = jnp.maximum(mm(adj, g1w2) + b2[None, :], 0.0).astype(bf)
    z = jnp.maximum(mm(h, fc1w) + fc1b[None, :], 0.0).astype(bf)
    z = jnp.maximum(mm(z, fc2w) + fc2b[None, :], 0.0).astype(bf)
    z = mm(z, fc3w) + fc3b[None, :]
    logp = jax.nn.log_softmax(z, axis=1)
    m = jax.nn.sigmoid(mm(h, q))
    return logp, m


if __name__ == "__main__":
    # Small, forward-consistent shapes (adj is N x N; feature dims padded to 128).
    N = 256            # n_samples
    IN_F = 64          # in_features
    HID_F = 96         # hidden_features
    OUT_F = 48         # out_features
    N_CLASSES = 7

    key = jax.random.PRNGKey(0)
    k_x, k_adj, k_p = jax.random.split(key, 3)

    x = jax.random.normal(k_x, (N, IN_F), jnp.float32)
    raw = jax.random.uniform(k_adj, (N, N), jnp.float32)
    adj = raw / raw.sum(axis=1, keepdims=True)      # row-normalized adjacency

    params = init_params(k_p, IN_F, HID_F, OUT_F, N_CLASSES, N)

    _buffered_supported()   # probe once (outside the jit trace)

    fwd = jax.jit(gcn_forward)
    logp, m = fwd(x, adj, params)
    jax.block_until_ready((logp, m))

    logp_ref, m_ref = ref_forward(x, adj, params)

    assert logp.shape == (N, N_CLASSES) and m.shape == (N, N)
    assert bool(jnp.all(jnp.isfinite(logp))) and bool(jnp.all(jnp.isfinite(m)))
    assert jnp.allclose(logp, logp_ref, atol=5e-3, rtol=5e-3), \
        float(jnp.max(jnp.abs(logp - logp_ref)))
    assert jnp.allclose(m, m_ref, atol=1e-2), \
        float(jnp.max(jnp.abs(m - m_ref)))

    print("KERNEL_OK")
</pallas_src>

<mosaic_0001>
module attributes {stable_mosaic.version = 11 : i64} {
  func.func @_probe(%arg0: i32, %arg1: memref<8x128xf32, #tpu.memory_space<vmem>>, %arg2: memref<8x128xf32, #tpu.memory_space<vmem>>) attributes {dimension_semantics = [#tpu.dimension_semantics<arbitrary>], iteration_bounds = array<i64: 2>, scalar_prefetch = 0 : i64, scratch_operands = 0 : i64, tpu.core_type = #tpu.core_type<tc>, window_params = [{pipeline_mode = #tpu.pipeline_mode<synchronous>, transform_indices = @transform_0, window_bounds = array<i64: 8, 128>}, {pipeline_mode = #tpu.pipeline_mode<synchronous>, transform_indices = @transform_1, window_bounds = array<i64: 8, 128>}]} {
    %c0 = arith.constant 0 : index
    %c0_0 = arith.constant 0 : index
    %0 = vector.load %arg1[%c0, %c0_0] : memref<8x128xf32, #tpu.memory_space<vmem>>, vector<8x128xf32>
    %cst = arith.constant 1.000000e+00 : f32
    %1 = vector.broadcast %cst : f32 to vector<8x128xf32>
    %2 = arith.addf %0, %1 : vector<8x128xf32>
    %c0_1 = arith.constant 0 : index
    %c0_2 = arith.constant 0 : index
    %3 = vector.load %arg2[%c0_1, %c0_2] : memref<8x128xf32, #tpu.memory_space<vmem>>, vector<8x128xf32>
    tpu.vector_store %arg2[%c0_1, %c0_2], %2 {strides = array<i32>} : memref<8x128xf32, #tpu.memory_space<vmem>>, vector<8x128xf32>,
    return
  }
  func.func @transform_0(%arg0: i32) -> (i32, i32) {
    %c0_i32 = arith.constant 0 : i32
    %c0_i32_0 = arith.constant 0 : i32
    %c0_i32_1 = arith.constant 0 : i32
    return %c0_i32, %c0_i32_0 : i32, i32
  }
  func.func @transform_1(%arg0: i32) -> (i32, i32) {
    %c0_i32 = arith.constant 0 : i32
    %c0_i32_0 = arith.constant 0 : i32
    %c0_i32_1 = arith.constant 0 : i32
    return %c0_i32, %c0_i32_0 : i32, i32
  }
}

module attributes {stable_mosaic.version = 11 : i64} {
  func.func @_propagate_kernel(%arg0: i32, %arg1: i32, %arg2: memref<128x256xbf16, #tpu.memory_space<vmem>>, %arg3: memref<256x128xbf16, #tpu.memory_space<vmem>>, %arg4: memref<1x128xf32, #tpu.memory_space<vmem>>, %arg5: memref<128x128xbf16, #tpu.memory_space<vmem>>, %arg6: memref<128x128xbf16, #tpu.memory_space<vmem>>, %arg7: memref<128x128xf32, #tpu.memory_space<vmem>>) attributes {dimension_semantics = [#tpu.dimension_semantics<parallel>, #tpu.dimension_semantics<arbitrary>], iteration_bounds = array<i64: 2, 1>, scalar_prefetch = 0 : i64, scratch_operands = 1 : i64, tpu.core_type = #tpu.core_type<tc>, window_params = [{transform_indices = @transform_0, window_bounds = array<i64: 128, 256>}, {pipeline_mode = #tpu.pipeline_mode<synchronous>, transform_indices = @transform_1, window_bounds = array<i64: 256, 128>}, {pipeline_mode = #tpu.pipeline_mode<synchronous>, transform_indices = @transform_2, window_bounds = array<i64: 1, 128>}, {pipeline_mode = #tpu.pipeline_mode<synchronous>, transform_indices = @transform_3, window_bounds = array<i64: 128, 128>}, {transform_indices = @transform_4, window_bounds = array<i64: 128, 128>}]} {
    %c0_i32 = arith.constant 0 : i32
    %0 = arith.cmpi eq, %arg1, %c0_i32 : i32
    %1 = arith.extui %0 : i1 to i32
    %c0_i32_0 = arith.constant 0 : i32
    %2 = arith.cmpi ne, %1, %c0_i32_0 : i32
    scf.if %2 {
      %cst_9 = arith.constant 0.000000e+00 : f32
      %15 = vector.broadcast %cst_9 : f32 to vector<128x128xf32>
      %c0_10 = arith.constant 0 : index
      %c0_11 = arith.constant 0 : index
      %16 = vector.load %arg7[%c0_10, %c0_11] : memref<128x128xf32, #tpu.memory_space<vmem>>, vector<128x128xf32>
      tpu.vector_store %arg7[%c0_10, %c0_11], %15 {strides = array<i32>} : memref<128x128xf32, #tpu.memory_space<vmem>>, vector<128x128xf32>,
    } else {
    }
    %c256_i32 = arith.constant 256 : i32
    %3 = arith.muli %arg1, %c256_i32 : i32
    %4 = tpu.assume_multiple %3, 256 : i32
    %5 = arith.index_cast %4 : i32 to index
    %c0 = arith.constant 0 : index
    %6 = vector.load %arg3[%5, %c0] : memref<256x128xbf16, #tpu.memory_space<vmem>>, vector<256x128xbf16>
    %c0_1 = arith.constant 0 : index
    %c0_2 = arith.constant 0 : index
    %7 = vector.load %arg7[%c0_1, %c0_2] : memref<128x128xf32, #tpu.memory_space<vmem>>, vector<128x128xf32>
    %c0_3 = arith.constant 0 : index
    %c0_4 = arith.constant 0 : index
    %8 = vector.load %arg2[%c0_3, %c0_4] : memref<128x256xbf16, #tpu.memory_space<vmem>>, vector<128x256xbf16>
    %cst = arith.constant dense<0.000000e+00> : vector<128x128xf32>
    %9 = tpu.matmul %8, %6, %cst {dimension_numbers = #tpu.dot_dimension_numbers<[1], [0], [0], [1], [0, 0, 1, 1], [], []>} : vector<128x256xbf16>, vector<256x128xbf16>, vector<128x128xf32> -> vector<128x128xf32>
    %10 = arith.addf %7, %9 : vector<128x128xf32>
    %c0_5 = arith.constant 0 : index
    %c0_6 = arith.constant 0 : index
    %11 = vector.load %arg7[%c0_5, %c0_6] : memref<128x128xf32, #tpu.memory_space<vmem>>, vector<128x128xf32>
    tpu.vector_store %arg7[%c0_5, %c0_6], %10 {strides = array<i32>} : memref<128x128xf32, #tpu.memory_space<vmem>>, vector<128x128xf32>,
    %c0_i32_7 = arith.constant 0 : i32
    %12 = arith.cmpi eq, %arg1, %c0_i32_7 : i32
    %13 = arith.extui %12 : i1 to i32
    %c0_i32_8 = arith.constant 0 : i32
    %14 = arith.cmpi ne, %13, %c0_i32_8 : i32
    scf.if %14 {
      %c0_9 = arith.constant 0 : index
      %c0_10 = arith.constant 0 : index
      %15 = vector.load %arg7[%c0_9, %c0_10] : memref<128x128xf32, #tpu.memory_space<vmem>>, vector<128x128xf32>
      %c0_11 = arith.constant 0 : index
      %c0_12 = arith.constant 0 : index
      %16 = vector.load %arg4[%c0_11, %c0_12] : memref<1x128xf32, #tpu.memory_space<vmem>>, vector<1x128xf32>
      %17 = vector.broadcast %16 : vector<1x128xf32> to vector<128x128xf32>
      %18 = arith.addf %15, %17 : vector<128x128xf32>
      %cst_13 = arith.constant 0.000000e+00 : f32
      %19 = vector.broadcast %cst_13 : f32 to vector<128x128xf32>
      %20 = arith.maximumf %18, %19 : vector<128x128xf32>
      %21 = arith.truncf %20 : vector<128x128xf32> to vector<128x128xbf16>
      %c0_14 = arith.constant 0 : index
      %c0_15 = arith.constant 0 : index
      %22 = vector.load %arg5[%c0_14, %c0_15] : memref<128x128xbf16, #tpu.memory_space<vmem>>, vector<128x128xbf16>
      %cst_16 = arith.constant dense<0.000000e+00> : vector<128x128xf32>
      %23 = tpu.matmul %21, %22, %cst_16 {dimension_numbers = #tpu.dot_dimension_numbers<[1], [0], [0], [1], [0, 0, 1, 1], [], []>} : vector<128x128xbf16>, vector<128x128xbf16>, vector<128x128xf32> -> vector<128x128xf32>
      %24 = arith.truncf %23 : vector<128x128xf32> to vector<128x128xbf16>
      %c0_17 = arith.constant 0 : index
      %c0_18 = arith.constant 0 : index
      %25 = vector.load %arg6[%c0_17, %c0_18] : memref<128x128xbf16, #tpu.memory_space<vmem>>, vector<128x128xbf16>
      tpu.vector_store %arg6[%c0_17, %c0_18], %24 {strides = array<i32>} : memref<128x128xbf16, #tpu.memory_space<vmem>>, vector<128x128xbf16>,
    } else {
    }
    return
  }
  func.func @transform_0(%arg0: i32, %arg1: i32) -> (i32, i32) {
    %c0_i32 = arith.constant 0 : i32
    return %arg0, %arg1 : i32, i32
  }
  func.func @transform_1(%arg0: i32, %arg1: i32) -> (i32, i32) {
    %c0_i32 = arith.constant 0 : i32
    %c0_i32_0 = arith.constant 0 : i32
    %c0_i32_1 = arith.constant 0 : i32
    return %c0_i32, %c0_i32_0 : i32, i32
  }
  func.func @transform_2(%arg0: i32, %arg1: i32) -> (i32, i32) {
    %c0_i32 = arith.constant 0 : i32
    %c0_i32_0 = arith.constant 0 : i32
    %c0_i32_1 = arith.constant 0 : i32
    return %c0_i32, %c0_i32_0 : i32, i32
  }
  func.func @transform_3(%arg0: i32, %arg1: i32) -> (i32, i32) {
    %c0_i32 = arith.constant 0 : i32
    %c0_i32_0 = arith.constant 0 : i32
    %c0_i32_1 = arith.constant 0 : i32
    return %c0_i32, %c0_i32_0 : i32, i32
  }
  func.func @transform_4(%arg0: i32, %arg1: i32) -> (i32, i32) {
    %c0_i32 = arith.constant 0 : i32
    %c0_i32_0 = arith.constant 0 : i32
    return %arg0, %c0_i32 : i32, i32
  }
}

module attributes {stable_mosaic.version = 11 : i64} {
  func.func @_transform_kernel(%arg0: i32, %arg1: memref<128x128xbf16, #tpu.memory_space<vmem>>, %arg2: memref<128x128xbf16, #tpu.memory_space<vmem>>, %arg3: memref<128x128xbf16, #tpu.memory_space<vmem>>) attributes {dimension_semantics = [#tpu.dimension_semantics<parallel>], iteration_bounds = array<i64: 2>, scalar_prefetch = 0 : i64, scratch_operands = 0 : i64, tpu.core_type = #tpu.core_type<tc>, window_params = [{transform_indices = @transform_0, window_bounds = array<i64: 128, 128>}, {pipeline_mode = #tpu.pipeline_mode<synchronous>, transform_indices = @transform_1, window_bounds = array<i64: 128, 128>}, {transform_indices = @transform_2, window_bounds = array<i64: 128, 128>}]} {
    %c0 = arith.constant 0 : index
    %c0_0 = arith.constant 0 : index
    %0 = vector.load %arg1[%c0, %c0_0] : memref<128x128xbf16, #tpu.memory_space<vmem>>, vector<128x128xbf16>
    %c0_1 = arith.constant 0 : index
    %c0_2 = arith.constant 0 : index
    %1 = vector.load %arg2[%c0_1, %c0_2] : memref<128x128xbf16, #tpu.memory_space<vmem>>, vector<128x128xbf16>
    %cst = arith.constant dense<0.000000e+00> : vector<128x128xf32>
    %2 = tpu.matmul %0, %1, %cst {dimension_numbers = #tpu.dot_dimension_numbers<[1], [0], [0], [1], [0, 0, 1, 1], [], []>} : vector<128x128xbf16>, vector<128x128xbf16>, vector<128x128xf32> -> vector<128x128xf32>
    %3 = arith.truncf %2 : vector<128x128xf32> to vector<128x128xbf16>
    %c0_3 = arith.constant 0 : index
    %c0_4 = arith.constant 0 : index
    %4 = vector.load %arg3[%c0_3, %c0_4] : memref<128x128xbf16, #tpu.memory_space<vmem>>, vector<128x128xbf16>
    tpu.vector_store %arg3[%c0_3, %c0_4], %3 {strides = array<i32>} : memref<128x128xbf16, #tpu.memory_space<vmem>>, vector<128x128xbf16>,
    return
  }
  func.func @transform_0(%arg0: i32) -> (i32, i32) {
    %c0_i32 = arith.constant 0 : i32
    %c0_i32_0 = arith.constant 0 : i32
    return %arg0, %c0_i32 : i32, i32
  }
  func.func @transform_1(%arg0: i32) -> (i32, i32) {
    %c0_i32 = arith.constant 0 : i32
    %c0_i32_0 = arith.constant 0 : i32
    %c0_i32_1 = arith.constant 0 : i32
    return %c0_i32, %c0_i32_0 : i32, i32
  }
  func.func @transform_2(%arg0: i32) -> (i32, i32) {
    %c0_i32 = arith.constant 0 : i32
    %c0_i32_0 = arith.constant 0 : i32
    return %arg0, %c0_i32 : i32, i32
  }
}

module attributes {stable_mosaic.version = 11 : i64} {
  func.func @_propagate_kernel(%arg0: i32, %arg1: i32, %arg2: memref<128x256xbf16, #tpu.memory_space<vmem>>, %arg3: memref<256x128xbf16, #tpu.memory_space<vmem>>, %arg4: memref<1x128xf32, #tpu.memory_space<vmem>>, %arg5: memref<128x128xbf16, #tpu.memory_space<vmem>>, %arg6: memref<128x128xf32, #tpu.memory_space<vmem>>) attributes {dimension_semantics = [#tpu.dimension_semantics<parallel>, #tpu.dimension_semantics<arbitrary>], iteration_bounds = array<i64: 2, 1>, scalar_prefetch = 0 : i64, scratch_operands = 1 : i64, tpu.core_type = #tpu.core_type<tc>, window_params = [{transform_indices = @transform_0, window_bounds = array<i64: 128, 256>}, {pipeline_mode = #tpu.pipeline_mode<synchronous>, transform_indices = @transform_1, window_bounds = array<i64: 256, 128>}, {pipeline_mode = #tpu.pipeline_mode<synchronous>, transform_indices = @transform_2, window_bounds = array<i64: 1, 128>}, {transform_indices = @transform_3, window_bounds = array<i64: 128, 128>}]} {
    %c0_i32 = arith.constant 0 : i32
    %0 = arith.cmpi eq, %arg1, %c0_i32 : i32
    %1 = arith.extui %0 : i1 to i32
    %c0_i32_0 = arith.constant 0 : i32
    %2 = arith.cmpi ne, %1, %c0_i32_0 : i32
    scf.if %2 {
      %cst_9 = arith.constant 0.000000e+00 : f32
      %15 = vector.broadcast %cst_9 : f32 to vector<128x128xf32>
      %c0_10 = arith.constant 0 : index
      %c0_11 = arith.constant 0 : index
      %16 = vector.load %arg6[%c0_10, %c0_11] : memref<128x128xf32, #tpu.memory_space<vmem>>, vector<128x128xf32>
      tpu.vector_store %arg6[%c0_10, %c0_11], %15 {strides = array<i32>} : memref<128x128xf32, #tpu.memory_space<vmem>>, vector<128x128xf32>,
    } else {
    }
    %c256_i32 = arith.constant 256 : i32
    %3 = arith.muli %arg1, %c256_i32 : i32
    %4 = tpu.assume_multiple %3, 256 : i32
    %5 = arith.index_cast %4 : i32 to index
    %c0 = arith.constant 0 : index
    %6 = vector.load %arg3[%5, %c0] : memref<256x128xbf16, #tpu.memory_space<vmem>>, vector<256x128xbf16>
    %c0_1 = arith.constant 0 : index
    %c0_2 = arith.constant 0 : index
    %7 = vector.load %arg6[%c0_1, %c0_2] : memref<128x128xf32, #tpu.memory_space<vmem>>, vector<128x128xf32>
    %c0_3 = arith.constant 0 : index
    %c0_4 = arith.constant 0 : index
    %8 = vector.load %arg2[%c0_3, %c0_4] : memref<128x256xbf16, #tpu.memory_space<vmem>>, vector<128x256xbf16>
    %cst = arith.constant dense<0.000000e+00> : vector<128x128xf32>
    %9 = tpu.matmul %8, %6, %cst {dimension_numbers = #tpu.dot_dimension_numbers<[1], [0], [0], [1], [0, 0, 1, 1], [], []>} : vector<128x256xbf16>, vector<256x128xbf16>, vector<128x128xf32> -> vector<128x128xf32>
    %10 = arith.addf %7, %9 : vector<128x128xf32>
    %c0_5 = arith.constant 0 : index
    %c0_6 = arith.constant 0 : index
    %11 = vector.load %arg6[%c0_5, %c0_6] : memref<128x128xf32, #tpu.memory_space<vmem>>, vector<128x128xf32>
    tpu.vector_store %arg6[%c0_5, %c0_6], %10 {strides = array<i32>} : memref<128x128xf32, #tpu.memory_space<vmem>>, vector<128x128xf32>,
    %c0_i32_7 = arith.constant 0 : i32
    %12 = arith.cmpi eq, %arg1, %c0_i32_7 : i32
    %13 = arith.extui %12 : i1 to i32
    %c0_i32_8 = arith.constant 0 : i32
    %14 = arith.cmpi ne, %13, %c0_i32_8 : i32
    scf.if %14 {
      %c0_9 = arith.constant 0 : index
      %c0_10 = arith.constant 0 : index
      %15 = vector.load %arg6[%c0_9, %c0_10] : memref<128x128xf32, #tpu.memory_space<vmem>>, vector<128x128xf32>
      %c0_11 = arith.constant 0 : index
      %c0_12 = arith.constant 0 : index
      %16 = vector.load %arg4[%c0_11, %c0_12] : memref<1x128xf32, #tpu.memory_space<vmem>>, vector<1x128xf32>
      %17 = vector.broadcast %16 : vector<1x128xf32> to vector<128x128xf32>
      %18 = arith.addf %15, %17 : vector<128x128xf32>
      %cst_13 = arith.constant 0.000000e+00 : f32
      %19 = vector.broadcast %cst_13 : f32 to vector<128x128xf32>
      %20 = arith.maximumf %18, %19 : vector<128x128xf32>
      %21 = arith.truncf %20 : vector<128x128xf32> to vector<128x128xbf16>
      %c0_14 = arith.constant 0 : index
      %c0_15 = arith.constant 0 : index
      %22 = vector.load %arg5[%c0_14, %c0_15] : memref<128x128xbf16, #tpu.memory_space<vmem>>, vector<128x128xbf16>
      tpu.vector_store %arg5[%c0_14, %c0_15], %21 {strides = array<i32>} : memref<128x128xbf16, #tpu.memory_space<vmem>>, vector<128x128xbf16>,
    } else {
    }
    return
  }
  func.func @transform_0(%arg0: i32, %arg1: i32) -> (i32, i32) {
    %c0_i32 = arith.constant 0 : i32
    return %arg0, %arg1 : i32, i32
  }
  func.func @transform_1(%arg0: i32, %arg1: i32) -> (i32, i32) {
    %c0_i32 = arith.constant 0 : i32
    %c0_i32_0 = arith.constant 0 : i32
    %c0_i32_1 = arith.constant 0 : i32
    return %c0_i32, %c0_i32_0 : i32, i32
  }
  func.func @transform_2(%arg0: i32, %arg1: i32) -> (i32, i32) {
    %c0_i32 = arith.constant 0 : i32
    %c0_i32_0 = arith.constant 0 : i32
    %c0_i32_1 = arith.constant 0 : i32
    return %c0_i32, %c0_i32_0 : i32, i32
  }
  func.func @transform_3(%arg0: i32, %arg1: i32) -> (i32, i32) {
    %c0_i32 = arith.constant 0 : i32
    %c0_i32_0 = arith.constant 0 : i32
    return %arg0, %c0_i32 : i32, i32
  }
}

module attributes {stable_mosaic.version = 11 : i64} {
  func.func @_head_pairwise_kernel(%arg0: i32, %arg1: i32, %arg2: memref<128x128xbf16, #tpu.memory_space<vmem>>, %arg3: memref<128x256xbf16, #tpu.memory_space<vmem>>, %arg4: memref<1x256xf32, #tpu.memory_space<vmem>>, %arg5: memref<256x128xbf16, #tpu.memory_space<vmem>>, %arg6: memref<1x128xf32, #tpu.memory_space<vmem>>, %arg7: memref<128x128xbf16, #tpu.memory_space<vmem>>, %arg8: memref<1x128xf32, #tpu.memory_space<vmem>>, %arg9: memref<128x256xbf16, #tpu.memory_space<vmem>>, %arg10: memref<128x128xf32, #tpu.memory_space<vmem>>, %arg11: memref<128x256xf32, #tpu.memory_space<vmem>>) attributes {dimension_semantics = [#tpu.dimension_semantics<parallel>, #tpu.dimension_semantics<arbitrary>], iteration_bounds = array<i64: 2, 1>, scalar_prefetch = 0 : i64, scratch_operands = 0 : i64, tpu.core_type = #tpu.core_type<tc>, window_params = [{transform_indices = @transform_0, window_bounds = array<i64: 128, 128>}, {pipeline_mode = #tpu.pipeline_mode<synchronous>, transform_indices = @transform_1, window_bounds = array<i64: 128, 256>}, {pipeline_mode = #tpu.pipeline_mode<synchronous>, transform_indices = @transform_2, window_bounds = array<i64: 1, 256>}, {pipeline_mode = #tpu.pipeline_mode<synchronous>, transform_indices = @transform_3, window_bounds = array<i64: 256, 128>}, {pipeline_mode = #tpu.pipeline_mode<synchronous>, transform_indices = @transform_4, window_bounds = array<i64: 1, 128>}, {pipeline_mode = #tpu.pipeline_mode<synchronous>, transform_indices = @transform_5, window_bounds = array<i64: 128, 128>}, {pipeline_mode = #tpu.pipeline_mode<synchronous>, transform_indices = @transform_6, window_bounds = array<i64: 1, 128>}, {transform_indices = @transform_7, window_bounds = array<i64: 128, 256>}, {transform_indices = @transform_8, window_bounds = array<i64: 128, 128>}, {transform_indices = @transform_9, window_bounds = array<i64: 128, 256>}]} {
    %c0_i32 = arith.constant 0 : i32
    %0 = arith.cmpi eq, %arg1, %c0_i32 : i32
    %1 = arith.extui %0 : i1 to i32
    %c0_i32_0 = arith.constant 0 : i32
    %2 = arith.cmpi ne, %1, %c0_i32_0 : i32
    scf.if %2 {
      %c0_9 = arith.constant 0 : index
      %c0_10 = arith.constant 0 : index
      %14 = vector.load %arg2[%c0_9, %c0_10] : memref<128x128xbf16, #tpu.memory_space<vmem>>, vector<128x128xbf16>
      %c0_11 = arith.constant 0 : index
      %c0_12 = arith.constant 0 : index
      %15 = vector.load %arg3[%c0_11, %c0_12] : memref<128x256xbf16, #tpu.memory_space<vmem>>, vector<128x256xbf16>
      %cst_13 = arith.constant dense<0.000000e+00> : vector<128x256xf32>
      %16 = tpu.matmul %14, %15, %cst_13 {dimension_numbers = #tpu.dot_dimension_numbers<[1], [0], [0], [1], [0, 0, 1, 1], [], []>} : vector<128x128xbf16>, vector<128x256xbf16>, vector<128x256xf32> -> vector<128x256xf32>
      %c0_14 = arith.constant 0 : index
      %c0_15 = arith.constant 0 : index
      %17 = vector.load %arg4[%c0_14, %c0_15] : memref<1x256xf32, #tpu.memory_space<vmem>>, vector<1x256xf32>
      %18 = vector.broadcast %17 : vector<1x256xf32> to vector<128x256xf32>
      %19 = arith.addf %16, %18 : vector<128x256xf32>
      %cst_16 = arith.constant 0.000000e+00 : f32
      %20 = vector.broadcast %cst_16 : f32 to vector<128x256xf32>
      %21 = arith.maximumf %19, %20 : vector<128x256xf32>
      %22 = arith.truncf %21 : vector<128x256xf32> to vector<128x256xbf16>
      %c0_17 = arith.constant 0 : index
      %c0_18 = arith.constant 0 : index
      %23 = vector.load %arg5[%c0_17, %c0_18] : memref<256x128xbf16, #tpu.memory_space<vmem>>, vector<256x128xbf16>
      %cst_19 = arith.constant dense<0.000000e+00> : vector<128x128xf32>
      %24 = tpu.matmul %22, %23, %cst_19 {dimension_numbers = #tpu.dot_dimension_numbers<[1], [0], [0], [1], [0, 0, 1, 1], [], []>} : vector<128x256xbf16>, vector<256x128xbf16>, vector<128x128xf32> -> vector<128x128xf32>
      %c0_20 = arith.constant 0 : index
      %c0_21 = arith.constant 0 : index
      %25 = vector.load %arg6[%c0_20, %c0_21] : memref<1x128xf32, #tpu.memory_space<vmem>>, vector<1x128xf32>
      %26 = vector.broadcast %25 : vector<1x128xf32> to vector<128x128xf32>
      %27 = arith.addf %24, %26 : vector<128x128xf32>
      %cst_22 = arith.constant 0.000000e+00 : f32
      %28 = vector.broadcast %cst_22 : f32 to vector<128x128xf32>
      %29 = arith.maximumf %27, %28 : vector<128x128xf32>
      %30 = arith.truncf %29 : vector<128x128xf32> to vector<128x128xbf16>
      %c0_23 = arith.constant 0 : index
      %c0_24 = arith.constant 0 : index
      %31 = vector.load %arg7[%c0_23, %c0_24] : memref<128x128xbf16, #tpu.memory_space<vmem>>, vector<128x128xbf16>
      %cst_25 = arith.constant dense<0.000000e+00> : vector<128x128xf32>
      %32 = tpu.matmul %30, %31, %cst_25 {dimension_numbers = #tpu.dot_dimension_numbers<[1], [0], [0], [1], [0, 0, 1, 1], [], []>} : vector<128x128xbf16>, vector<128x128xbf16>, vector<128x128xf32> -> vector<128x128xf32>
      %c0_26 = arith.constant 0 : index
      %c0_27 = arith.constant 0 : index
      %33 = vector.load %arg8[%c0_26, %c0_27] : memref<1x128xf32, #tpu.memory_space<vmem>>, vector<1x128xf32>
      %34 = vector.broadcast %33 : vector<1x128xf32> to vector<128x128xf32>
      %35 = arith.addf %32, %34 : vector<128x128xf32>
      %36 = tpu.iota {dimensions = array<i32: 1>} : vector<128x128xi32>
      %c7_i32 = arith.constant 7 : i32
      %37 = vector.broadcast %c7_i32 : i32 to vector<128x128xi32>
      %38 = arith.cmpi slt, %36, %37 : vector<128x128xi32>
      %cst_28 = arith.constant -1.000000e+30 : f32
      %39 = vector.broadcast %cst_28 : f32 to vector<128x128xf32>
      %40 = arith.select %38, %35, %39 : vector<128x128xi1>, vector<128x128xf32>
      %cst_29 = arith.constant dense<0xFF800000> : vector<128xf32>
      %41 = vector.multi_reduction <maximumf>, %40, %cst_29 [1] : vector<128x128xf32> to vector<128xf32>
      %42 = vector.shape_cast %41 : vector<128xf32> to vector<128x1xf32>
      %43 = vector.broadcast %42 : vector<128x1xf32> to vector<128x128xf32>
      %44 = arith.subf %40, %43 : vector<128x128xf32>
      %45 = math.exp %44 : vector<128x128xf32>
      %cst_30 = arith.constant dense<0.000000e+00> : vector<128xf32>
      %46 = vector.multi_reduction <add>, %45, %cst_30 [1] : vector<128x128xf32> to vector<128xf32>
      %47 = vector.shape_cast %46 : vector<128xf32> to vector<128x1xf32>
      %48 = math.log %47 : vector<128x1xf32>
      %49 = vector.broadcast %48 : vector<128x1xf32> to vector<128x128xf32>
      %50 = arith.subf %44, %49 : vector<128x128xf32>
      %c0_31 = arith.constant 0 : index
      %c0_32 = arith.constant 0 : index
      %51 = vector.load %arg10[%c0_31, %c0_32] : memref<128x128xf32, #tpu.memory_space<vmem>>, vector<128x128xf32>
      tpu.vector_store %arg10[%c0_31, %c0_32], %50 {strides = array<i32>} : memref<128x128xf32, #tpu.memory_space<vmem>>, vector<128x128xf32>,
    } else {
    }
    %c0 = arith.constant 0 : index
    %c0_1 = arith.constant 0 : index
    %3 = vector.load %arg2[%c0, %c0_1] : memref<128x128xbf16, #tpu.memory_space<vmem>>, vector<128x128xbf16>
    %c0_2 = arith.constant 0 : index
    %c0_3 = arith.constant 0 : index
    %4 = vector.load %arg9[%c0_2, %c0_3] : memref<128x256xbf16, #tpu.memory_space<vmem>>, vector<128x256xbf16>
    %cst = arith.constant dense<0.000000e+00> : vector<128x256xf32>
    %5 = tpu.matmul %3, %4, %cst {dimension_numbers = #tpu.dot_dimension_numbers<[1], [0], [0], [1], [0, 0, 1, 1], [], []>} : vector<128x128xbf16>, vector<128x256xbf16>, vector<128x256xf32> -> vector<128x256xf32>
    %cst_4 = arith.constant 5.000000e-01 : f32
    %6 = vector.broadcast %cst_4 : f32 to vector<128x256xf32>
    %7 = arith.mulf %6, %5 : vector<128x256xf32>
    %8 = math.tanh %7 : vector<128x256xf32>
    %cst_5 = arith.constant 5.000000e-01 : f32
    %9 = vector.broadcast %cst_5 : f32 to vector<128x256xf32>
    %10 = arith.mulf %9, %8 : vector<128x256xf32>
    %cst_6 = arith.constant 5.000000e-01 : f32
    %11 = vector.broadcast %cst_6 : f32 to vector<128x256xf32>
    %12 = arith.addf %10, %11 : vector<128x256xf32>
    %c0_7 = arith.constant 0 : index
    %c0_8 = arith.constant 0 : index
    %13 = vector.load %arg11[%c0_7, %c0_8] : memref<128x256xf32, #tpu.memory_space<vmem>>, vector<128x256xf32>
    tpu.vector_store %arg11[%c0_7, %c0_8], %12 {strides = array<i32>} : memref<128x256xf32, #tpu.memory_space<vmem>>, vector<128x256xf32>,
    return
  }
  func.func @transform_0(%arg0: i32, %arg1: i32) -> (i32, i32) {
    %c0_i32 = arith.constant 0 : i32
    %c0_i32_0 = arith.constant 0 : i32
    return %arg0, %c0_i32 : i32, i32
  }
  func.func @transform_1(%arg0: i32, %arg1: i32) -> (i32, i32) {
    %c0_i32 = arith.constant 0 : i32
    %c0_i32_0 = arith.constant 0 : i32
    %c0_i32_1 = arith.constant 0 : i32
    return %c0_i32, %c0_i32_0 : i32, i32
  }
  func.func @transform_2(%arg0: i32, %arg1: i32) -> (i32, i32) {
    %c0_i32 = arith.constant 0 : i32
    %c0_i32_0 = arith.constant 0 : i32
    %c0_i32_1 = arith.constant 0 : i32
    return %c0_i32, %c0_i32_0 : i32, i32
  }
  func.func @transform_3(%arg0: i32, %arg1: i32) -> (i32, i32) {
    %c0_i32 = arith.constant 0 : i32
    %c0_i32_0 = arith.constant 0 : i32
    %c0_i32_1 = arith.constant 0 : i32
    return %c0_i32, %c0_i32_0 : i32, i32
  }
  func.func @transform_4(%arg0: i32, %arg1: i32) -> (i32, i32) {
    %c0_i32 = arith.constant 0 : i32
    %c0_i32_0 = arith.constant 0 : i32
    %c0_i32_1 = arith.constant 0 : i32
    return %c0_i32, %c0_i32_0 : i32, i32
  }
  func.func @transform_5(%arg0: i32, %arg1: i32) -> (i32, i32) {
    %c0_i32 = arith.constant 0 : i32
    %c0_i32_0 = arith.constant 0 : i32
    %c0_i32_1 = arith.constant 0 : i32
    return %c0_i32, %c0_i32_0 : i32, i32
  }
  func.func @transform_6(%arg0: i32, %arg1: i32) -> (i32, i32) {
    %c0_i32 = arith.constant 0 : i32
    %c0_i32_0 = arith.constant 0 : i32
    %c0_i32_1 = arith.constant 0 : i32
    return %c0_i32, %c0_i32_0 : i32, i32
  }
  func.func @transform_7(%arg0: i32, %arg1: i32) -> (i32, i32) {
    %c0_i32 = arith.constant 0 : i32
    %c0_i32_0 = arith.constant 0 : i32
    return %c0_i32, %arg1 : i32, i32
  }
  func.func @transform_8(%arg0: i32, %arg1: i32) -> (i32, i32) {
    %c0_i32 = arith.constant 0 : i32
    %c0_i32_0 = arith.constant 0 : i32
    return %arg0, %c0_i32 : i32, i32
  }
  func.func @transform_9(%arg0: i32, %arg1: i32) -> (i32, i32) {
    %c0_i32 = arith.constant 0 : i32
    return %arg0, %arg1 : i32, i32
  }
}

</mosaic_0001>

<bundles_post_ra>
// kernel: tpu_custom_call.1
= control target key start
LH: loop header
LB: loop body
LE: loop exit
PB: predicated region body
PF: predicated region fallthrough
CT: control target
= control target key end

     0   :  { %6 = vsyncpa [#allocation3], 0  ;;  %s341_s0 = inlined_call_operand.hbm [shape: f32[8,128], index: 0, kind: input, shape index: {}]   ;;  %s342_s1 = inlined_call_operand.hbm [shape: f32[8,128], index: 1, kind: output, shape index: {}]  }
   0x1   :  { %7 = vsyncpa [#allocation4], 0  ;;  %s262_s6 = smov 0  }
   0x2 LB: > { %s145_s7 = sadd.s32 4294967295, %s248_s6   ;;  %p146_p0 = scmp.ge.s32.totalorder %s248_s6, 1  ;;  %s248_s6 = sphi %s262_s6, %s13_s6  }
   0x3   : > { %p60_p1 = scmp.lt.s32.totalorder %s248_s6, 3  ;;  %p276_p3 = scmp.eq.s32.totalorder %s145_s7, 0 }
   0x4   : > { %s250_s10 = smov [#allocation2]   ;;  %s180_s15 = scalar_lea.hbm %s341_s0, 128 }
   0x5   : > { %p270_p2 = pnand %p146_p0, %p60_p1  ;;  %s73_s11 = sshll.u32 %s250_s10, 4  ;;  %s74_s11 = int_to_ptr.vmem [resolvable:$true] %s73_s11 }
   0x6   : > { %s347_s9 = scalar_select %p276_p3, 1, 0 }
   0x7   : > { %s346_s8 = scalar_select %p270_p2, 1, 0 }
   0x8   : > { %p162_p4 = pneg %p270_p2  ;;  %p181_p6 = scmp.ne.s32.totalorder %s341_s0, %s180_s15 }
   0x9   : > { %p187_p10 = scmp.lt.u32.totalorder %s180_s15, %s341_s0 }
   0xa   : > { %p284_p5 = pnand %p276_p3, %p162_p4 }
   0xc   : > { %p182_p7 = pneg %p284_p5 }
   0xe   : > { %p183_p8 = pnand %p182_p7, %p181_p6 }
  0x10   : > { %p184_p9 = pneg %p183_p8 }
  0x12   : > { %p189_p11 = pnand %p187_p10, %p184_p9 }
  0x14   : > { %192 = shalt.err (!%p189_p11)
}
  0x15   : > { %s193_s20 = scalar_lea.vmem %s74_s11, 128  ;;  %p201_p1 = scmp.lt.s32.totalorder %s74_s11, %s74_s11 }
  0x16   : > { %p194_p12 = scmp.ne.s32.totalorder %s74_s11, %s193_s20  ;;  %p202_p4 = scmp.lt.s32.totalorder %s193_s20, %s193_s20 }
  0x18   : > { %p196_p13 = pnand %p194_p12, %p182_p7  ;;  %p203_p3 = por %p202_p4, %p201_p1 }
  0x1a   : > { %p197_p0 = pneg %p196_p13 }
  0x1c   : > { %p204_p2 = pnand %p203_p3, %p197_p0 }
  0x1e   : > { %207 = shalt.err (!%p204_p2)
}
  0x1f   : > { %165 = dma.hbm_to_vmem [thread:$0]  (!%p284_p5), %s341_s0, 128, %s74_s11, [#allocation3]  }
  0x20   : > { %p349_p6 = scmp.ne.s32.totalorder %s346_s8, 0 }
  0x21   : > { %p350_p8 = scmp.ne.s32.totalorder (!%p349_p6), %s347_s9, 0 }
  0x22   : > { %86 = sbr.rel (%p349_p6) target bundleno = 67 (0x43), region = 24 }
  0x29   : > { %239 = dma.done.wait (%p350_p8), [#allocation3], 128  }
  0x2a   : > { %241 = vsyncadd (%p350_p8), [#allocation3], 4294967168  ;;  %s251_s23 = smov [#allocation5]   ;;  %v96_v0 = vld [vmem:[#allocation2] sm:$0xff]  ;;  %p312_p2 = scmp.eq.s32.totalorder %s145_s7, 1 }
  0x2b   : > { %s106_s24 = sshll.u32 %s251_s23, 4  ;;  %v97_v1 = vadd.f32 1.0, %v96_v0  ;;  %s107_s24 = int_to_ptr.vmem [resolvable:$true] %s106_s24 }
  0x2c   : > { %s208_s26 = scalar_lea.vmem %s107_s24, 128  ;;  %p215_p9 = scmp.lt.s32.totalorder %s107_s24, %s107_s24 }
  0x2d   : > { %98 = vst [vmem:[#allocation5] sm:$0xff] %v97_v1  ;;  %p209_p3 = scmp.ne.s32.totalorder %s107_s24, %s208_s26  ;;  %p216_p10 = scmp.lt.s32.totalorder %s208_s26, %s208_s26 }
  0x2f   : > { %p210_p5 = pnand %p209_p3, %p312_p2  ;;  %p217_p11 = por %p216_p10, %p215_p9 }
  0x31   : > { %p211_p7 = pneg %p210_p5 }
  0x33   : > { %p218_p12 = pnand %p217_p11, %p211_p7 }
  0x35   : > { %221 = shalt.err (!%p218_p12)
}
  0x36   : > { %s222_s29 = scalar_lea.hbm %s342_s1, 128 }
  0x37   : > { %p223_p13 = scmp.ne.s32.totalorder %s342_s1, %s222_s29  ;;  %p228_p4 = scmp.lt.u32.totalorder %s222_s29, %s342_s1 }
  0x39   : > { %p224_p0 = pnand %p223_p13, %p312_p2 }
  0x3b   : > { %p225_p1 = pneg %p224_p0 }
  0x3d   : > { %p230_p6 = pnand %p228_p4, %p225_p1 }
  0x3f   : > { %233 = shalt.err (!%p230_p6)
}
  0x40   : > { %159 = dma.vmem_to_hbm [thread:$0]  (%p312_p2), %s107_s24, 128, %s342_s1, [#allocation4]  }
  0x41   : > { %243 = dma.done.wait (%p312_p2), [#allocation4], 128  }
  0x42   : > { %245 = vsyncadd (%p312_p2), [#allocation4], 4294967168 }
  0x43 PF: > { %s13_s6 = sadd.s32 1, %s248_s6  }
  0x44   : > { %p10_p8 = scmp.ge.s32.totalorder %s13_s6, 4  }
  0x46   :  { %12 = sbr.rel (!%p10_p8) target bundleno = 2 (0x2), region = 53 }
  0x4d   :  { %119 = vsyncpa [#allocation3], 1 }
  0x4e   :  { %121 = vsyncpa [#allocation3 + $0x1], 1 }
  0x4f   :  { %122 = vsyncpa [#allocation4], 1 }
  0x50   :  { %124 = vsyncpa [#allocation4 + $0x1], 1 }

// kernel: gcn_forward.4
= control target key start
LH: loop header
LB: loop body
LE: loop exit
PB: predicated region body
PF: predicated region fallthrough
CT: control target
= control target key end

     0   :  { %s726_s9 = smov 0   ;;  %s784_s0 = inlined_call_operand.vmem [shape: bf16[256,128], index: 0, kind: input, shape index: {}]   ;;  %s785_s1 = inlined_call_operand.vmem [shape: bf16[128,128], index: 1, kind: input, shape index: {}]   ;;  %s786_s2 = inlined_call_operand.vmem [shape: bf16[256,128], index: 2, kind: output, shape index: {}]  }
   0x1 LB: > { %s509_s10 = sadd.s32 4294967295, %s709_s9   ;;  %p513_p0 = scmp.ge.s32.totalorder %s709_s9, 1  ;;  %s709_s9 = sphi %s726_s9, %s12_s9  }
   0x2   : > { %p113_p1 = scmp.lt.s32.totalorder %s709_s9, 3 }
   0x4   : > { %p114_p2 = pnand %p513_p0, %p113_p1 }
   0x5   : > { %v687_v0 = vld [vmem:[%s785_s1] sm:$0xff] (!%p114_p2)   ;;  %s514_s13 = sshll.u32 (!%p114_p2), %s509_s10, 4  ;;  %v688_v1 = vld [vmem:[%s785_s1 + $0x8] sm:$0xff] (!%p114_p2)   ;;  %v689_v2 = vld [vmem:[%s785_s1 + $0x10] sm:$0xff] (!%p114_p2)  }
   0x6   : > { %117 = sbr.rel (%p114_p2) target bundleno = 264 (0x108), region = 28  ;;  %p136_p3 = scmp.lt.s32.totalorder (!%p114_p2), %s514_s13, 31  ;;  %631 = vmatprep.subr.bf16.mxu0 (!%p114_p2), %v687_v0  ;;  %663 = vmatprep.subr.bf16.mxu1 (!%p114_p2), %v687_v0  ;;  %v690_v3 = vld [vmem:[%s785_s1 + $0x18] sm:$0xff] (!%p114_p2)   ;;  %v691_v6 = vld [vmem:[%s785_s1 + $0x20] sm:$0xff] (!%p114_p2)   ;;  %v692_v7 = vld [vmem:[%s785_s1 + $0x28] sm:$0xff] (!%p114_p2)  }
   0x7   : > { %632 = vmatpush3.bf16.msra.mxu0 (!%p114_p2), %v687_v0  ;;  %671 = vmatpush3.bf16.msra.mxu1 (!%p114_p2), %v687_v0  ;;  %v693_v8 = vld [vmem:[%s785_s1 + $0x30] sm:$0xff] (!%p114_p2)   ;;  %v694_v9 = vld [vmem:[%s785_s1 + $0x38] sm:$0xff] (!%p114_p2)  }
   0x8   : > { %633 = vmatprep.subr.bf16.mxu0 (!%p114_p2), %v688_v1  ;;  %664 = vmatprep.subr.bf16.mxu1 (!%p114_p2), %v688_v1 }
   0xb   : > { %634 = vmatpush3.bf16.msra.mxu0 (!%p114_p2), %v688_v1  ;;  %672 = vmatpush3.bf16.msra.mxu1 (!%p114_p2), %v688_v1 }
   0xc   : > { %635 = vmatprep.subr.bf16.mxu0 (!%p114_p2), %v689_v2  ;;  %665 = vmatprep.subr.bf16.mxu1 (!%p114_p2), %v689_v2 }
   0xd   : > { %s788_s13 = smov (!%p136_p3, %s514_s13), 31 }
   0xe   : > { %s515_s18 = sshll.u32 %s788_s13, 2 }
   0xf   : > { %s751_s21 = scalar_lea.vmem %s784_s0, %s515_s18  ;;  %636 = vmatpush3.bf16.msra.mxu0 %v689_v2  ;;  %673 = vmatpush3.bf16.msra.mxu1 %v689_v2  ;;  %s145_s6 = scalar_lea.vmem %s786_s2, %s515_s18 }
  0x10   : > { %v695_v4 = vld [vmem:[%s751_s21] sm:$0xff]   ;;  %637 = vmatprep.subr.bf16.mxu0 %v690_v3  ;;  %666 = vmatprep.subr.bf16.mxu1 %v690_v3  ;;  %v697_v10 = vld [vmem:[%s751_s21 + $0x8] sm:$0xff]   ;;  %v699_v12 = vld [vmem:[%s751_s21 + $0x10] sm:$0xff]  }
  0x11   : > { %v696_v5 = vld [vmem:[%s751_s21 + $0x20] sm:$0xff]   ;;  %647 = vmatprep.mubr.bf16.mxu0 %v695_v4  ;;  %v698_v11 = vld [vmem:[%s751_s21 + $0x28] sm:$0xff]   ;;  %v700_v13 = vld [vmem:[%s751_s21 + $0x30] sm:$0xff]  }
  0x12   : > { %655 = vmatprep.mubr.bf16.mxu1 %v696_v5  ;;  %v701_v14 = vld [vmem:[%s751_s21 + $0x18] sm:$0xff]  }
  0x13   : > { %638 = vmatpush3.bf16.msra.mxu0 %v690_v3  ;;  %674 = vmatpush3.bf16.msra.mxu1 %v690_v3  ;;  %v702_v15 = vld [vmem:[%s751_s21 + $0x38] sm:$0xff]  }
  0x14   : > { %639 = vmatprep.subr.bf16.mxu0 %v691_v6  ;;  %667 = vmatprep.subr.bf16.mxu1 %v691_v6 }
  0x17   : > { %640 = vmatpush3.bf16.msra.mxu0 %v691_v6  ;;  %675 = vmatpush3.bf16.msra.mxu1 %v691_v6 }
  0x18   : > { %641 = vmatprep.subr.bf16.mxu0 %v692_v7  ;;  %668 = vmatprep.subr.bf16.mxu1 %v692_v7 }
  0x1b   : > { %642 = vmatpush3.bf16.msra.mxu0 %v692_v7  ;;  %676 = vmatpush3.bf16.msra.mxu1 %v692_v7 }
  0x1c   : > { %643 = vmatprep.subr.bf16.mxu0 %v693_v8  ;;  %669 = vmatprep.subr.bf16.mxu1 %v693_v8 }
  0x1f   : > { %644 = vmatpush3.bf16.msra.mxu0 %v693_v8  ;;  %677 = vmatpush3.bf16.msra.mxu1 %v693_v8 }
  0x20   : > { %645 = vmatprep.subr.bf16.mxu0 %v694_v9  ;;  %670 = vmatprep.subr.bf16.mxu1 %v694_v9 }
  0x23   : > { %646 = vmatpush3.bf16.msra.mxu0 %v694_v9  ;;  %678 = vmatpush3.bf16.msra.mxu1 %v694_v9 }
  0x26   : > { %648 = vmatmul.mubr.bf16.vlgmr.msra.gmra.mrb[0].mxu0 %v697_v10  ;;  %656 = vmatmul.mubr.bf16.vlgmr.msra.gmra.mrb[0].mxu1 %v698_v11 }
  0x27   : > { %651 = vmatprep.mubr.bf16.mxu0 %v699_v12  ;;  %659 = vmatprep.mubr.bf16.mxu1 %v700_v13 }
  0x2e   : > { %652 = vmatmul.mubr.bf16.gmra.mrb[4].mxu0 %v701_v14  ;;  %660 = vmatmul.mubr.bf16.gmra.mrb[4].mxu1 %v702_v15 }
  0xf9   : > { %v649_v16 = vpop.f32.mrb[0].mxu0  ;;  %v657_v17 = vpop.f32.mrb[0].mxu1 }
  0xfa   : > { %v310_v18 = vpop.f32.mrb[1].mxu0  ;;  %v342_v19 = vpop.f32.mrb[1].mxu1 }
  0xfb   : > { %v650_v20 = vpop.f32.mrb[2].mxu0  ;;  %v658_v21 = vpop.f32.mrb[2].mxu1 }
  0xfc   : > { %v576_v22 = vpack.c.bf16 %v650_v20, %v649_v16  ;;  %v596_v23 = vpack.c.bf16 %v658_v21, %v657_v17  ;;  %v313_v24 = vpop.f32.mrb[3].mxu0  ;;  %v345_v25 = vpop.f32.mrb[3].mxu1 }
  0xfd   : > { %v571_v26 = vpack.c.bf16 %v313_v24, %v310_v18  ;;  %v591_v27 = vpack.c.bf16 %v345_v25, %v342_v19 }
  0xfe   : > { %608 = vst [vmem:[%s145_s6 + $0x8] sm:$0xff] %v576_v22   ;;  %612 = vst [vmem:[%s145_s6 + $0x28] sm:$0xff] %v596_v23  }
  0xff   : > { %572 = vst [vmem:[%s145_s6] sm:$0xff] %v571_v26   ;;  %611 = vst [vmem:[%s145_s6 + $0x20] sm:$0xff] %v591_v27  }
 0x101   : > { %v653_v28 = vpop.f32.mrb[4].mxu0  ;;  %v661_v29 = vpop.f32.mrb[4].mxu1 }
 0x102   : > { %v326_v30 = vpop.f32.mrb[5].mxu0  ;;  %v358_v31 = vpop.f32.mrb[5].mxu1 }
 0x103   : > { %v654_v32 = vpop.f32.mrb[6].mxu0  ;;  %v662_v33 = vpop.f32.mrb[6].mxu1 }
 0x104   : > { %v586_v34 = vpack.c.bf16 %v654_v32, %v653_v28  ;;  %v606_v35 = vpack.c.bf16 %v662_v33, %v661_v29  ;;  %v329_v36 = vpop.f32.mrb[7].mxu0  ;;  %v361_v37 = vpop.f32.mrb[7].mxu1 }
 0x105   : > { %v581_v38 = vpack.c.bf16 %v329_v36, %v326_v30  ;;  %v601_v39 = vpack.c.bf16 %v361_v37, %v358_v31 }
 0x106   : > { %610 = vst [vmem:[%s145_s6 + $0x18] sm:$0xff] %v586_v34   ;;  %614 = vst [vmem:[%s145_s6 + $0x38] sm:$0xff] %v606_v35  }
 0x107   : > { %609 = vst [vmem:[%s145_s6 + $0x10] sm:$0xff] %v581_v38   ;;  %613 = vst [vmem:[%s145_s6 + $0x30] sm:$0xff] %v601_v39  }
 0x108 PF: > { %s12_s9 = sadd.s32 1, %s709_s9  }
 0x109   : > { %p9_p4 = scmp.ge.s32.totalorder %s12_s9, 4  }
 0x10b   :  { %11 = sbr.rel (!%p9_p4) target bundleno = 1 (0x1), region = 58 }

// kernel: gcn_forward.5
= control target key start
LH: loop header
LB: loop body
LE: loop exit
PB: predicated region body
PF: predicated region fallthrough
CT: control target
= control target key end

     0   :  { %s1373_s15 = smov 0   ;;  %s1375_s16 = smov 0   ;;  %s1521_s0 = inlined_call_operand.vmem [shape: bf16[256,256], index: 0, kind: input, shape index: {}]   ;;  %s1522_s1 = inlined_call_operand.vmem [shape: bf16[256,128], index: 1, kind: input, shape index: {}]   ;;  %s1523_s2 = inlined_call_operand.vmem [shape: f32[1,128], index: 2, kind: input, shape index: {}]   ;;  %s1524_s3 = inlined_call_operand.vmem [shape: bf16[128,128], index: 3, kind: input, shape index: {}]   ;;  %s1525_s4 = inlined_call_operand.vmem [shape: bf16[256,128], index: 4, kind: output, shape index: {}]  }
   0x1   :  { %s1377_s17 = smov 0  }
   0x2 LB: > { %s26_s18 = sadd.s32 1, %s1342_s16  ;;  %p1011_p0 = scmp.ge.s32.totalorder %s1346_s17, 1  ;;  %s1346_s17 = sphi %s1377_s17, %s14_s17   ;;  %s1342_s16 = sphi %s1375_s16, %s1527_s16   ;;  %s1338_s15 = sphi %s1373_s15, %s1526_s15  }
   0x3   : > { %p28_p1 = scmp.ge.s32.totalorder %s26_s18, 2  ;;  %p183_p2 = scmp.lt.s32.totalorder %s1346_s17, 3 }
   0x5   : > { %s1529_s18 = smov (%p28_p1, %s26_s18), 0  ;;  %p184_p3 = pnand %p1011_p0, %p183_p2 }
   0x6   : > { %v1276_v0 = vld [vmem:[%s1522_s1 + $0x40] sm:$0xff] (!%p184_p3)   ;;  %s1012_s21 = sshll.u32 (!%p184_p3), %s1338_s15, 4  ;;  %v1278_v2 = vld [vmem:[%s1522_s1 + $0x48] sm:$0xff] (!%p184_p3)   ;;  %v1280_v4 = vld [vmem:[%s1522_s1 + $0x50] sm:$0xff] (!%p184_p3)  }
   0x7   : > { %187 = sbr.rel (%p184_p3) target bundleno = 536 (0x218), region = 36  ;;  %v1277_v1 = vld [vmem:[%s1522_s1] sm:$0xff] (!%p184_p3)   ;;  %1140 = vmatprep.subr.bf16.mxu0 (!%p184_p3), %v1276_v0  ;;  %v1279_v3 = vld [vmem:[%s1522_s1 + $0x8] sm:$0xff] (!%p184_p3)   ;;  %p216_p4 = scmp.lt.s32.totalorder (!%p184_p3), %s1012_s21, 31  ;;  %v1281_v5 = vld [vmem:[%s1522_s1 + $0x10] sm:$0xff] (!%p184_p3)  }
   0x8   : > { %1141 = vmatpush3.bf16.msra.mxu0 (!%p184_p3), %v1277_v1  ;;  %v1282_v6 = vld [vmem:[%s1522_s1 + $0x58] sm:$0xff] (!%p184_p3)   ;;  %v1284_v8 = vld [vmem:[%s1522_s1 + $0x60] sm:$0xff] (!%p184_p3)   ;;  %v1286_v10 = vld [vmem:[%s1522_s1 + $0x68] sm:$0xff] (!%p184_p3)  }
   0x9   : > { %1142 = vmatprep.subr.bf16.mxu0 (!%p184_p3), %v1278_v2  ;;  %v1283_v7 = vld [vmem:[%s1522_s1 + $0x18] sm:$0xff] (!%p184_p3)   ;;  %v1285_v9 = vld [vmem:[%s1522_s1 + $0x20] sm:$0xff] (!%p184_p3)   ;;  %v1287_v12 = vld [vmem:[%s1522_s1 + $0x28] sm:$0xff] (!%p184_p3)  }
   0xa   : > { %v1288_v13 = vld [vmem:[%s1522_s1 + $0x70] sm:$0xff] (!%p184_p3)   ;;  %v1290_v15 = vld [vmem:[%s1522_s1 + $0x78] sm:$0xff] (!%p184_p3)   ;;  %v1316_v17 = vld [vmem:[%s1524_s3] sm:$0xff] (!%p184_p3)  }
   0xb   : > { %v1289_v14 = vld [vmem:[%s1522_s1 + $0x30] sm:$0xff] (!%p184_p3)   ;;  %v1291_v16 = vld [vmem:[%s1522_s1 + $0x38] sm:$0xff] (!%p184_p3)   ;;  %v1317_v19 = vld [vmem:[%s1524_s3 + $0x8] sm:$0xff] (!%p184_p3)   ;;  %1220 = vmatprep.subr.bf16.mxu1 (!%p184_p3), %v1316_v17 }
   0xc   : > { %1143 = vmatpush3.bf16.msra.mxu0 (!%p184_p3), %v1279_v3  ;;  %v1318_v21 = vld [vmem:[%s1524_s3 + $0x10] sm:$0xff] (!%p184_p3)   ;;  %1221 = vmatpush3.bf16.msra.mxu1 (!%p184_p3), %v1316_v17  ;;  %v1319_v35 = vld [vmem:[%s1524_s3 + $0x18] sm:$0xff] (!%p184_p3)   ;;  %v1320_v36 = vld [vmem:[%s1524_s3 + $0x20] sm:$0xff] (!%p184_p3)  }
   0xd   : > { %1144 = vmatprep.subr.bf16.mxu0 (!%p184_p3), %v1280_v4  ;;  %1222 = vmatprep.subr.bf16.mxu1 (!%p184_p3), %v1317_v19  ;;  %v1321_v37 = vld [vmem:[%s1524_s3 + $0x28] sm:$0xff] (!%p184_p3)   ;;  %v1322_v38 = vld [vmem:[%s1524_s3 + $0x30] sm:$0xff] (!%p184_p3)   ;;  %v1323_v39 = vld [vmem:[%s1524_s3 + $0x38] sm:$0xff] (!%p184_p3)  }
   0xe   : > { %s1531_s21 = smov (!%p216_p4, %s1012_s21), 31  ;;  %v1490_v42 = vld [vmem:[%s1523_s2] ss:$0 sm:$0xff] }
   0xf   : > { %s1076_s10 = sshll.u32 %s1531_s21, 3  ;;  %s1016_s30 = sshll.u32 %s1531_s21, 2 }
  0x10   : > { %1145 = vmatpush3.bf16.msra.mxu0 %v1281_v5  ;;  %s1424_s15 = scalar_lea.vmem %s1521_s0, %s1076_s10  ;;  %1223 = vmatpush3.bf16.msra.mxu1 %v1317_v19  ;;  %s230_s7 = scalar_lea.vmem %s1525_s4, %s1016_s30 }
  0x11   : > { %1146 = vmatprep.subr.bf16.mxu0 %v1282_v6  ;;  %v1294_v11 = vld [vmem:[%s1424_s15 + $0x4] ss:$8 sps:$4 sm:$0xff]   ;;  %v1292_v18 = vld [vmem:[%s1424_s15] ss:$8 sps:$4 sm:$0xff]   ;;  %v1295_v20 = vld [vmem:[%s1424_s15 + $0x14] ss:$8 sps:$4 sm:$0xff]   ;;  %1224 = vmatprep.subr.bf16.mxu1 %v1318_v21 }
  0x12   : > { %530 = vmatprep.mubr.bf16.mxu0 %v1294_v11  ;;  %v1297_v22 = vld [vmem:[%s1424_s15 + $0x10] ss:$8 sps:$4 sm:$0xff]   ;;  %v1298_v23 = vld [vmem:[%s1424_s15 + $0x24] ss:$8 sps:$4 sm:$0xff]   ;;  %v1300_v24 = vld [vmem:[%s1424_s15 + $0x20] ss:$8 sps:$4 sm:$0xff]  }
  0x13   : > { %v1301_v25 = vld [vmem:[%s1424_s15 + $0x34] ss:$8 sps:$4 sm:$0xff]   ;;  %v1303_v26 = vld [vmem:[%s1424_s15 + $0x30] ss:$8 sps:$4 sm:$0xff]   ;;  %v1304_v27 = vld [vmem:[%s1424_s15 + $0x44] ss:$8 sps:$4 sm:$0xff]  }
  0x14   : > { %1147 = vmatpush3.bf16.msra.mxu0 %v1283_v7  ;;  %1225 = vmatpush3.bf16.msra.mxu1 %v1318_v21  ;;  %v1306_v28 = vld [vmem:[%s1424_s15 + $0x40] ss:$8 sps:$4 sm:$0xff]   ;;  %v1307_v29 = vld [vmem:[%s1424_s15 + $0x54] ss:$8 sps:$4 sm:$0xff]   ;;  %v1309_v30 = vld [vmem:[%s1424_s15 + $0x50] ss:$8 sps:$4 sm:$0xff]  }
  0x15   : > { %1148 = vmatprep.subr.bf16.mxu0 %v1284_v8  ;;  %v1310_v31 = vld [vmem:[%s1424_s15 + $0x64] ss:$8 sps:$4 sm:$0xff]   ;;  %v1312_v32 = vld [vmem:[%s1424_s15 + $0x60] ss:$8 sps:$4 sm:$0xff]   ;;  %v1313_v33 = vld [vmem:[%s1424_s15 + $0x74] ss:$8 sps:$4 sm:$0xff]   ;;  %1226 = vmatprep.subr.bf16.mxu1 %v1319_v35 }
  0x16   : > { %v1315_v34 = vld [vmem:[%s1424_s15 + $0x70] ss:$8 sps:$4 sm:$0xff]  }
  0x18   : > { %1149 = vmatpush3.bf16.msra.mxu0 %v1285_v9  ;;  %1227 = vmatpush3.bf16.msra.mxu1 %v1319_v35 }
  0x19   : > { %1150 = vmatprep.subr.bf16.mxu0 %v1286_v10  ;;  %1228 = vmatprep.subr.bf16.mxu1 %v1320_v36 }
  0x1c   : > { %1151 = vmatpush3.bf16.msra.mxu0 %v1287_v12  ;;  %1229 = vmatpush3.bf16.msra.mxu1 %v1320_v36 }
  0x1d   : > { %1152 = vmatprep.subr.bf16.mxu0 %v1288_v13  ;;  %1230 = vmatprep.subr.bf16.mxu1 %v1321_v37 }
  0x20   : > { %1153 = vmatpush3.bf16.msra.mxu0 %v1289_v14  ;;  %1231 = vmatpush3.bf16.msra.mxu1 %v1321_v37 }
  0x21   : > { %1154 = vmatprep.subr.bf16.mxu0 %v1290_v15  ;;  %1232 = vmatprep.subr.bf16.mxu1 %v1322_v38 }
  0x24   : > { %1155 = vmatpush3.bf16.msra.mxu0 %v1291_v16  ;;  %1233 = vmatpush3.bf16.msra.mxu1 %v1322_v38 }
  0x25   : > { %1234 = vmatprep.subr.bf16.mxu1 %v1323_v39 }
  0x27   : > { %531 = vmatmul.mubr.bf16.vlgmr.msra.gmra.mrb[0].mxu0 %v1292_v18 }
  0x28   : > { %538 = vmatprep.mubr.bf16.mxu0 %v1295_v20  ;;  %1235 = vmatpush3.bf16.msra.mxu1 %v1323_v39 }
  0x2f   : > { %539 = vmatmul.mubr.bf16.gmra.mrb[4].mxu0 %v1297_v22 }
  0x30   : > { %546 = vmatprep.mubr.bf16.mxu0 %v1298_v23 }
  0x37   : > { %547 = vmatmul.mubr.bf16.gmra.mrb[8].mxu0 %v1300_v24 }
  0x38   : > { %554 = vmatprep.mubr.bf16.mxu0 %v1301_v25 }
  0x3f   : > { %555 = vmatmul.mubr.bf16.gmra.mrb[12].mxu0 %v1303_v26 }
  0x40   : > { %562 = vmatprep.mubr.bf16.mxu0 %v1304_v27 }
  0x47   : > { %563 = vmatmul.mubr.bf16.gmra.mrb[16].mxu0 %v1306_v28 }
  0x48   : > { %570 = vmatprep.mubr.bf16.mxu0 %v1307_v29 }
  0x4f   : > { %571 = vmatmul.mubr.bf16.gmra.mrb[20].mxu0 %v1309_v30 }
  0x50   : > { %578 = vmatprep.mubr.bf16.mxu0 %v1310_v31 }
  0x57   : > { %579 = vmatmul.mubr.bf16.gmra.mrb[24].mxu0 %v1312_v32 }
  0x58   : > { %586 = vmatprep.mubr.bf16.mxu0 %v1313_v33 }
  0x5f   : > { %587 = vmatmul.mubr.bf16.gmra.mrb[28].mxu0 %v1315_v34 }
  0xfa   : > { %v1156_v40 = vpop.f32.mrb[0].mxu0 }
  0xfb   : > { %v1157_v41 = vpop.f32.mrb[1].mxu0 }
  0xfc   : > { %v1158_v43 = vadd.f32 %v1157_v41, %v1156_v40  ;;  %v1159_v44 = vpop.f32.mrb[2].mxu0 }
  0xfd   : > { %v1160_v45 = vpop.f32.mrb[3].mxu0 }
  0xfe   : > { %v1161_v46 = vadd.f32 %v1160_v45, %v1159_v44  ;;  %v653_v47 = vadd.f32 %v1158_v43, %v1490_v42 }
 0x100   : > { %v654_v48 = vadd.f32 %v1161_v46, %v1490_v42  ;;  %v669_v50 = vmax.f32 %v653_v47, 0.0 }
 0x102   : > { %v1162_v49 = vpop.f32.mrb[4].mxu0  ;;  %v670_v51 = vmax.f32 %v654_v48, 0.0 }
 0x103   : > { %v1163_v52 = vpop.f32.mrb[5].mxu0 }
 0x104   : > { %v1164_v53 = vadd.f32 %v1163_v52, %v1162_v49  ;;  %v1165_v54 = vpop.f32.mrb[6].mxu0  ;;  %v685_v55 = vpack.c.bf16 %v670_v51, %v669_v50 }
 0x105   : > { %v1166_v56 = vpop.f32.mrb[7].mxu0 }
 0x106   : > { %v655_v57 = vadd.f32 %v1164_v53, %v1490_v42  ;;  %v1167_v58 = vadd.f32 %v1166_v56, %v1165_v54  ;;  %1236 = vmatprep.mubr.bf16.mxu1 %v685_v55 }
 0x108   : > { %v656_v59 = vadd.f32 %v1167_v58, %v1490_v42  ;;  %v671_v60 = vmax.f32 %v655_v57, 0.0 }
 0x10a   : > { %v672_v61 = vmax.f32 %v656_v59, 0.0  ;;  %v1168_v62 = vpop.f32.mrb[8].mxu0 }
 0x10b   : > { %v1169_v63 = vpop.f32.mrb[9].mxu0 }
 0x10c   : > { %v1170_v0 = vadd.f32 %v1169_v63, %v1168_v62  ;;  %v1171_v1 = vpop.f32.mrb[10].mxu0  ;;  %v686_v2 = vpack.c.bf16 %v672_v61, %v671_v60 }
 0x10d   : > { %v1172_v3 = vpop.f32.mrb[11].mxu0 }
 0x10e   : > { %v657_v4 = vadd.f32 %v1170_v0, %v1490_v42  ;;  %v1173_v5 = vadd.f32 %v1172_v3, %v1171_v1  ;;  %1237 = vmatmul.mubr.bf16.vlgmr.msra.gmra.mrb[0].mxu1 %v686_v2 }
 0x110   : > { %v658_v6 = vadd.f32 %v1173_v5, %v1490_v42  ;;  %v673_v7 = vmax.f32 %v657_v4, 0.0 }
 0x112   : > { %v674_v8 = vmax.f32 %v658_v6, 0.0  ;;  %v1174_v9 = vpop.f32.mrb[12].mxu0 }
 0x113   : > { %v1175_v10 = vpop.f32.mrb[13].mxu0 }
 0x114   : > { %v1176_v11 = vadd.f32 %v1175_v10, %v1174_v9  ;;  %v1177_v12 = vpop.f32.mrb[14].mxu0  ;;  %v687_v13 = vpack.c.bf16 %v674_v8, %v673_v7 }
 0x115   : > { %v1178_v14 = vpop.f32.mrb[15].mxu0 }
 0x116   : > { %v659_v15 = vadd.f32 %v1176_v11, %v1490_v42  ;;  %v1179_v16 = vadd.f32 %v1178_v14, %v1177_v12  ;;  %1240 = vmatprep.mubr.bf16.mxu1 %v687_v13 }
 0x118   : > { %v660_v17 = vadd.f32 %v1179_v16, %v1490_v42  ;;  %v675_v18 = vmax.f32 %v659_v15, 0.0 }
 0x11a   : > { %v676_v19 = vmax.f32 %v660_v17, 0.0  ;;  %v1180_v20 = vpop.f32.mrb[16].mxu0 }
 0x11b   : > { %v1181_v21 = vpop.f32.mrb[17].mxu0 }
 0x11c   : > { %v1182_v22 = vadd.f32 %v1181_v21, %v1180_v20  ;;  %v1183_v23 = vpop.f32.mrb[18].mxu0  ;;  %v688_v24 = vpack.c.bf16 %v676_v19, %v675_v18 }
 0x11d   : > { %v1184_v25 = vpop.f32.mrb[19].mxu0 }
 0x11e   : > { %v661_v26 = vadd.f32 %v1182_v22, %v1490_v42  ;;  %v1185_v27 = vadd.f32 %v1184_v25, %v1183_v23  ;;  %1241 = vmatmul.mubr.bf16.gmra.mrb[4].mxu1 %v688_v24 }
 0x120   : > { %v662_v28 = vadd.f32 %v1185_v27, %v1490_v42  ;;  %v677_v29 = vmax.f32 %v661_v26, 0.0 }
 0x122   : > { %v678_v30 = vmax.f32 %v662_v28, 0.0  ;;  %v1186_v31 = vpop.f32.mrb[20].mxu0 }
 0x123   : > { %v1187_v32 = vpop.f32.mrb[21].mxu0 }
 0x124   : > { %v1188_v33 = vadd.f32 %v1187_v32, %v1186_v31  ;;  %v1189_v34 = vpop.f32.mrb[22].mxu0  ;;  %v689_v35 = vpack.c.bf16 %v678_v30, %v677_v29 }
 0x125   : > { %v1190_v36 = vpop.f32.mrb[23].mxu0 }
 0x126   : > { %v663_v37 = vadd.f32 %v1188_v33, %v1490_v42  ;;  %v1191_v38 = vadd.f32 %v1190_v36, %v1189_v34  ;;  %1244 = vmatprep.mubr.bf16.mxu1 %v689_v35 }
 0x128   : > { %v664_v39 = vadd.f32 %v1191_v38, %v1490_v42  ;;  %v679_v40 = vmax.f32 %v663_v37, 0.0 }
 0x12a   : > { %v680_v41 = vmax.f32 %v664_v39, 0.0  ;;  %v1192_v43 = vpop.f32.mrb[24].mxu0 }
 0x12b   : > { %v1193_v44 = vpop.f32.mrb[25].mxu0 }
 0x12c   : > { %v1194_v45 = vadd.f32 %v1193_v44, %v1192_v43  ;;  %v1195_v46 = vpop.f32.mrb[26].mxu0  ;;  %v690_v47 = vpack.c.bf16 %v680_v41, %v679_v40 }
 0x12d   : > { %v1196_v48 = vpop.f32.mrb[27].mxu0 }
 0x12e   : > { %v665_v49 = vadd.f32 %v1194_v45, %v1490_v42  ;;  %v1197_v50 = vadd.f32 %v1196_v48, %v1195_v46  ;;  %1245 = vmatmul.mubr.bf16.gmra.mrb[8].mxu1 %v690_v47 }
 0x130   : > { %v666_v51 = vadd.f32 %v1197_v50, %v1490_v42  ;;  %v681_v52 = vmax.f32 %v665_v49, 0.0 }
 0x132   : > { %v682_v53 = vmax.f32 %v666_v51, 0.0  ;;  %v1198_v54 = vpop.f32.mrb[28].mxu0 }
 0x133   : > { %v1199_v55 = vpop.f32.mrb[29].mxu0 }
 0x134   : > { %v1200_v56 = vadd.f32 %v1199_v55, %v1198_v54  ;;  %v1201_v57 = vpop.f32.mrb[30].mxu0  ;;  %v691_v58 = vpack.c.bf16 %v682_v53, %v681_v52 }
 0x135   : > { %v1202_v59 = vpop.f32.mrb[31].mxu0 }
 0x136   : > { %v667_v60 = vadd.f32 %v1200_v56, %v1490_v42  ;;  %v1203_v61 = vadd.f32 %v1202_v59, %v1201_v57  ;;  %1248 = vmatprep.mubr.bf16.mxu1 %v691_v58 }
 0x138   : > { %v668_v62 = vadd.f32 %v1203_v61, %v1490_v42  ;;  %v683_v63 = vmax.f32 %v667_v60, 0.0 }
 0x13a   : > { %v684_v0 = vmax.f32 %v668_v62, 0.0 }
 0x13c   : > { %v692_v1 = vpack.c.bf16 %v684_v0, %v683_v63 }
 0x13e   : > { %1249 = vmatmul.mubr.bf16.gmra.mrb[12].mxu1 %v692_v1 }
 0x1e1   : > { %v1238_v2 = vpop.f32.mrb[0].mxu1 }
 0x1e2   : > { %v791_v3 = vpop.f32.mrb[1].mxu1 }
 0x1e3   : > { %v1239_v4 = vpop.f32.mrb[2].mxu1 }
 0x1e4   : > { %v1101_v5 = vpack.c.bf16 %v1239_v4, %v1238_v2  ;;  %v794_v6 = vpop.f32.mrb[3].mxu1 }
 0x1e5   : > { %v1096_v7 = vpack.c.bf16 %v794_v6, %v791_v3 }
 0x1e6   : > { %1133 = vst [vmem:[%s230_s7 + $0x8] sm:$0xff] %v1101_v5  }
 0x1e7   : > { %1097 = vst [vmem:[%s230_s7] sm:$0xff] %v1096_v7  }
 0x1f1   : > { %v1242_v8 = vpop.f32.mrb[4].mxu1 }
 0x1f2   : > { %v807_v9 = vpop.f32.mrb[5].mxu1 }
 0x1f3   : > { %v1243_v42 = vpop.f32.mrb[6].mxu1 }
 0x1f4   : > { %v1111_v10 = vpack.c.bf16 %v1243_v42, %v1242_v8  ;;  %v810_v11 = vpop.f32.mrb[7].mxu1 }
 0x1f5   : > { %v1106_v12 = vpack.c.bf16 %v810_v11, %v807_v9 }
 0x1f6   : > { %1135 = vst [vmem:[%s230_s7 + $0x18] sm:$0xff] %v1111_v10  }
 0x1f7   : > { %1134 = vst [vmem:[%s230_s7 + $0x10] sm:$0xff] %v1106_v12  }
 0x201   : > { %v1246_v13 = vpop.f32.mrb[8].mxu1 }
 0x202   : > { %v823_v14 = vpop.f32.mrb[9].mxu1 }
 0x203   : > { %v1247_v15 = vpop.f32.mrb[10].mxu1 }
 0x204   : > { %v1121_v16 = vpack.c.bf16 %v1247_v15, %v1246_v13  ;;  %v826_v17 = vpop.f32.mrb[11].mxu1 }
 0x205   : > { %v1116_v18 = vpack.c.bf16 %v826_v17, %v823_v14 }
 0x206   : > { %1137 = vst [vmem:[%s230_s7 + $0x28] sm:$0xff] %v1121_v16  }
 0x207   : > { %1136 = vst [vmem:[%s230_s7 + $0x20] sm:$0xff] %v1116_v18  }
 0x211   : > { %v1250_v19 = vpop.f32.mrb[12].mxu1 }
 0x212   : > { %v839_v20 = vpop.f32.mrb[13].mxu1 }
 0x213   : > { %v1251_v21 = vpop.f32.mrb[14].mxu1 }
 0x214   : > { %v1131_v22 = vpack.c.bf16 %v1251_v21, %v1250_v19  ;;  %v842_v23 = vpop.f32.mrb[15].mxu1 }
 0x215   : > { %v1126_v24 = vpack.c.bf16 %v842_v23, %v839_v20 }
 0x216   : > { %1139 = vst [vmem:[%s230_s7 + $0x38] sm:$0xff] %v1131_v22  }
 0x217   : > { %1138 = vst [vmem:[%s230_s7 + $0x30] sm:$0xff] %v1126_v24  }
 0x218 PF: > { %s14_s17 = sadd.s32 1, %s1346_s17   ;;  %s1526_s15 = smov %s1342_s16 }
 0x219   : > { %p11_p5 = scmp.ge.s32.totalorder %s14_s17, 4   ;;  %s1527_s16 = smov %s1529_s18 }
 0x21b   :  { %13 = sbr.rel (!%p11_p5) target bundleno = 2 (0x2), region = 75 }

// kernel: gcn_forward.6
= control target key start
LH: loop header
LB: loop body
LE: loop exit
PB: predicated region body
PF: predicated region fallthrough
CT: control target
= control target key end

     0   :  { %s1124_s12 = smov 0   ;;  %s1126_s13 = smov 0   ;;  %s1258_s0 = inlined_call_operand.vmem [shape: bf16[256,256], index: 0, kind: input, shape index: {}]   ;;  %s1259_s1 = inlined_call_operand.vmem [shape: bf16[256,128], index: 1, kind: input, shape index: {}]   ;;  %s1260_s2 = inlined_call_operand.vmem [shape: f32[1,128], index: 2, kind: input, shape index: {}]   ;;  %s1261_s3 = inlined_call_operand.vmem [shape: bf16[256,128], index: 3, kind: output, shape index: {}]  }
   0x1   :  { %s1128_s14 = smov 0  }
   0x2 LB: > { %s25_s15 = sadd.s32 1, %s1098_s13  ;;  %p815_p0 = scmp.ge.s32.totalorder %s1102_s14, 1  ;;  %s1102_s14 = sphi %s1128_s14, %s13_s14   ;;  %s1098_s13 = sphi %s1126_s13, %s1263_s13   ;;  %s1094_s12 = sphi %s1124_s12, %s1262_s12  }
   0x3   : > { %p27_p1 = scmp.ge.s32.totalorder %s25_s15, 2  ;;  %p158_p2 = scmp.lt.s32.totalorder %s1102_s14, 3 }
   0x5   : > { %s1265_s15 = smov (%p27_p1, %s25_s15), 0  ;;  %p159_p3 = pnand %p815_p0, %p158_p2 }
   0x6   : > { %v1040_v0 = vld [vmem:[%s1259_s1 + $0x40] sm:$0xff] (!%p159_p3)   ;;  %s816_s18 = sshll.u32 (!%p159_p3), %s1094_s12, 4  ;;  %v1042_v2 = vld [vmem:[%s1259_s1 + $0x48] sm:$0xff] (!%p159_p3)   ;;  %v1044_v4 = vld [vmem:[%s1259_s1 + $0x50] sm:$0xff] (!%p159_p3)  }
   0x7   : > { %162 = sbr.rel (%p159_p3) target bundleno = 288 (0x120), region = 32  ;;  %v1041_v1 = vld [vmem:[%s1259_s1] sm:$0xff] (!%p159_p3)   ;;  %936 = vmatprep.subr.bf16.mxu0 (!%p159_p3), %v1040_v0  ;;  %1000 = vmatprep.subr.bf16.mxu1 (!%p159_p3), %v1040_v0  ;;  %v1043_v3 = vld [vmem:[%s1259_s1 + $0x8] sm:$0xff] (!%p159_p3)   ;;  %p189_p4 = scmp.lt.s32.totalorder (!%p159_p3), %s816_s18, 31  ;;  %v1045_v5 = vld [vmem:[%s1259_s1 + $0x10] sm:$0xff] (!%p159_p3)  }
   0x8   : > { %937 = vmatpush3.bf16.msra.mxu0 (!%p159_p3), %v1041_v1  ;;  %1008 = vmatpush3.bf16.msra.mxu1 (!%p159_p3), %v1041_v1  ;;  %v1046_v6 = vld [vmem:[%s1259_s1 + $0x58] sm:$0xff] (!%p159_p3)   ;;  %v1048_v8 = vld [vmem:[%s1259_s1 + $0x60] sm:$0xff] (!%p159_p3)   ;;  %v1050_v10 = vld [vmem:[%s1259_s1 + $0x68] sm:$0xff] (!%p159_p3)  }
   0x9   : > { %938 = vmatprep.subr.bf16.mxu0 (!%p159_p3), %v1042_v2  ;;  %1001 = vmatprep.subr.bf16.mxu1 (!%p159_p3), %v1042_v2  ;;  %v1047_v7 = vld [vmem:[%s1259_s1 + $0x18] sm:$0xff] (!%p159_p3)   ;;  %v1049_v9 = vld [vmem:[%s1259_s1 + $0x20] sm:$0xff] (!%p159_p3)   ;;  %v1051_v13 = vld [vmem:[%s1259_s1 + $0x28] sm:$0xff] (!%p159_p3)  }
   0xa   : > { %v1052_v14 = vld [vmem:[%s1259_s1 + $0x70] sm:$0xff] (!%p159_p3)   ;;  %v1054_v16 = vld [vmem:[%s1259_s1 + $0x78] sm:$0xff] (!%p159_p3)   ;;  %v1217_v35 = vld [vmem:[%s1260_s2] ss:$0 sm:$0xff] (!%p159_p3) }
   0xb   : > { %v1053_v15 = vld [vmem:[%s1259_s1 + $0x30] sm:$0xff] (!%p159_p3)   ;;  %v1055_v17 = vld [vmem:[%s1259_s1 + $0x38] sm:$0xff] (!%p159_p3)  }
   0xc   : > { %939 = vmatpush3.bf16.msra.mxu0 (!%p159_p3), %v1043_v3  ;;  %1009 = vmatpush3.bf16.msra.mxu1 (!%p159_p3), %v1043_v3 }
   0xd   : > { %940 = vmatprep.subr.bf16.mxu0 (!%p159_p3), %v1044_v4  ;;  %1002 = vmatprep.subr.bf16.mxu1 (!%p159_p3), %v1044_v4 }
   0xe   : > { %s1267_s18 = smov (!%p189_p4, %s816_s18), 31 }
   0xf   : > { %s872_s6 = sshll.u32 %s1267_s18, 3  ;;  %s820_s5 = sshll.u32 %s1267_s18, 2 }
  0x10   : > { %941 = vmatpush3.bf16.msra.mxu0 %v1045_v5  ;;  %1010 = vmatpush3.bf16.msra.mxu1 %v1045_v5  ;;  %s1175_s11 = scalar_lea.vmem %s1258_s0, %s872_s6  ;;  %s1227_s8 = scalar_lea.vmem %s1261_s3, %s820_s5 }
  0x11   : > { %942 = vmatprep.subr.bf16.mxu0 %v1046_v6  ;;  %1003 = vmatprep.subr.bf16.mxu1 %v1046_v6  ;;  %v1058_v11 = vld [vmem:[%s1175_s11 + $0x4] ss:$8 sps:$4 sm:$0xff]   ;;  %v1056_v18 = vld [vmem:[%s1175_s11] ss:$8 sps:$4 sm:$0xff]   ;;  %v1062_v20 = vld [vmem:[%s1175_s11 + $0x14] ss:$8 sps:$4 sm:$0xff]  }
  0x12   : > { %v1061_v12 = vld [vmem:[%s1175_s11 + $0x44] ss:$8 sps:$4 sm:$0xff]   ;;  %503 = vmatprep.mubr.bf16.mxu0 %v1058_v11  ;;  %v1059_v19 = vld [vmem:[%s1175_s11 + $0x40] ss:$8 sps:$4 sm:$0xff]   ;;  %v1064_v21 = vld [vmem:[%s1175_s11 + $0x54] ss:$8 sps:$4 sm:$0xff]  }
  0x13   : > { %535 = vmatprep.mubr.bf16.mxu1 %v1061_v12  ;;  %v1066_v22 = vld [vmem:[%s1175_s11 + $0x10] ss:$8 sps:$4 sm:$0xff]   ;;  %v1068_v24 = vld [vmem:[%s1175_s11 + $0x24] ss:$8 sps:$4 sm:$0xff]   ;;  %v1072_v26 = vld [vmem:[%s1175_s11 + $0x20] ss:$8 sps:$4 sm:$0xff]  }
  0x14   : > { %943 = vmatpush3.bf16.msra.mxu0 %v1047_v7  ;;  %1011 = vmatpush3.bf16.msra.mxu1 %v1047_v7  ;;  %v1067_v23 = vld [vmem:[%s1175_s11 + $0x50] ss:$8 sps:$4 sm:$0xff]   ;;  %v1070_v25 = vld [vmem:[%s1175_s11 + $0x64] ss:$8 sps:$4 sm:$0xff]   ;;  %v1073_v27 = vld [vmem:[%s1175_s11 + $0x60] ss:$8 sps:$4 sm:$0xff]  }
  0x15   : > { %944 = vmatprep.subr.bf16.mxu0 %v1048_v8  ;;  %1004 = vmatprep.subr.bf16.mxu1 %v1048_v8  ;;  %v1074_v28 = vld [vmem:[%s1175_s11 + $0x34] ss:$8 sps:$4 sm:$0xff]   ;;  %v1078_v30 = vld [vmem:[%s1175_s11 + $0x30] ss:$8 sps:$4 sm:$0xff]  }
  0x16   : > { %v1076_v29 = vld [vmem:[%s1175_s11 + $0x74] ss:$8 sps:$4 sm:$0xff]   ;;  %v1079_v31 = vld [vmem:[%s1175_s11 + $0x70] ss:$8 sps:$4 sm:$0xff]  }
  0x18   : > { %945 = vmatpush3.bf16.msra.mxu0 %v1049_v9  ;;  %1012 = vmatpush3.bf16.msra.mxu1 %v1049_v9 }
  0x19   : > { %946 = vmatprep.subr.bf16.mxu0 %v1050_v10  ;;  %1005 = vmatprep.subr.bf16.mxu1 %v1050_v10 }
  0x1c   : > { %947 = vmatpush3.bf16.msra.mxu0 %v1051_v13  ;;  %1013 = vmatpush3.bf16.msra.mxu1 %v1051_v13 }
  0x1d   : > { %948 = vmatprep.subr.bf16.mxu0 %v1052_v14  ;;  %1006 = vmatprep.subr.bf16.mxu1 %v1052_v14 }
  0x20   : > { %949 = vmatpush3.bf16.msra.mxu0 %v1053_v15  ;;  %1014 = vmatpush3.bf16.msra.mxu1 %v1053_v15 }
  0x21   : > { %950 = vmatprep.subr.bf16.mxu0 %v1054_v16  ;;  %1007 = vmatprep.subr.bf16.mxu1 %v1054_v16 }
  0x24   : > { %951 = vmatpush3.bf16.msra.mxu0 %v1055_v17  ;;  %1015 = vmatpush3.bf16.msra.mxu1 %v1055_v17 }
  0x27   : > { %504 = vmatmul.mubr.bf16.vlgmr.msra.gmra.mrb[0].mxu0 %v1056_v18  ;;  %536 = vmatmul.mubr.bf16.vlgmr.msra.gmra.mrb[0].mxu1 %v1059_v19 }
  0x28   : > { %511 = vmatprep.mubr.bf16.mxu0 %v1062_v20  ;;  %543 = vmatprep.mubr.bf16.mxu1 %v1064_v21 }
  0x2f   : > { %512 = vmatmul.mubr.bf16.gmra.mrb[4].mxu0 %v1066_v22  ;;  %544 = vmatmul.mubr.bf16.gmra.mrb[4].mxu1 %v1067_v23 }
  0x30   : > { %519 = vmatprep.mubr.bf16.mxu0 %v1068_v24  ;;  %551 = vmatprep.mubr.bf16.mxu1 %v1070_v25 }
  0x37   : > { %520 = vmatmul.mubr.bf16.gmra.mrb[8].mxu0 %v1072_v26  ;;  %552 = vmatmul.mubr.bf16.gmra.mrb[8].mxu1 %v1073_v27 }
  0x38   : > { %527 = vmatprep.mubr.bf16.mxu0 %v1074_v28  ;;  %559 = vmatprep.mubr.bf16.mxu1 %v1076_v29 }
  0x3f   : > { %528 = vmatmul.mubr.bf16.gmra.mrb[12].mxu0 %v1078_v30  ;;  %560 = vmatmul.mubr.bf16.gmra.mrb[12].mxu1 %v1079_v31 }
  0xfa   : > { %v952_v32 = vpop.f32.mrb[0].mxu0  ;;  %v976_v33 = vpop.f32.mrb[0].mxu1 }
  0xfb   : > { %v953_v34 = vpop.f32.mrb[1].mxu0  ;;  %v977_v36 = vpop.f32.mrb[1].mxu1 }
  0xfc   : > { %v954_v37 = vadd.f32 %v953_v34, %v952_v32  ;;  %v978_v38 = vadd.f32 %v977_v36, %v976_v33  ;;  %v955_v39 = vpop.f32.mrb[2].mxu0  ;;  %v979_v40 = vpop.f32.mrb[2].mxu1 }
  0xfd   : > { %v956_v41 = vpop.f32.mrb[3].mxu0  ;;  %v980_v42 = vpop.f32.mrb[3].mxu1 }
  0xfe   : > { %v626_v43 = vadd.f32 %v954_v37, %v1217_v35  ;;  %v634_v44 = vadd.f32 %v978_v38, %v1217_v35  ;;  %v957_v45 = vadd.f32 %v956_v41, %v955_v39  ;;  %v981_v46 = vadd.f32 %v980_v42, %v979_v40 }
 0x100   : > { %v627_v47 = vadd.f32 %v957_v45, %v1217_v35  ;;  %v635_v48 = vadd.f32 %v981_v46, %v1217_v35  ;;  %v642_v49 = vmax.f32 %v626_v43, 0.0  ;;  %v650_v50 = vmax.f32 %v634_v44, 0.0 }
 0x102   : > { %v643_v51 = vmax.f32 %v627_v47, 0.0  ;;  %v651_v52 = vmax.f32 %v635_v48, 0.0  ;;  %v958_v53 = vpop.f32.mrb[4].mxu0  ;;  %v982_v54 = vpop.f32.mrb[4].mxu1 }
 0x103   : > { %v959_v55 = vpop.f32.mrb[5].mxu0  ;;  %v983_v56 = vpop.f32.mrb[5].mxu1 }
 0x104   : > { %v892_v57 = vpack.c.bf16 %v643_v51, %v642_v49  ;;  %v912_v58 = vpack.c.bf16 %v651_v52, %v650_v50  ;;  %v960_v59 = vadd.f32 %v959_v55, %v958_v53  ;;  %v984_v60 = vadd.f32 %v983_v56, %v982_v54  ;;  %v961_v61 = vpop.f32.mrb[6].mxu0  ;;  %v985_v62 = vpop.f32.mrb[6].mxu1 }
 0x105   : > { %v962_v63 = vpop.f32.mrb[7].mxu0  ;;  %v986_v0 = vpop.f32.mrb[7].mxu1 }
 0x106   : > { %893 = vst [vmem:[%s1227_s8] sm:$0xff] %v892_v57   ;;  %932 = vst [vmem:[%s1227_s8 + $0x20] sm:$0xff] %v912_v58   ;;  %v628_v1 = vadd.f32 %v960_v59, %v1217_v35  ;;  %v636_v2 = vadd.f32 %v984_v60, %v1217_v35  ;;  %v963_v3 = vadd.f32 %v962_v63, %v961_v61 }
 0x107   : > { %v987_v4 = vadd.f32 %v986_v0, %v985_v62 }
 0x108   : > { %v629_v5 = vadd.f32 %v963_v3, %v1217_v35  ;;  %v644_v7 = vmax.f32 %v628_v1, 0.0  ;;  %v652_v8 = vmax.f32 %v636_v2, 0.0 }
 0x109   : > { %v637_v6 = vadd.f32 %v987_v4, %v1217_v35 }
 0x10a   : > { %v645_v9 = vmax.f32 %v629_v5, 0.0  ;;  %v964_v11 = vpop.f32.mrb[8].mxu0  ;;  %v988_v12 = vpop.f32.mrb[8].mxu1 }
 0x10b   : > { %v653_v10 = vmax.f32 %v637_v6, 0.0  ;;  %v965_v13 = vpop.f32.mrb[9].mxu0  ;;  %v989_v14 = vpop.f32.mrb[9].mxu1 }
 0x10c   : > { %v897_v15 = vpack.c.bf16 %v645_v9, %v644_v7  ;;  %v966_v17 = vadd.f32 %v965_v13, %v964_v11  ;;  %v990_v18 = vadd.f32 %v989_v14, %v988_v12  ;;  %v967_v19 = vpop.f32.mrb[10].mxu0  ;;  %v991_v20 = vpop.f32.mrb[10].mxu1 }
 0x10d   : > { %v917_v16 = vpack.c.bf16 %v653_v10, %v652_v8  ;;  %v968_v21 = vpop.f32.mrb[11].mxu0  ;;  %v992_v22 = vpop.f32.mrb[11].mxu1 }
 0x10e   : > { %929 = vst [vmem:[%s1227_s8 + $0x8] sm:$0xff] %v897_v15   ;;  %v630_v23 = vadd.f32 %v966_v17, %v1217_v35  ;;  %v638_v24 = vadd.f32 %v990_v18, %v1217_v35  ;;  %v969_v25 = vadd.f32 %v968_v21, %v967_v19  ;;  %v993_v26 = vadd.f32 %v992_v22, %v991_v20 }
 0x10f   : > { %933 = vst [vmem:[%s1227_s8 + $0x28] sm:$0xff] %v917_v16  }
 0x110   : > { %v631_v27 = vadd.f32 %v969_v25, %v1217_v35  ;;  %v639_v28 = vadd.f32 %v993_v26, %v1217_v35  ;;  %v646_v29 = vmax.f32 %v630_v23, 0.0  ;;  %v654_v30 = vmax.f32 %v638_v24, 0.0 }
 0x112   : > { %v647_v31 = vmax.f32 %v631_v27, 0.0  ;;  %v655_v32 = vmax.f32 %v639_v28, 0.0  ;;  %v970_v33 = vpop.f32.mrb[12].mxu0  ;;  %v994_v34 = vpop.f32.mrb[12].mxu1 }
 0x113   : > { %v971_v36 = vpop.f32.mrb[13].mxu0  ;;  %v995_v37 = vpop.f32.mrb[13].mxu1 }
 0x114   : > { %v902_v38 = vpack.c.bf16 %v647_v31, %v646_v29  ;;  %v922_v39 = vpack.c.bf16 %v655_v32, %v654_v30  ;;  %v972_v40 = vadd.f32 %v971_v36, %v970_v33  ;;  %v996_v41 = vadd.f32 %v995_v37, %v994_v34  ;;  %v973_v42 = vpop.f32.mrb[14].mxu0  ;;  %v997_v43 = vpop.f32.mrb[14].mxu1 }
 0x115   : > { %v974_v44 = vpop.f32.mrb[15].mxu0  ;;  %v998_v45 = vpop.f32.mrb[15].mxu1 }
 0x116   : > { %930 = vst [vmem:[%s1227_s8 + $0x10] sm:$0xff] %v902_v38   ;;  %934 = vst [vmem:[%s1227_s8 + $0x30] sm:$0xff] %v922_v39   ;;  %v632_v46 = vadd.f32 %v972_v40, %v1217_v35  ;;  %v640_v47 = vadd.f32 %v996_v41, %v1217_v35  ;;  %v975_v48 = vadd.f32 %v974_v44, %v973_v42 }
 0x117   : > { %v999_v49 = vadd.f32 %v998_v45, %v997_v43 }
 0x118   : > { %v633_v50 = vadd.f32 %v975_v48, %v1217_v35  ;;  %v648_v52 = vmax.f32 %v632_v46, 0.0  ;;  %v656_v53 = vmax.f32 %v640_v47, 0.0 }
 0x119   : > { %v641_v51 = vadd.f32 %v999_v49, %v1217_v35 }
 0x11a   : > { %v649_v54 = vmax.f32 %v633_v50, 0.0 }
 0x11b   : > { %v657_v55 = vmax.f32 %v641_v51, 0.0 }
 0x11c   : > { %v907_v56 = vpack.c.bf16 %v649_v54, %v648_v52 }
 0x11d   : > { %v927_v57 = vpack.c.bf16 %v657_v55, %v656_v53 }
 0x11e   : > { %931 = vst [vmem:[%s1227_s8 + $0x18] sm:$0xff] %v907_v56  }
 0x11f   : > { %935 = vst [vmem:[%s1227_s8 + $0x38] sm:$0xff] %v927_v57  }
 0x120 PF: > { %s13_s14 = sadd.s32 1, %s1102_s14   ;;  %s1262_s12 = smov %s1098_s13 }
 0x121   : > { %p10_p5 = scmp.ge.s32.totalorder %s13_s14, 4   ;;  %s1263_s13 = smov %s1265_s15 }
 0x123   :  { %12 = sbr.rel (!%p10_p5) target bundleno = 2 (0x2), region = 71 }

// kernel: gcn_forward.7
= control target key start
LH: loop header
LB: loop body
LE: loop exit
PB: predicated region body
PF: predicated region fallthrough
CT: control target
= control target key end

     0   :  { %15 = vsyncpa [#allocation3], 0  ;;  %s3127_s0 = inlined_call_operand.vmem [shape: bf16[256,128], index: 0, kind: input, shape index: {}]   ;;  %s3128_s1 = inlined_call_operand.vmem [shape: bf16[128,256], index: 1, kind: input, shape index: {}]   ;;  %s3129_s2 = inlined_call_operand.vmem [shape: f32[1,256], index: 2, kind: input, shape index: {}]   ;;  %s3130_s3 = inlined_call_operand.vmem [shape: bf16[256,128], index: 3, kind: input, shape index: {}]   ;;  %s3131_s4 = inlined_call_operand.vmem [shape: f32[1,128], index: 4, kind: input, shape index: {}]   ;;  %s3132_s5 = inlined_call_operand.vmem [shape: bf16[128,128], index: 5, kind: input, shape index: {}]   ;;  %s3133_s6 = inlined_call_operand.vmem [shape: f32[1,128], index: 6, kind: input, shape index: {}]   ;;  %s3134_s7 = inlined_call_operand.vmem [shape: bf16[128,256], index: 7, kind: input, shape index: {}]   ;;  %s3135_s8 = inlined_call_operand.vmem [shape: f32[256,128], index: 8, kind: output, shape index: {0}]   ;;  %s3136_s9 = inlined_call_operand.hbm [shape: f32[256,256], index: 9, kind: output, shape index: {1}]  }
   0x1   :  { %17 = vsyncpa [#allocation3 + $0x1], 0  ;;  %s2543_s30 = smov 0   ;;  %s2545_s10 = smov 0  }
   0x2   :  { %s2547_s11 = smov 0   ;;  %s2549_s12 = smov 0  }
   0x3   :  { %s2551_s13 = smov 0   ;;  %s2553_s14 = smov 0  }
   0x4 LB: > { %3139 = sst [smem:[#allocation5_spill]] %s2483_s13  ;;  %s1914_s15 = sadd.s32 4294967295, %s2487_s14   ;;  %s2487_s14 = sphi %s2553_s14, %s23_s14   ;;  %s2483_s13 = sphi %s2551_s13, %s3144_s13   ;;  %s2479_s12 = sphi %s2549_s12, %s3143_s12   ;;  %s2475_s11 = sphi %s2547_s11, %s3147_s11   ;;  %s2471_s10 = sphi %s2545_s10, %s3146_s10   ;;  %s2467_s30 = sphi %s2543_s30, %s3145_s30  }
   0x5   : > { %s1915_s16 = sadd.s32 4294967294, %s2487_s14   ;;  %s35_s17 = sadd.s32 1, %s2483_s13 }
   0x6   : > { %s248_s18 = sadd.s32 1, %s2475_s11  ;;  %p37_p0 = scmp.ge.s32.totalorder %s35_s17, 2 }
   0x7   : > { %p258_p1 = scmp.ne.s32.totalorder %s2475_s11, %s2471_s10  ;;  %p259_p2 = scmp.eq.s32.totalorder %s1914_s15, 1 }
   0x8   : > { %p264_p3 = scmp.ne.s32.totalorder %s2471_s10, %s2467_s30  ;;  %s3149_s17 = smov (%p37_p0, %s35_s17), 0 }
   0x9   : > { %3140 = sst [smem:[#allocation6_spill]] %s3149_s17  ;;  %p2583_p4 = por %p259_p2, %p258_p1 }
   0xa   : > { %p265_p5 = scmp.eq.s32.totalorder %s1915_s16, 1  ;;  %s243_s20 = ssub.s32 %s2483_s13, %s3149_s17 }
   0xb   : > { %p1919_p6 = scmp.ge.s32.totalorder %s2487_s14, 1  ;;  %p246_p7 = scmp.eq.s32.totalorder %s243_s20, 0 }
   0xc   : > { %p2590_p8 = por %p265_p5, %p264_p3  ;;  %p319_p9 = scmp.lt.s32.totalorder %s2487_s14, 3 }
   0xd   : > { %s2596_s22 = scalar_select %p246_p7, %s2475_s11, %s248_s18  }
   0xe   : > { %p320_p10 = pnand %p1919_p6, %p319_p9 }
   0xf   : > { %v2193_v0 = vld [vmem:[%s3128_s1 + $0x4] ss:$8 sps:$4 sm:$0xff] (!%p320_p10)   ;;  %s1921_s25 = sshll.u32 (!%p320_p10), %s2479_s12, 4  ;;  %v2195_v1 = vld [vmem:[%s3128_s1] ss:$8 sps:$4 sm:$0xff] (!%p320_p10)   ;;  %v2489_v2 = vmov (!%p320_p10), 0   ;;  %v424_v44 = vlaneseq (!%p320_p10) }
  0x10   : > { %323 = sbr.rel (%p320_p10) target bundleno = 1086 (0x43e), region = 52  ;;  %594 = vmatprep.mubr.bf16.mxu0 (!%p320_p10), %v2489_v2  ;;  %p366_p11 = scmp.lt.s32.totalorder (!%p320_p10), %s1921_s25, 31  ;;  %562 = vmatprep.subr.bf16.mxu0 (!%p320_p10), %v2193_v0  ;;  %v2196_v3 = vld [vmem:[%s3128_s1 + $0x14] ss:$8 sps:$4 sm:$0xff] (!%p320_p10)   ;;  %v2198_v4 = vld [vmem:[%s3128_s1 + $0x10] ss:$8 sps:$4 sm:$0xff] (!%p320_p10)  }
  0x11   : > { %563 = vmatpush1.bf16.msra.mxu0 (!%p320_p10), %v2195_v1  ;;  %v2199_v5 = vld [vmem:[%s3128_s1 + $0x24] ss:$8 sps:$4 sm:$0xff] (!%p320_p10)   ;;  %v2201_v6 = vld [vmem:[%s3128_s1 + $0x20] ss:$8 sps:$4 sm:$0xff] (!%p320_p10)   ;;  %v2202_v7 = vld [vmem:[%s3128_s1 + $0x34] ss:$8 sps:$4 sm:$0xff] (!%p320_p10)  }
  0x12   : > { %564 = vmatprep.subr.bf16.mxu0 (!%p320_p10), %v2196_v3  ;;  %v2204_v8 = vld [vmem:[%s3128_s1 + $0x30] ss:$8 sps:$4 sm:$0xff] (!%p320_p10)   ;;  %v2205_v9 = vld [vmem:[%s3128_s1 + $0x44] ss:$8 sps:$4 sm:$0xff] (!%p320_p10)   ;;  %v2207_v10 = vld [vmem:[%s3128_s1 + $0x40] ss:$8 sps:$4 sm:$0xff] (!%p320_p10)  }
  0x13   : > { %v2208_v11 = vld [vmem:[%s3128_s1 + $0x54] ss:$8 sps:$4 sm:$0xff] (!%p320_p10)   ;;  %v2210_v12 = vld [vmem:[%s3128_s1 + $0x50] ss:$8 sps:$4 sm:$0xff] (!%p320_p10)   ;;  %v2211_v13 = vld [vmem:[%s3128_s1 + $0x64] ss:$8 sps:$4 sm:$0xff] (!%p320_p10)  }
  0x14   : > { %v2225_v14 = vld [vmem:[%s3130_s3 + $0x40] sm:$0xff] (!%p320_p10)   ;;  %v2227_v17 = vld [vmem:[%s3130_s3 + $0x48] sm:$0xff] (!%p320_p10)   ;;  %v2229_v19 = vld [vmem:[%s3130_s3 + $0x50] sm:$0xff] (!%p320_p10)   ;;  %v425_v45 = vshrl.u32 (!%p320_p10), %v424_v44, 7  ;;  %s2006_s28 = sshll.u32 (!%p320_p10), %s2479_s12, 12  ;;  %s2490_s18 = smov (!%p320_p10), [#allocation2]  }
  0x15   : > { %565 = vmatpush1.bf16.msra.mxu0 (!%p320_p10), %v2198_v4  ;;  %v2226_v15 = vld [vmem:[%s3130_s3] sm:$0xff] (!%p320_p10)   ;;  %2007 = vmatprep.subr.bf16.mxu1 (!%p320_p10), %v2225_v14  ;;  %v2228_v18 = vld [vmem:[%s3130_s3 + $0x8] sm:$0xff] (!%p320_p10)   ;;  %v2214_v20 = vld [vmem:[%s3128_s1 + $0x74] ss:$8 sps:$4 sm:$0xff] (!%p320_p10)   ;;  %s3034_s15 = scalar_lea.hbm (!%p320_p10), %s3136_s9, %s2006_s28  ;;  %s2413_s20 = sshll.u32 (!%p320_p10), %s2490_s18, 4  ;;  %s2414_s20 = int_to_ptr.vmem [resolvable:$false] %s2413_s20 }
  0x16   : > { %566 = vmatprep.subr.bf16.mxu0 (!%p320_p10), %v2199_v5  ;;  %v2213_v16 = vld [vmem:[%s3128_s1 + $0x60] ss:$8 sps:$4 sm:$0xff] (!%p320_p10)   ;;  %2008 = vmatpush3.bf16.msra.mxu1 (!%p320_p10), %v2226_v15  ;;  %v2216_v21 = vld [vmem:[%s3128_s1 + $0x70] ss:$8 sps:$4 sm:$0xff] (!%p320_p10)   ;;  %v426_v46 = vsub.s32 (!%p320_p10), 0, %v425_v45  ;;  %v430_v48 = vsub.s32 (!%p320_p10), 1, %v425_v45 }
  0x17   : > { %s3151_s25 = smov (!%p366_p11, %s1921_s25), 31  ;;  %2009 = vmatprep.subr.bf16.mxu1 %v2227_v17  ;;  %v2230_v22 = vld [vmem:[%s3130_s3 + $0x10] sm:$0xff]   ;;  %v2231_v23 = vld [vmem:[%s3130_s3 + $0x58] sm:$0xff]   ;;  %v2233_v26 = vld [vmem:[%s3130_s3 + $0x60] sm:$0xff]   ;;  %s2415_s24 = scalar_lea.vmem %s2414_s20, 8192 }
  0x18   : > { %s1922_s23 = sshll.u32 %s3151_s25, 2  ;;  %v2232_v25 = vld [vmem:[%s3130_s3 + $0x18] sm:$0xff]   ;;  %v2234_v27 = vld [vmem:[%s3130_s3 + $0x20] sm:$0xff]   ;;  %v2235_v28 = vld [vmem:[%s3130_s3 + $0x68] sm:$0xff]  }
  0x19   : > { %s2627_s16 = scalar_lea.vmem %s3127_s0, %s1922_s23  ;;  %567 = vmatpush1.bf16.msra.mxu0 %v2201_v6  ;;  %v2236_v36 = vld [vmem:[%s3130_s3 + $0x28] sm:$0xff]   ;;  %v2237_v37 = vld [vmem:[%s3130_s3 + $0x70] sm:$0xff]   ;;  %v2239_v39 = vld [vmem:[%s3130_s3 + $0x78] sm:$0xff]  }
  0x1a   : > { %568 = vmatprep.subr.bf16.mxu0 %v2202_v7  ;;  %2010 = vmatpush3.bf16.msra.mxu1 %v2228_v18  ;;  %v2217_v24 = vld [vmem:[%s2627_s16] sm:$0xff]   ;;  %v2218_v29 = vld [vmem:[%s2627_s16 + $0x8] sm:$0xff]   ;;  %v2219_v30 = vld [vmem:[%s2627_s16 + $0x10] sm:$0xff]  }
  0x1b   : > { %2011 = vmatprep.subr.bf16.mxu1 %v2229_v19  ;;  %v2220_v31 = vld [vmem:[%s2627_s16 + $0x18] sm:$0xff]   ;;  %v2221_v32 = vld [vmem:[%s2627_s16 + $0x20] sm:$0xff]   ;;  %v2222_v33 = vld [vmem:[%s2627_s16 + $0x28] sm:$0xff]  }
  0x1c   : > { %v2223_v34 = vld [vmem:[%s2627_s16 + $0x30] sm:$0xff]   ;;  %v2224_v35 = vld [vmem:[%s2627_s16 + $0x38] sm:$0xff]   ;;  %v2241_v41 = vld [vmem:[%s3132_s5] sm:$0xff]  }
  0x1d   : > { %569 = vmatpush1.bf16.msra.mxu0 %v2204_v8  ;;  %v2238_v38 = vld [vmem:[%s3130_s3 + $0x30] sm:$0xff]   ;;  %v2240_v40 = vld [vmem:[%s3130_s3 + $0x38] sm:$0xff]   ;;  %v2242_v42 = vld [vmem:[%s3132_s5 + $0x8] sm:$0xff]  }
  0x1e   : > { %570 = vmatprep.subr.bf16.mxu0 %v2205_v9  ;;  %2012 = vmatpush3.bf16.msra.mxu1 %v2230_v22  ;;  %v2243_v43 = vld [vmem:[%s3132_s5 + $0x10] sm:$0xff]   ;;  %v422_v47 = vld [vmem:[%s3129_s2] sm:$0x3] }
  0x1f   : > { %2013 = vmatprep.subr.bf16.mxu1 %v2231_v23  ;;  %v2732_v49 = vrot.slane %v422_v47, %v426_v46  ;;  %v2734_v50 = vrot.slane %v422_v47, %v430_v48 }
  0x21   : > { %571 = vmatpush1.bf16.msra.mxu0 %v2207_v10 }
  0x22   : > { %572 = vmatprep.subr.bf16.mxu0 %v2208_v11  ;;  %2014 = vmatpush3.bf16.msra.mxu1 %v2232_v25 }
  0x23   : > { %2015 = vmatprep.subr.bf16.mxu1 %v2233_v26 }
  0x25   : > { %573 = vmatpush1.bf16.msra.mxu0 %v2210_v12 }
  0x26   : > { %574 = vmatprep.subr.bf16.mxu0 %v2211_v13  ;;  %2016 = vmatpush3.bf16.msra.mxu1 %v2234_v27 }
  0x27   : > { %2017 = vmatprep.subr.bf16.mxu1 %v2235_v28 }
  0x29   : > { %575 = vmatpush1.bf16.msra.mxu0 %v2213_v16 }
  0x2a   : > { %576 = vmatprep.subr.bf16.mxu0 %v2214_v20  ;;  %2018 = vmatpush3.bf16.msra.mxu1 %v2236_v36 }
  0x2b   : > { %2019 = vmatprep.subr.bf16.mxu1 %v2237_v37 }
  0x2d   : > { %577 = vmatpush1.bf16.msra.mxu0 %v2216_v21 }
  0x2e   : > { %2020 = vmatpush3.bf16.msra.mxu1 %v2238_v38  ;;  %2087 = vmatprep.subr.bf16.mxu0 %v2241_v41 }
  0x2f   : > { %2021 = vmatprep.subr.bf16.mxu1 %v2239_v39 }
  0x30   : > { %595 = vmatmul.mubr.bf16.vlgmr.msra.gmra.mrb[0].mxu0 %v2217_v24 }
  0x31   : > { %604 = vmatprep.mubr.bf16.mxu0 %v2489_v2  ;;  %2088 = vmatpush3.bf16.msra.mxu0 %v2241_v41 }
  0x32   : > { %2022 = vmatpush3.bf16.msra.mxu1 %v2240_v40  ;;  %2089 = vmatprep.subr.bf16.mxu0 %v2242_v42 }
  0x35   : > { %2090 = vmatpush3.bf16.msra.mxu0 %v2242_v42 }
  0x36   : > { %2091 = vmatprep.subr.bf16.mxu0 %v2243_v43 }
  0x38   : > { %605 = vmatmul.mubr.bf16.gmra.mrb[4].mxu0 %v2218_v29 }
  0x39   : > { %614 = vmatprep.mubr.bf16.mxu0 %v2489_v2  ;;  %2092 = vmatpush3.bf16.msra.mxu0 %v2243_v43 }
  0x40   : > { %615 = vmatmul.mubr.bf16.gmra.mrb[8].mxu0 %v2219_v30 }
  0x41   : > { %624 = vmatprep.mubr.bf16.mxu0 %v2489_v2 }
  0x48   : > { %625 = vmatmul.mubr.bf16.gmra.mrb[12].mxu0 %v2220_v31 }
  0x49   : > { %634 = vmatprep.mubr.bf16.mxu0 %v2489_v2 }
  0x50   : > { %635 = vmatmul.mubr.bf16.gmra.mrb[16].mxu0 %v2221_v32 }
  0x51   : > { %644 = vmatprep.mubr.bf16.mxu0 %v2489_v2 }
  0x58   : > { %645 = vmatmul.mubr.bf16.gmra.mrb[20].mxu0 %v2222_v33 }
  0x59   : > { %654 = vmatprep.mubr.bf16.mxu0 %v2489_v2 }
  0x60   : > { %655 = vmatmul.mubr.bf16.gmra.mrb[24].mxu0 %v2223_v34 }
  0x61   : > { %664 = vmatprep.mubr.bf16.mxu0 %v2489_v2 }
  0x68   : > { %665 = vmatmul.mubr.bf16.gmra.mrb[28].mxu0 %v2224_v35 }
 0x103   : > { %v596_v51 = vpop.f32.mrb[0].mxu0 }
 0x104   : > { %v597_v52 = vadd.f32 %v596_v51, %v2732_v49  ;;  %v598_v53 = vpop.f32.mrb[1].mxu0 }
 0x105   : > { %v599_v54 = vadd.f32 %v598_v53, %v2734_v50  ;;  %v600_v55 = vpop.f32.mrb[2].mxu0 }
 0x106   : > { %v601_v56 = vadd.f32 %v600_v55, %v2732_v49  ;;  %v602_v57 = vpop.f32.mrb[3].mxu0  ;;  %v675_v59 = vmax.f32 %v597_v52, 0.0 }
 0x107   : > { %v603_v58 = vadd.f32 %v602_v57, %v2734_v50  ;;  %v676_v61 = vmax.f32 %v599_v54, 0.0 }
 0x108   : > { %v677_v60 = vmax.f32 %v601_v56, 0.0 }
 0x109   : > { %v678_v62 = vmax.f32 %v603_v58, 0.0 }
 0x10a   : > { %v707_v63 = vpack.c.bf16 %v677_v60, %v675_v59 }
 0x10b   : > { %v606_v0 = vpop.f32.mrb[4].mxu0  ;;  %v708_v1 = vpack.c.bf16 %v678_v62, %v676_v61 }
 0x10c   : > { %v607_v3 = vadd.f32 %v606_v0, %v2732_v49  ;;  %v608_v4 = vpop.f32.mrb[5].mxu0 }
 0x10d   : > { %v609_v5 = vadd.f32 %v608_v4, %v2734_v50  ;;  %v610_v6 = vpop.f32.mrb[6].mxu0  ;;  %890 = vmatprep.mubr.bf16.mxu1 %v708_v1 }
 0x10e   : > { %v611_v7 = vadd.f32 %v610_v6, %v2732_v49  ;;  %v612_v8 = vpop.f32.mrb[7].mxu0  ;;  %891 = vmatmul.mubr.bf16.vlgmr.msra.gmra.mrb[0].mxu1 %v707_v63  ;;  %v679_v10 = vmax.f32 %v607_v3, 0.0 }
 0x10f   : > { %v613_v9 = vadd.f32 %v612_v8, %v2734_v50  ;;  %v680_v12 = vmax.f32 %v609_v5, 0.0 }
 0x110   : > { %v681_v11 = vmax.f32 %v611_v7, 0.0 }
 0x111   : > { %v682_v13 = vmax.f32 %v613_v9, 0.0 }
 0x112   : > { %v709_v14 = vpack.c.bf16 %v681_v11, %v679_v10 }
 0x113   : > { %v710_v15 = vpack.c.bf16 %v682_v13, %v680_v12  ;;  %v616_v16 = vpop.f32.mrb[8].mxu0 }
 0x114   : > { %v617_v17 = vadd.f32 %v616_v16, %v2732_v49  ;;  %v618_v18 = vpop.f32.mrb[9].mxu0 }
 0x115   : > { %v619_v19 = vadd.f32 %v618_v18, %v2734_v50  ;;  %v620_v20 = vpop.f32.mrb[10].mxu0  ;;  %898 = vmatprep.mubr.bf16.mxu1 %v710_v15 }
 0x116   : > { %v621_v21 = vadd.f32 %v620_v20, %v2732_v49  ;;  %v622_v22 = vpop.f32.mrb[11].mxu0  ;;  %899 = vmatmul.mubr.bf16.gmra.mrb[4].mxu1 %v709_v14  ;;  %v683_v24 = vmax.f32 %v617_v17, 0.0 }
 0x117   : > { %v623_v23 = vadd.f32 %v622_v22, %v2734_v50  ;;  %v684_v26 = vmax.f32 %v619_v19, 0.0 }
 0x118   : > { %v685_v25 = vmax.f32 %v621_v21, 0.0 }
 0x119   : > { %v686_v27 = vmax.f32 %v623_v23, 0.0 }
 0x11a   : > { %v711_v28 = vpack.c.bf16 %v685_v25, %v683_v24 }
 0x11b   : > { %v712_v29 = vpack.c.bf16 %v686_v27, %v684_v26  ;;  %v626_v30 = vpop.f32.mrb[12].mxu0 }
 0x11c   : > { %v627_v31 = vadd.f32 %v626_v30, %v2732_v49  ;;  %v628_v32 = vpop.f32.mrb[13].mxu0 }
 0x11d   : > { %v629_v33 = vadd.f32 %v628_v32, %v2734_v50  ;;  %v630_v34 = vpop.f32.mrb[14].mxu0  ;;  %906 = vmatprep.mubr.bf16.mxu1 %v712_v29 }
 0x11e   : > { %v631_v35 = vadd.f32 %v630_v34, %v2732_v49  ;;  %v632_v36 = vpop.f32.mrb[15].mxu0  ;;  %907 = vmatmul.mubr.bf16.gmra.mrb[8].mxu1 %v711_v28  ;;  %v687_v38 = vmax.f32 %v627_v31, 0.0 }
 0x11f   : > { %v633_v37 = vadd.f32 %v632_v36, %v2734_v50  ;;  %v688_v40 = vmax.f32 %v629_v33, 0.0 }
 0x120   : > { %v689_v39 = vmax.f32 %v631_v35, 0.0 }
 0x121   : > { %v690_v41 = vmax.f32 %v633_v37, 0.0 }
 0x122   : > { %v713_v42 = vpack.c.bf16 %v689_v39, %v687_v38 }
 0x123   : > { %v714_v43 = vpack.c.bf16 %v690_v41, %v688_v40  ;;  %v636_v45 = vpop.f32.mrb[16].mxu0  ;;  %v2244_v40 = vld [vmem:[%s3132_s5 + $0x18] sm:$0xff]   ;;  %v2247_v41 = vld [vmem:[%s3132_s5 + $0x30] sm:$0xff]  }
 0x124   : > { %v637_v46 = vadd.f32 %v636_v45, %v2732_v49  ;;  %v638_v47 = vpop.f32.mrb[17].mxu0  ;;  %2093 = vmatprep.subr.bf16.mxu0 %v2244_v40  ;;  %v2787_v45 = vld [vmem:[%s3131_s4] ss:$0 sm:$0xff] }
 0x125   : > { %v639_v48 = vadd.f32 %v638_v47, %v2734_v50  ;;  %v640_v51 = vpop.f32.mrb[18].mxu0  ;;  %914 = vmatprep.mubr.bf16.mxu1 %v714_v43  ;;  %2094 = vmatpush3.bf16.msra.mxu0 %v2244_v40 }
 0x126   : > { %v641_v52 = vadd.f32 %v640_v51, %v2732_v49  ;;  %v642_v53 = vpop.f32.mrb[19].mxu0  ;;  %915 = vmatmul.mubr.bf16.gmra.mrb[12].mxu1 %v713_v42  ;;  %v691_v55 = vmax.f32 %v637_v46, 0.0  ;;  %v2248_v42 = vld [vmem:[%s3132_s5 + $0x38] sm:$0xff]  }
 0x127   : > { %v643_v54 = vadd.f32 %v642_v53, %v2734_v50  ;;  %v692_v57 = vmax.f32 %v639_v48, 0.0 }
 0x128   : > { %v693_v56 = vmax.f32 %v641_v52, 0.0 }
 0x129   : > { %v694_v58 = vmax.f32 %v643_v54, 0.0 }
 0x12a   : > { %v715_v59 = vpack.c.bf16 %v693_v56, %v691_v55 }
 0x12b   : > { %v716_v60 = vpack.c.bf16 %v694_v58, %v692_v57  ;;  %v646_v61 = vpop.f32.mrb[20].mxu0 }
 0x12c   : > { %v647_v62 = vadd.f32 %v646_v61, %v2732_v49  ;;  %v648_v63 = vpop.f32.mrb[21].mxu0 }
 0x12d   : > { %v649_v0 = vadd.f32 %v648_v63, %v2734_v50  ;;  %v650_v1 = vpop.f32.mrb[22].mxu0  ;;  %922 = vmatprep.mubr.bf16.mxu1 %v716_v60 }
 0x12e   : > { %v651_v3 = vadd.f32 %v650_v1, %v2732_v49  ;;  %v652_v4 = vpop.f32.mrb[23].mxu0  ;;  %923 = vmatmul.mubr.bf16.gmra.mrb[16].mxu1 %v715_v59  ;;  %v695_v6 = vmax.f32 %v647_v62, 0.0 }
 0x12f   : > { %v653_v5 = vadd.f32 %v652_v4, %v2734_v50  ;;  %v696_v8 = vmax.f32 %v649_v0, 0.0 }
 0x130   : > { %v697_v7 = vmax.f32 %v651_v3, 0.0 }
 0x131   : > { %v698_v9 = vmax.f32 %v653_v5, 0.0 }
 0x132   : > { %v717_v10 = vpack.c.bf16 %v697_v7, %v695_v6 }
 0x133   : > { %v718_v11 = vpack.c.bf16 %v698_v9, %v696_v8  ;;  %v656_v12 = vpop.f32.mrb[24].mxu0 }
 0x134   : > { %v657_v13 = vadd.f32 %v656_v12, %v2732_v49  ;;  %v658_v14 = vpop.f32.mrb[25].mxu0 }
 0x135   : > { %v659_v15 = vadd.f32 %v658_v14, %v2734_v50  ;;  %v660_v16 = vpop.f32.mrb[26].mxu0  ;;  %930 = vmatprep.mubr.bf16.mxu1 %v718_v11 }
 0x136   : > { %v661_v17 = vadd.f32 %v660_v16, %v2732_v49  ;;  %v662_v18 = vpop.f32.mrb[27].mxu0  ;;  %931 = vmatmul.mubr.bf16.gmra.mrb[20].mxu1 %v717_v10  ;;  %v699_v20 = vmax.f32 %v657_v13, 0.0 }
 0x137   : > { %v663_v19 = vadd.f32 %v662_v18, %v2734_v50  ;;  %v700_v22 = vmax.f32 %v659_v15, 0.0 }
 0x138   : > { %v701_v21 = vmax.f32 %v661_v17, 0.0 }
 0x139   : > { %v702_v23 = vmax.f32 %v663_v19, 0.0 }
 0x13a   : > { %v719_v24 = vpack.c.bf16 %v701_v21, %v699_v20 }
 0x13b   : > { %v720_v25 = vpack.c.bf16 %v702_v23, %v700_v22  ;;  %v666_v26 = vpop.f32.mrb[28].mxu0 }
 0x13c   : > { %v667_v27 = vadd.f32 %v666_v26, %v2732_v49  ;;  %v668_v28 = vpop.f32.mrb[29].mxu0 }
 0x13d   : > { %v669_v29 = vadd.f32 %v668_v28, %v2734_v50  ;;  %v670_v30 = vpop.f32.mrb[30].mxu0  ;;  %938 = vmatprep.mubr.bf16.mxu1 %v720_v25 }
 0x13e   : > { %v671_v31 = vadd.f32 %v670_v30, %v2732_v49  ;;  %v672_v32 = vpop.f32.mrb[31].mxu0  ;;  %939 = vmatmul.mubr.bf16.gmra.mrb[24].mxu1 %v719_v24  ;;  %v703_v34 = vmax.f32 %v667_v27, 0.0  ;;  %v2245_v49 = vld [vmem:[%s3132_s5 + $0x20] sm:$0xff]  }
 0x13f   : > { %v673_v33 = vadd.f32 %v672_v32, %v2734_v50  ;;  %v704_v36 = vmax.f32 %v669_v29, 0.0  ;;  %2095 = vmatprep.subr.bf16.mxu0 %v2245_v49  ;;  %v2246_v50 = vld [vmem:[%s3132_s5 + $0x28] sm:$0xff]  }
 0x140   : > { %v705_v35 = vmax.f32 %v671_v31, 0.0  ;;  %2096 = vmatpush3.bf16.msra.mxu0 %v2245_v49 }
 0x141   : > { %v706_v37 = vmax.f32 %v673_v33, 0.0  ;;  %2097 = vmatprep.subr.bf16.mxu0 %v2246_v50 }
 0x142   : > { %v721_v38 = vpack.c.bf16 %v705_v35, %v703_v34 }
 0x143   : > { %v722_v39 = vpack.c.bf16 %v706_v37, %v704_v36 }
 0x144   : > { %2098 = vmatpush3.bf16.msra.mxu0 %v2246_v50 }
 0x145   : > { %946 = vmatprep.mubr.bf16.mxu1 %v722_v39  ;;  %2099 = vmatprep.subr.bf16.mxu0 %v2247_v41 }
 0x146   : > { %947 = vmatmul.mubr.bf16.gmra.mrb[28].mxu1 %v721_v38 }
 0x147   : > { %1554 = vmatprep.mubr.bf16.mxu1 %v2489_v2 }
 0x148   : > { %2100 = vmatpush3.bf16.msra.mxu0 %v2247_v41 }
 0x149   : > { %2101 = vmatprep.subr.bf16.mxu0 %v2248_v42 }
 0x14c   : > { %2102 = vmatpush3.bf16.msra.mxu0 %v2248_v42 }
 0x1e1   : > { %v2023_v43 = vpop.f32.mrb[0].mxu1 }
 0x1e2   : > { %v2024_v46 = vpop.f32.mrb[1].mxu1 }
 0x1e3   : > { %v2025_v47 = vadd.f32 %v2024_v46, %v2023_v43  ;;  %v2026_v48 = vpop.f32.mrb[2].mxu1 }
 0x1e4   : > { %v2027_v51 = vpop.f32.mrb[3].mxu1 }
 0x1e5   : > { %v893_v52 = vadd.f32 %v2025_v47, %v2787_v45  ;;  %v2028_v53 = vadd.f32 %v2027_v51, %v2026_v48 }
 0x1e7   : > { %v896_v54 = vadd.f32 %v2028_v53, %v2787_v45  ;;  %v955_v55 = vmax.f32 %v893_v52, 0.0 }
 0x1e9   : > { %v956_v56 = vmax.f32 %v896_v54, 0.0  ;;  %v2029_v57 = vpop.f32.mrb[4].mxu1 }
 0x1ea   : > { %v2030_v58 = vpop.f32.mrb[5].mxu1 }
 0x1eb   : > { %v2031_v59 = vadd.f32 %v2030_v58, %v2029_v57  ;;  %v2032_v60 = vpop.f32.mrb[6].mxu1  ;;  %v971_v61 = vpack.c.bf16 %v956_v56, %v955_v55 }
 0x1ec   : > { %v2033_v62 = vpop.f32.mrb[7].mxu1 }
 0x1ed   : > { %v901_v63 = vadd.f32 %v2031_v59, %v2787_v45  ;;  %v2034_v0 = vadd.f32 %v2033_v62, %v2032_v60  ;;  %2103 = vmatprep.mubr.bf16.mxu0 %v971_v61 }
 0x1ef   : > { %v904_v1 = vadd.f32 %v2034_v0, %v2787_v45  ;;  %v957_v3 = vmax.f32 %v901_v63, 0.0 }
 0x1f1   : > { %v958_v4 = vmax.f32 %v904_v1, 0.0  ;;  %v2035_v5 = vpop.f32.mrb[8].mxu1 }
 0x1f2   : > { %v2036_v6 = vpop.f32.mrb[9].mxu1 }
 0x1f3   : > { %v972_v7 = vpack.c.bf16 %v958_v4, %v957_v3  ;;  %v2037_v8 = vadd.f32 %v2036_v6, %v2035_v5  ;;  %v2038_v9 = vpop.f32.mrb[10].mxu1 }
 0x1f4   : > { %v2039_v10 = vpop.f32.mrb[11].mxu1 }
 0x1f5   : > { %v909_v11 = vadd.f32 %v2037_v8, %v2787_v45  ;;  %v2040_v12 = vadd.f32 %v2039_v10, %v2038_v9  ;;  %2104 = vmatmul.mubr.bf16.vlgmr.msra.gmra.mrb[32].mxu0 %v972_v7 }
 0x1f7   : > { %v912_v13 = vadd.f32 %v2040_v12, %v2787_v45  ;;  %v959_v14 = vmax.f32 %v909_v11, 0.0  ;;  %v2249_v11 = vld [vmem:[%s3134_s7] ss:$8 sps:$4 sm:$0xff]   ;;  %v2251_v12 = vld [vmem:[%s3134_s7 + $0x4] ss:$8 sps:$4 sm:$0xff]  }
 0x1f8   : > { %2119 = vmatprep.subr.bf16.mxu1 %v2251_v12  ;;  %1502 = vmatprep.subr.bf16.mxu0 %v2251_v12 }
 0x1f9   : > { %v960_v15 = vmax.f32 %v912_v13, 0.0  ;;  %v2041_v16 = vpop.f32.mrb[12].mxu1  ;;  %2127 = vmatpush1.bf16.msra.mxu1 %v2249_v11  ;;  %1503 = vmatpush1.bf16.msra.mxu0 %v2249_v11  ;;  %v2254_v13 = vld [vmem:[%s3134_s7 + $0x14] ss:$8 sps:$4 sm:$0xff]  }
 0x1fa   : > { %v2042_v17 = vpop.f32.mrb[13].mxu1  ;;  %2120 = vmatprep.subr.bf16.mxu1 %v2254_v13  ;;  %1504 = vmatprep.subr.bf16.mxu0 %v2254_v13 }
 0x1fb   : > { %v2043_v18 = vadd.f32 %v2042_v17, %v2041_v16  ;;  %v2044_v19 = vpop.f32.mrb[14].mxu1  ;;  %v973_v20 = vpack.c.bf16 %v960_v15, %v959_v14  ;;  %v2255_v14 = vld [vmem:[%s3134_s7 + $0x20] ss:$8 sps:$4 sm:$0xff]   ;;  %v2257_v15 = vld [vmem:[%s3134_s7 + $0x24] ss:$8 sps:$4 sm:$0xff]  }
 0x1fc   : > { %v2045_v21 = vpop.f32.mrb[15].mxu1  ;;  %v2258_v16 = vld [vmem:[%s3134_s7 + $0x30] ss:$8 sps:$4 sm:$0xff]   ;;  %v2260_v17 = vld [vmem:[%s3134_s7 + $0x34] ss:$8 sps:$4 sm:$0xff]  }
 0x1fd   : > { %v917_v22 = vadd.f32 %v2043_v18, %v2787_v45  ;;  %v2046_v23 = vadd.f32 %v2045_v21, %v2044_v19  ;;  %2107 = vmatprep.mubr.bf16.mxu0 %v973_v20  ;;  %v2263_v18 = vld [vmem:[%s3134_s7 + $0x44] ss:$8 sps:$4 sm:$0xff]   ;;  %v2261_v19 = vld [vmem:[%s3134_s7 + $0x40] ss:$8 sps:$4 sm:$0xff]   ;;  %v2266_v20 = vld [vmem:[%s3134_s7 + $0x54] ss:$8 sps:$4 sm:$0xff]  }
 0x1fe   : > { %v2264_v21 = vld [vmem:[%s3134_s7 + $0x50] ss:$8 sps:$4 sm:$0xff]  }
 0x1ff   : > { %v920_v24 = vadd.f32 %v2046_v23, %v2787_v45  ;;  %v961_v25 = vmax.f32 %v917_v22, 0.0  ;;  %v2269_v22 = vld [vmem:[%s3134_s7 + $0x64] ss:$8 sps:$4 sm:$0xff]   ;;  %v2267_v23 = vld [vmem:[%s3134_s7 + $0x60] ss:$8 sps:$4 sm:$0xff]  }
 0x201   : > { %v962_v26 = vmax.f32 %v920_v24, 0.0  ;;  %v2047_v27 = vpop.f32.mrb[16].mxu1  ;;  %v2272_v24 = vld [vmem:[%s3134_s7 + $0x74] ss:$8 sps:$4 sm:$0xff]  }
 0x202   : > { %v2048_v28 = vpop.f32.mrb[17].mxu1 }
 0x203   : > { %v2049_v29 = vadd.f32 %v2048_v28, %v2047_v27  ;;  %v2050_v30 = vpop.f32.mrb[18].mxu1  ;;  %v974_v31 = vpack.c.bf16 %v962_v26, %v961_v25  ;;  %v2270_v25 = vld [vmem:[%s3134_s7 + $0x70] ss:$8 sps:$4 sm:$0xff]   ;;  %v2277_v27 = vld [vmem:[%s2627_s16] sm:$0xff]  }
 0x204   : > { %v2051_v32 = vpop.f32.mrb[19].mxu1  ;;  %v2273_v26 = vld [vmem:[%s2627_s16 + $0x10] sm:$0xff]   ;;  %v2274_v28 = vld [vmem:[%s2627_s16 + $0x18] sm:$0xff]  }
 0x205   : > { %v925_v33 = vadd.f32 %v2049_v29, %v2787_v45  ;;  %v2052_v34 = vadd.f32 %v2051_v32, %v2050_v30  ;;  %2108 = vmatmul.mubr.bf16.gmra.mrb[36].mxu0 %v974_v31  ;;  %v2279_v29 = vld [vmem:[%s2627_s16 + $0x8] sm:$0xff]   ;;  %v2275_v30 = vld [vmem:[%s2627_s16 + $0x20] sm:$0xff]   ;;  %v2278_v32 = vld [vmem:[%s2627_s16 + $0x30] sm:$0xff]  }
 0x206   : > { %v2276_v31 = vld [vmem:[%s2627_s16 + $0x28] sm:$0xff]  }
 0x207   : > { %v928_v35 = vadd.f32 %v2052_v34, %v2787_v45  ;;  %v963_v36 = vmax.f32 %v925_v33, 0.0  ;;  %v2280_v33 = vld [vmem:[%s2627_s16 + $0x38] sm:$0xff]   ;;  %v2869_v34 = vand.u32 127, %v424_v44  ;;  %s362_s16 = sand.u32 1, %s2471_s10  }
 0x208   : > { %s1920_s26 = sshll.u32 %s362_s16, 8  ;;  %s3043_s12 = scalar_lea.sflag [#allocation3], %s362_s16 }
 0x209   : > { %v964_v37 = vmax.f32 %v928_v35, 0.0  ;;  %v2053_v38 = vpop.f32.mrb[20].mxu1  ;;  %v1966_v35 = vld [vmem:[%s3133_s6] ss:$0 sm:$0xff]  ;;  %vm1149_vm0 = vcmp.lt.s32.totalorder %v2869_v34, 7  ;;  %s2997_s27 = scalar_lea.vmem [#allocation2], %s1920_s26 }
 0x20a   : > { %v2054_v39 = vpop.f32.mrb[21].mxu1  ;;  %s1801_s23 = sshll.u32 %s2997_s27, 4  ;;  %s3036_s23 = int_to_ptr.vmem [resolvable:$true] %s1801_s23 }
 0x20b   : > { %v2055_v40 = vadd.f32 %v2054_v39, %v2053_v38  ;;  %v2056_v49 = vpop.f32.mrb[22].mxu1  ;;  %v975_v50 = vpack.c.bf16 %v964_v37, %v963_v36  ;;  %s2409_s13 = scalar_lea.vmem %s3036_s23, 4096  ;;  %p2416_p1 = scmp.lt.s32.totalorder %s3036_s23, %s2414_s20 }
 0x20c   : > { %v2057_v41 = vpop.f32.mrb[23].mxu1  ;;  %p2410_p12 = scmp.ne.s32.totalorder %s3036_s23, %s2409_s13  ;;  %p2417_p2 = scmp.lt.s32.totalorder %s2415_s24, %s2409_s13 }
 0x20d   : > { %v933_v42 = vadd.f32 %v2055_v40, %v2787_v45  ;;  %v2058_v43 = vadd.f32 %v2057_v41, %v2056_v49  ;;  %2111 = vmatprep.mubr.bf16.mxu0 %v975_v50 }
 0x20e   : > { %p2411_p13 = pnand %p2410_p12, %p2583_p4  ;;  %p2418_p3 = por %p2417_p2, %p2416_p1 }
 0x20f   : > { %v936_v46 = vadd.f32 %v2058_v43, %v2787_v45  ;;  %v965_v47 = vmax.f32 %v933_v42, 0.0 }
 0x210   : > { %p2412_p0 = pneg %p2411_p13 }
 0x211   : > { %v966_v48 = vmax.f32 %v936_v46, 0.0  ;;  %v2059_v51 = vpop.f32.mrb[24].mxu1 }
 0x212   : > { %v2060_v52 = vpop.f32.mrb[25].mxu1  ;;  %p2419_p5 = pnand %p2418_p3, %p2412_p0 }
 0x213   : > { %v2061_v53 = vadd.f32 %v2060_v52, %v2059_v51  ;;  %v2062_v54 = vpop.f32.mrb[26].mxu1  ;;  %v976_v55 = vpack.c.bf16 %v966_v48, %v965_v47 }
 0x214   : > { %v2063_v56 = vpop.f32.mrb[27].mxu1 }
 0x215   : > { %v941_v57 = vadd.f32 %v2061_v53, %v2787_v45  ;;  %v2064_v58 = vadd.f32 %v2063_v56, %v2062_v54  ;;  %2112 = vmatmul.mubr.bf16.gmra.mrb[40].mxu0 %v976_v55 }
 0x217   : > { %v944_v59 = vadd.f32 %v2064_v58, %v2787_v45  ;;  %v967_v60 = vmax.f32 %v941_v57, 0.0 }
 0x219   : > { %v968_v61 = vmax.f32 %v944_v59, 0.0  ;;  %v2065_v62 = vpop.f32.mrb[28].mxu1 }
 0x21a   : > { %v2066_v63 = vpop.f32.mrb[29].mxu1 }
 0x21b   : > { %v2067_v0 = vadd.f32 %v2066_v63, %v2065_v62  ;;  %v2068_v1 = vpop.f32.mrb[30].mxu1  ;;  %v977_v3 = vpack.c.bf16 %v968_v61, %v967_v60 }
 0x21c   : > { %v2069_v4 = vpop.f32.mrb[31].mxu1 }
 0x21d   : > { %v949_v5 = vadd.f32 %v2067_v0, %v2787_v45  ;;  %v2070_v6 = vadd.f32 %v2069_v4, %v2068_v1  ;;  %2115 = vmatprep.mubr.bf16.mxu0 %v977_v3 }
 0x21f   : > { %v952_v7 = vadd.f32 %v2070_v6, %v2787_v45  ;;  %v969_v8 = vmax.f32 %v949_v5, 0.0  ;;  %v2252_v45 = vld [vmem:[%s3134_s7 + $0x10] ss:$8 sps:$4 sm:$0xff]  }
 0x220   : > { %2128 = vmatpush1.bf16.msra.mxu1 %v2252_v45  ;;  %1505 = vmatpush1.bf16.msra.mxu0 %v2252_v45 }
 0x221   : > { %v970_v9 = vmax.f32 %v952_v7, 0.0  ;;  %2121 = vmatprep.subr.bf16.mxu1 %v2257_v15  ;;  %1506 = vmatprep.subr.bf16.mxu0 %v2257_v15 }
 0x223   : > { %v978_v10 = vpack.c.bf16 %v970_v9, %v969_v8 }
 0x224   : > { %2129 = vmatpush1.bf16.msra.mxu1 %v2255_v14  ;;  %1507 = vmatpush1.bf16.msra.mxu0 %v2255_v14 }
 0x225   : > { %2116 = vmatmul.mubr.bf16.gmra.mrb[44].mxu0 %v978_v10  ;;  %2122 = vmatprep.subr.bf16.mxu1 %v2260_v17 }
 0x226   : > { %1534 = vmatprep.mubr.bf16.mxu0 %v2489_v2  ;;  %1508 = vmatprep.subr.bf16.mxu0 %v2260_v17 }
 0x228   : > { %2130 = vmatpush1.bf16.msra.mxu1 %v2258_v16  ;;  %1509 = vmatpush1.bf16.msra.mxu0 %v2258_v16 }
 0x229   : > { %2123 = vmatprep.subr.bf16.mxu1 %v2263_v18  ;;  %1510 = vmatprep.subr.bf16.mxu0 %v2263_v18 }
 0x22c   : > { %2131 = vmatpush1.bf16.msra.mxu1 %v2261_v19  ;;  %1511 = vmatpush1.bf16.msra.mxu0 %v2261_v19 }
 0x22d   : > { %2124 = vmatprep.subr.bf16.mxu1 %v2266_v20  ;;  %1512 = vmatprep.subr.bf16.mxu0 %v2266_v20 }
 0x230   : > { %2132 = vmatpush1.bf16.msra.mxu1 %v2264_v21  ;;  %1513 = vmatpush1.bf16.msra.mxu0 %v2264_v21 }
 0x231   : > { %2125 = vmatprep.subr.bf16.mxu1 %v2269_v22  ;;  %1514 = vmatprep.subr.bf16.mxu0 %v2269_v22 }
 0x234   : > { %2133 = vmatpush1.bf16.msra.mxu1 %v2267_v23  ;;  %1515 = vmatpush1.bf16.msra.mxu0 %v2267_v23 }
 0x235   : > { %2126 = vmatprep.subr.bf16.mxu1 %v2272_v24  ;;  %1516 = vmatprep.subr.bf16.mxu0 %v2272_v24 }
 0x238   : > { %2134 = vmatpush1.bf16.msra.mxu1 %v2270_v25  ;;  %1517 = vmatpush1.bf16.msra.mxu0 %v2270_v25 }
 0x23b   : > { %1555 = vmatmul.mubr.bf16.vlgmr.msra.gmra.mrb[32].mxu1 %v2273_v26  ;;  %1535 = vmatmul.mubr.bf16.vlgmr.msra.gmra.mrb[48].mxu0 %v2277_v27 }
 0x23c   : > { %1564 = vmatprep.mubr.bf16.mxu1 %v2489_v2  ;;  %1544 = vmatprep.mubr.bf16.mxu0 %v2489_v2 }
 0x243   : > { %1565 = vmatmul.mubr.bf16.gmra.mrb[36].mxu1 %v2274_v28  ;;  %1545 = vmatmul.mubr.bf16.gmra.mrb[52].mxu0 %v2279_v29 }
 0x244   : > { %1574 = vmatprep.mubr.bf16.mxu1 %v2489_v2 }
 0x24b   : > { %1575 = vmatmul.mubr.bf16.gmra.mrb[40].mxu1 %v2275_v30 }
 0x24c   : > { %1584 = vmatprep.mubr.bf16.mxu1 %v2489_v2 }
 0x253   : > { %1585 = vmatmul.mubr.bf16.gmra.mrb[44].mxu1 %v2276_v31 }
 0x254   : > { %1594 = vmatprep.mubr.bf16.mxu1 %v2489_v2 }
 0x25b   : > { %1595 = vmatmul.mubr.bf16.gmra.mrb[48].mxu1 %v2278_v32 }
 0x25c   : > { %1604 = vmatprep.mubr.bf16.mxu1 %v2489_v2 }
 0x263   : > { %1605 = vmatmul.mubr.bf16.gmra.mrb[52].mxu1 %v2280_v33 }
 0x2c8   : > { %v2105_v36 = vpop.f32.mrb[32].mxu0 }
 0x2c9   : > { %v1093_v37 = vadd.f32 %v2105_v36, %v1966_v35  ;;  %v1084_v38 = vpop.f32.mrb[33].mxu0 }
 0x2ca   : > { %v1085_v39 = vadd.f32 %v1966_v35, %v1084_v38  ;;  %v2106_v40 = vpop.f32.mrb[34].mxu0 }
 0x2cb   : > { %v1096_v49 = vadd.f32 %v2106_v40, %v1966_v35  ;;  %v1087_v50 = vpop.f32.mrb[35].mxu0  ;;  %v1152_v2 = vsel %vm1149_vm0, %v1093_v37, -1e+30 }
 0x2cc   : > { %v1088_v41 = vadd.f32 %v1966_v35, %v1087_v50  ;;  %1170 = vmax.xlane.f32.xlu1 %v1152_v2  ;;  %v1150_v44 = vsel %vm1149_vm0, %v1085_v39, -1e+30 }
 0x2cd   : > { %1166 = vmax.xlane.f32.xlu0 %v1150_v44  ;;  %v1153_v42 = vsel %vm1149_vm0, %v1096_v49, -1e+30 }
 0x2ce   : > { %v1151_v43 = vsel %vm1149_vm0, %v1088_v41, -1e+30 }
 0x2d0   : > { %1172 = vmax.xlane.f32.xlu1 %v1153_v42 }
 0x2d1   : > { %1168 = vmax.xlane.f32.xlu0 %v1151_v43 }
 0x2d8   : > { %v2109_v46 = vpop.f32.mrb[36].mxu0 }
 0x2d9   : > { %v1109_v47 = vadd.f32 %v2109_v46, %v1966_v35  ;;  %v1100_v48 = vpop.f32.mrb[37].mxu0 }
 0x2da   : > { %v2110_v51 = vpop.f32.mrb[38].mxu0  ;;  %v1101_v52 = vadd.f32 %v1966_v35, %v1100_v48 }
 0x2db   : > { %v1112_v53 = vadd.f32 %v2110_v51, %v1966_v35  ;;  %v1103_v54 = vpop.f32.mrb[39].mxu0  ;;  %v1156_v55 = vsel %vm1149_vm0, %v1109_v47, -1e+30 }
 0x2dc   : > { %1178 = vmax.xlane.f32.xlu0 %v1156_v55  ;;  %v1104_v56 = vadd.f32 %v1966_v35, %v1103_v54  ;;  %v2889_v58 = vsel %vm1149_vm0, %v1101_v52, -1e+30 }
 0x2dd   : > { %v1157_v57 = vsel %vm1149_vm0, %v1112_v53, -1e+30 }
 0x2de   : > { %1180 = vmax.xlane.f32.xlu1 %v1157_v57  ;;  %v2894_v59 = vsel %vm1149_vm0, %v1104_v56, -1e+30 }
 0x2e0   : > { %1174 = vmax.xlane.f32.xlu0 %v2889_v58 }
 0x2e2   : > { %1176 = vmax.xlane.f32.xlu1 %v2894_v59 }
 0x2e8   : > { %v2113_v60 = vpop.f32.mrb[40].mxu0 }
 0x2e9   : > { %v1125_v61 = vadd.f32 %v2113_v60, %v1966_v35  ;;  %v1116_v62 = vpop.f32.mrb[41].mxu0 }
 0x2ea   : > { %v2114_v63 = vpop.f32.mrb[42].mxu0  ;;  %v1117_v0 = vadd.f32 %v1966_v35, %v1116_v62 }
 0x2eb   : > { %v1128_v1 = vadd.f32 %v2114_v63, %v1966_v35  ;;  %v1119_v3 = vpop.f32.mrb[43].mxu0  ;;  %v2899_v4 = vsel %vm1149_vm0, %v1125_v61, -1e+30 }
 0x2ec   : > { %1186 = vmax.xlane.f32.xlu0 %v2899_v4  ;;  %v1120_v5 = vadd.f32 %v1966_v35, %v1119_v3  ;;  %v2909_v7 = vsel %vm1149_vm0, %v1117_v0, -1e+30 }
 0x2ed   : > { %v2904_v6 = vsel %vm1149_vm0, %v1128_v1, -1e+30 }
 0x2ee   : > { %1188 = vmax.xlane.f32.xlu1 %v2904_v6  ;;  %v2914_v8 = vsel %vm1149_vm0, %v1120_v5, -1e+30 }
 0x2f0   : > { %1182 = vmax.xlane.f32.xlu0 %v2909_v7 }
 0x2f2   : > { %1184 = vmax.xlane.f32.xlu1 %v2914_v8 }
 0x2f8   : > { %v2117_v9 = vpop.f32.mrb[44].mxu0 }
 0x2f9   : > { %v1132_v10 = vpop.f32.mrb[45].mxu0  ;;  %v1141_v13 = vadd.f32 %v2117_v9, %v1966_v35 }
 0x2fa   : > { %v1133_v11 = vadd.f32 %v1966_v35, %v1132_v10  ;;  %v2118_v12 = vpop.f32.mrb[46].mxu0 }
 0x2fb   : > { %v1135_v45 = vpop.f32.mrb[47].mxu0  ;;  %v1144_v16 = vadd.f32 %v2118_v12, %v1966_v35  ;;  %v2929_v18 = vsel %vm1149_vm0, %v1141_v13, -1e+30 }
 0x2fc   : > { %v1136_v14 = vadd.f32 %v1966_v35, %v1135_v45  ;;  %v2919_v15 = vsel %vm1149_vm0, %v1133_v11, -1e+30 }
 0x2fd   : > { %1190 = vmax.xlane.f32.xlu0 %v2919_v15  ;;  %v2934_v19 = vsel %vm1149_vm0, %v1144_v16, -1e+30 }
 0x2fe   : > { %v2924_v17 = vsel %vm1149_vm0, %v1136_v14, -1e+30 }
 0x2ff   : > { %1192 = vmax.xlane.f32.xlu1 %v2924_v17 }
 0x301   : > { %1194 = vmax.xlane.f32.xlu0 %v2929_v18 }
 0x303   : > { %1196 = vmax.xlane.f32.xlu1 %v2934_v19 }
 0x359   : > { %v1171_v20 = vpop.xlane.xlu1 %1170 }
 0x35a   : > { %v2937_v21 = vsub.f32 %v1152_v2, %v1171_v20  ;;  %v1167_v22 = vpop.xlane.xlu0 %1166 }
 0x35b   : > { %v2939_v23 = vsub.f32 %v1150_v44, %v1167_v22 }
 0x35c   : > { %v1218_v24 = vmul.f32 1.442695, %v2937_v21 }
 0x35d   : > { %v1214_v25 = vmul.f32 1.442695, %v2939_v23  ;;  %v1173_v26 = vpop.xlane.xlu1 %1172 }
 0x35e   : > { %2281 = vpow2.f32 %v1218_v24  ;;  %v2943_v27 = vsub.f32 %v1153_v42, %v1173_v26  ;;  %v1169_v28 = vpop.xlane.xlu0 %1168 }
 0x35f   : > { %v2945_v29 = vsub.f32 %v1151_v43, %v1169_v28  ;;  %2283 = vpow2.f32 %v1214_v25 }
 0x360   : > { %v1220_v30 = vmul.f32 1.442695, %v2943_v27 }
 0x361   : > { %v1216_v31 = vmul.f32 1.442695, %v2945_v29 }
 0x362   : > { %2285 = vpow2.f32 %v1220_v30 }
 0x363   : > { %2287 = vpow2.f32 %v1216_v31 }
 0x368   : > { %v2282_v32 = vpop.eup %2281 }
 0x369   : > { %1250 = vadd.xlane.f32.xlu0 %v2282_v32  ;;  %v1179_v33 = vpop.xlane.xlu0 %1178  ;;  %v2284_v35 = vpop.eup %2283 }
 0x36a   : > { %v2949_v34 = vsub.f32 %v1156_v55, %v1179_v33 }
 0x36b   : > { %v1181_v36 = vpop.xlane.xlu1 %1180 }
 0x36c   : > { %v2286_v37 = vpop.eup %2285  ;;  %v1226_v38 = vmul.f32 1.442695, %v2949_v34  ;;  %v2952_v39 = vsub.f32 %v1157_v57, %v1181_v36  ;;  %v1556_v57 = vpop.f32.mrb[32].mxu1 }
 0x36d   : > { %1252 = vadd.xlane.f32.xlu1 %v2286_v37  ;;  %1246 = vadd.xlane.f32.xlu0 %v2284_v35  ;;  %v1175_v40 = vpop.xlane.xlu0 %1174  ;;  %v2288_v41 = vpop.eup %2287 }
 0x36e   : > { %2289 = vpow2.f32 %v1226_v38  ;;  %v1228_v49 = vmul.f32 1.442695, %v2952_v39  ;;  %v2956_v50 = vsub.f32 %v2889_v58, %v1175_v40  ;;  %v1558_v61 = vpop.f32.mrb[33].mxu1 }
 0x36f   : > { %v1177_v2 = vpop.xlane.xlu1 %1176  ;;  %v1560_v63 = vpop.f32.mrb[34].mxu1  ;;  %v1624_v5 = vmul.f32 0.5, %v1558_v61 }
 0x370   : > { %2291 = vpow2.f32 %v1228_v49  ;;  %v1222_v44 = vmul.f32 1.442695, %v2956_v50  ;;  %v2960_v42 = vsub.f32 %v2894_v59, %v1177_v2  ;;  %v1562_v3 = vpop.f32.mrb[35].mxu1  ;;  %v1625_v9 = vmul.f32 0.5, %v1560_v63 }
 0x371   : > { %1248 = vadd.xlane.f32.xlu1 %v2288_v41  ;;  %v1566_v10 = vpop.f32.mrb[36].mxu1 }
 0x372   : > { %2293 = vpow2.f32 %v1222_v44  ;;  %v1224_v43 = vmul.f32 1.442695, %v2960_v42  ;;  %v1568_v11 = vpop.f32.mrb[37].mxu1  ;;  %v1627_v13 = vmul.f32 0.5, %v1566_v10 }
 0x373   : > { %v1570_v12 = vpop.f32.mrb[38].mxu1  ;;  %v1628_v14 = vmul.f32 0.5, %v1568_v11 }
 0x374   : > { %2295 = vpow2.f32 %v1224_v43  ;;  %v1572_v45 = vpop.f32.mrb[39].mxu1  ;;  %v1629_v16 = vmul.f32 0.5, %v1570_v12 }
 0x375   : > { %v1630_v24 = vmul.f32 0.5, %v1572_v45  ;;  %v1576_v33 = vpop.f32.mrb[40].mxu1 }
 0x376   : > { %v1578_v37 = vpop.f32.mrb[41].mxu1 }
 0x377   : > { %v1580_v2 = vpop.f32.mrb[42].mxu1 }
 0x378   : > { %v2290_v46 = vpop.eup %2289  ;;  %v1633_v61 = vmul.f32 0.5, %v1580_v2 }
 0x379   : > { %1258 = vadd.xlane.f32.xlu0 %v2290_v46  ;;  %v1187_v47 = vpop.xlane.xlu0 %1186  ;;  %v1582_v46 = vpop.f32.mrb[43].mxu1 }
 0x37a   : > { %v2292_v48 = vpop.eup %2291  ;;  %v2964_v51 = vsub.f32 %v2899_v4, %v1187_v47  ;;  %v1623_v4 = vmul.f32 0.5, %v1556_v57  ;;  %v1632_v57 = vmul.f32 0.5, %v1578_v37 }
 0x37b   : > { %v1189_v52 = vpop.xlane.xlu1 %1188  ;;  %1260 = vadd.xlane.f32.xlu1 %v2292_v48 }
 0x37c   : > { %v2294_v53 = vpop.eup %2293  ;;  %v1234_v54 = vmul.f32 1.442695, %v2964_v51  ;;  %v2968_v55 = vsub.f32 %v2904_v6, %v1189_v52 }
 0x37d   : > { %1254 = vadd.xlane.f32.xlu0 %v2294_v53  ;;  %v1183_v56 = vpop.xlane.xlu0 %1182 }
 0x37e   : > { %v2296_v58 = vpop.eup %2295  ;;  %2297 = vpow2.f32 %v1234_v54  ;;  %v1236_v59 = vmul.f32 1.442695, %v2968_v55  ;;  %v2972_v60 = vsub.f32 %v2909_v7, %v1183_v56  ;;  %v1626_v7 = vmul.f32 0.5, %v1562_v3 }
 0x37f   : > { %v1185_v62 = vpop.xlane.xlu1 %1184  ;;  %1256 = vadd.xlane.f32.xlu1 %v2296_v58  ;;  %v1631_v56 = vmul.f32 0.5, %v1576_v33  ;;  %v1536_v33 = vpop.f32.mrb[48].mxu0 }
 0x380   : > { %2299 = vpow2.f32 %v1236_v59  ;;  %v1230_v0 = vmul.f32 1.442695, %v2972_v60  ;;  %v2976_v1 = vsub.f32 %v2914_v8, %v1185_v62  ;;  %v1634_v62 = vmul.f32 0.5, %v1582_v46 }
 0x382   : > { %2301 = vpow2.f32 %v1230_v0  ;;  %v1232_v6 = vmul.f32 1.442695, %v2976_v1  ;;  %v1586_v0 = vpop.f32.mrb[44].mxu1 }
 0x383   : > { %2303 = vtanh.f32 %v1623_v4 }
 0x384   : > { %2305 = vpow2.f32 %v1232_v6 }
 0x385   : > { %2307 = vtanh.f32 %v1624_v5  ;;  %v1588_v5 = vpop.f32.mrb[45].mxu1 }
 0x386   : > { %2309 = vtanh.f32 %v1625_v9 }
 0x387   : > { %2311 = vtanh.f32 %v1626_v7  ;;  %v1590_v7 = vpop.f32.mrb[46].mxu1 }
 0x388   : > { %v2298_v8 = vpop.eup %2297  ;;  %2313 = vtanh.f32 %v1627_v13 }
 0x389   : > { %1266 = vadd.xlane.f32.xlu0 %v2298_v8  ;;  %2315 = vtanh.f32 %v1628_v14  ;;  %v1592_v8 = vpop.f32.mrb[47].mxu1 }
 0x38a   : > { %v2300_v20 = vpop.eup %2299  ;;  %v1191_v22 = vpop.xlane.xlu0 %1190  ;;  %2317 = vtanh.f32 %v1629_v16  ;;  %v1635_v16 = vmul.f32 0.5, %v1586_v0 }
 0x38b   : > { %v2980_v25 = vsub.f32 %v2919_v15, %v1191_v22  ;;  %1268 = vadd.xlane.f32.xlu1 %v2300_v20  ;;  %2319 = vtanh.f32 %v1630_v24  ;;  %v1636_v20 = vmul.f32 0.5, %v1588_v5  ;;  %v1637_v24 = vmul.f32 0.5, %v1590_v7 }
 0x38c   : > { %v2302_v26 = vpop.eup %2301  ;;  %v1193_v28 = vpop.xlane.xlu1 %1192 }
 0x38d   : > { %v2304_v30 = vpop.eup %2303  ;;  %v1238_v31 = vmul.f32 1.442695, %v2980_v25  ;;  %v2987_v32 = vsub.f32 %v2924_v17, %v1193_v28  ;;  %1262 = vadd.xlane.f32.xlu0 %v2302_v26  ;;  %v1638_v26 = vmul.f32 0.5, %v1592_v8 }
 0x38e   : > { %v2306_v35 = vpop.eup %2305  ;;  %v1195_v15 = vpop.xlane.xlu0 %1194  ;;  %v1687_v36 = vmul.f32 0.5, %v2304_v30 }
 0x38f   : > { %v2308_v38 = vpop.eup %2307  ;;  %2321 = vpow2.f32 %v1238_v31  ;;  %v1240_v40 = vmul.f32 1.442695, %v2987_v32  ;;  %v2991_v49 = vsub.f32 %v2929_v18, %v1195_v15  ;;  %1264 = vadd.xlane.f32.xlu1 %v2306_v35  ;;  %v1596_v35 = vpop.f32.mrb[48].mxu1 }
 0x390   : > { %v2310_v41 = vpop.eup %2309  ;;  %v1197_v17 = vpop.xlane.xlu1 %1196  ;;  %v1719_v44 = vadd.f32 0.5, %v1687_v36  ;;  %v1688_v43 = vmul.f32 0.5, %v2308_v38 }
 0x391   : > { %v2312_v47 = vpop.eup %2311  ;;  %2323 = vpow2.f32 %v1240_v40  ;;  %v1242_v48 = vmul.f32 1.442695, %v2991_v49  ;;  %v2995_v52 = vsub.f32 %v2934_v19, %v1197_v17  ;;  %v1689_v53 = vmul.f32 0.5, %v2310_v41  ;;  %v1538_v36 = vpop.f32.mrb[49].mxu0 }
 0x392   : > { %1751 = vst [vmem:[%s2997_s27 + $0x40] sm:$0xff] %v1719_v44  ;;  %v1720_v18 = vadd.f32 0.5, %v1688_v43  ;;  %v1690_v54 = vmul.f32 0.5, %v2312_v47  ;;  %v2314_v63 = vpop.eup %2313  ;;  %v1598_v37 = vpop.f32.mrb[49].mxu1 }
 0x393   : > { %2325 = vpow2.f32 %v1242_v48  ;;  %v1244_v58 = vmul.f32 1.442695, %v2995_v52  ;;  %v1721_v59 = vadd.f32 0.5, %v1689_v53  ;;  %v2316_v3 = vpop.eup %2315  ;;  %v1691_v4 = vmul.f32 0.5, %v2314_v63  ;;  %v1540_v2 = vpop.f32.mrb[50].mxu0 }
 0x394   : > { %1752 = vst [vmem:[%s2997_s27 + $0x48] sm:$0xff] %v1720_v18  ;;  %v1722_v19 = vadd.f32 0.5, %v1690_v54  ;;  %2327 = vtanh.f32 %v1631_v56  ;;  %v2318_v6 = vpop.eup %2317  ;;  %v1692_v9 = vmul.f32 0.5, %v2316_v3  ;;  %v1600_v41 = vpop.f32.mrb[50].mxu1  ;;  %v1615_v53 = vmul.f32 0.5, %v1536_v33 }
 0x395   : > { %2329 = vpow2.f32 %v1244_v58  ;;  %1753 = vst [vmem:[%s2997_s27 + $0x50] sm:$0xff] %v1721_v59  ;;  %v2320_v10 = vpop.eup %2319  ;;  %v1723_v11 = vadd.f32 0.5, %v1691_v4  ;;  %v1693_v12 = vmul.f32 0.5, %v2318_v6  ;;  %v1542_v44 = vpop.f32.mrb[51].mxu0  ;;  %v1639_v18 = vmul.f32 0.5, %v1596_v35 }
 0x396   : > { %1754 = vst [vmem:[%s2997_s27 + $0x58] sm:$0xff] %v1722_v19  ;;  %2331 = vtanh.f32 %v1632_v57  ;;  %v1724_v13 = vadd.f32 0.5, %v1692_v9  ;;  %v1694_v14 = vmul.f32 0.5, %v2320_v10  ;;  %v1602_v43 = vpop.f32.mrb[51].mxu1  ;;  %v1616_v57 = vmul.f32 0.5, %v1538_v36  ;;  %v1546_v5 = vpop.f32.mrb[52].mxu0 }
 0x397   : > { %2333 = vtanh.f32 %v1633_v61  ;;  %1755 = vst [vmem:[%s2997_s27 + $0x60] sm:$0xff] %v1723_v11  ;;  %v1725_v22 = vadd.f32 0.5, %v1693_v12  ;;  %v1640_v58 = vmul.f32 0.5, %v1598_v37  ;;  %v1617_v19 = vmul.f32 0.5, %v1540_v2  ;;  %v1606_v6 = vpop.f32.mrb[52].mxu1  ;;  %v1548_v11 = vpop.f32.mrb[53].mxu0 }
 0x398   : > { %2335 = vtanh.f32 %v1634_v62  ;;  %1756 = vst [vmem:[%s2997_s27 + $0x68] sm:$0xff] %v1724_v13  ;;  %v1726_v30 = vadd.f32 0.5, %v1694_v14  ;;  %v1641_v63 = vmul.f32 0.5, %v1600_v41  ;;  %v1618_v4 = vmul.f32 0.5, %v1542_v44  ;;  %v1608_v12 = vpop.f32.mrb[53].mxu1  ;;  %v1550_v13 = vpop.f32.mrb[54].mxu0 }
 0x399   : > { %v2322_v45 = vpop.eup %2321  ;;  %2337 = vtanh.f32 %v1635_v16  ;;  %1757 = vst [vmem:[%s2997_s27 + $0x70] sm:$0xff] %v1725_v22  ;;  %v1642_v10 = vmul.f32 0.5, %v1602_v43  ;;  %v1610_v14 = vpop.f32.mrb[54].mxu1  ;;  %v1643_v35 = vmul.f32 0.5, %v1606_v6  ;;  %v1644_v37 = vmul.f32 0.5, %v1608_v12 }
 0x39a   : > { %1270 = vadd.xlane.f32.xlu0 %v2322_v45  ;;  %2339 = vtanh.f32 %v1636_v20  ;;  %1758 = vst [vmem:[%s2997_s27 + $0x78] sm:$0xff] %v1726_v30 }
 0x39b   : > { %v2324_v28 = vpop.eup %2323  ;;  %2341 = vtanh.f32 %v1637_v24  ;;  %v1552_v24 = vpop.f32.mrb[55].mxu0 }
 0x39c   : > { %1272 = vadd.xlane.f32.xlu1 %v2324_v28  ;;  %2343 = vtanh.f32 %v1638_v26  ;;  %v1612_v26 = vpop.f32.mrb[55].mxu1  ;;  %v1622_v41 = vmul.f32 0.5, %v1552_v24 }
 0x39d   : > { %v2326_v31 = vpop.eup %2325  ;;  %2345 = vtanh.f32 %v1615_v53  ;;  %v1646_v43 = vmul.f32 0.5, %v1612_v26 }
 0x39e   : > { %v2328_v15 = vpop.eup %2327  ;;  %1274 = vadd.xlane.f32.xlu0 %v2326_v31  ;;  %2347 = vtanh.f32 %v1639_v18  ;;  %v1619_v31 = vmul.f32 0.5, %v1546_v5 }
 0x39f   : > { %v2330_v38 = vpop.eup %2329  ;;  %v1695_v40 = vmul.f32 0.5, %v2328_v15  ;;  %2349 = vtanh.f32 %v1616_v57  ;;  %v1620_v15 = vmul.f32 0.5, %v1548_v11 }
 0x3a0   : > { %v2332_v17 = vpop.eup %2331  ;;  %1276 = vadd.xlane.f32.xlu1 %v2330_v38  ;;  %2351 = vtanh.f32 %v1640_v58  ;;  %v1621_v38 = vmul.f32 0.5, %v1550_v13 }
 0x3a1   : > { %v2334_v46 = vpop.eup %2333  ;;  %v1727_v47 = vadd.f32 0.5, %v1695_v40  ;;  %v1696_v48 = vmul.f32 0.5, %v2332_v17  ;;  %2353 = vtanh.f32 %v1617_v19  ;;  %v1645_v40 = vmul.f32 0.5, %v1610_v14 }
 0x3a2   : > { %v2336_v54 = vpop.eup %2335  ;;  %v1697_v56 = vmul.f32 0.5, %v2334_v46  ;;  %2355 = vtanh.f32 %v1641_v63 }
 0x3a3   : > { %1759 = vst [vmem:[%s2997_s27 + $0x80] sm:$0xff] %v1727_v47  ;;  %v1728_v59 = vadd.f32 0.5, %v1696_v48  ;;  %v1698_v61 = vmul.f32 0.5, %v2336_v54  ;;  %v2338_v0 = vpop.eup %2337  ;;  %2357 = vtanh.f32 %v1618_v4 }
 0x3a4   : > { %v1729_v62 = vadd.f32 0.5, %v1697_v56  ;;  %v2340_v9 = vpop.eup %2339  ;;  %v1699_v7 = vmul.f32 0.5, %v2338_v0  ;;  %2359 = vtanh.f32 %v1642_v10 }
 0x3a5   : > { %1760 = vst [vmem:[%s2997_s27 + $0x88] sm:$0xff] %v1728_v59  ;;  %v1730_v3 = vadd.f32 0.5, %v1698_v61  ;;  %v2342_v8 = vpop.eup %2341  ;;  %v1700_v45 = vmul.f32 0.5, %v2340_v9  ;;  %2361 = vtanh.f32 %v1619_v31 }
 0x3a6   : > { %1761 = vst [vmem:[%s2997_s27 + $0x90] sm:$0xff] %v1729_v62  ;;  %v2344_v16 = vpop.eup %2343  ;;  %v1731_v20 = vadd.f32 0.5, %v1699_v7  ;;  %v1701_v22 = vmul.f32 0.5, %v2342_v8  ;;  %2363 = vtanh.f32 %v1643_v35 }
 0x3a7   : > { %1762 = vst [vmem:[%s2997_s27 + $0x98] sm:$0xff] %v1730_v3  ;;  %v1732_v28 = vadd.f32 0.5, %v1700_v45  ;;  %v1702_v30 = vmul.f32 0.5, %v2344_v16  ;;  %v2346_v2 = vpop.eup %2345  ;;  %2365 = vtanh.f32 %v1620_v15 }
 0x3a8   : > { %1763 = vst [vmem:[%s2997_s27 + $0xa0] sm:$0xff] %v1731_v20  ;;  %v1733_v33 = vadd.f32 0.5, %v1701_v22  ;;  %v2348_v17 = vpop.eup %2347  ;;  %v1679_v44 = vmul.f32 0.5, %v2346_v2  ;;  %2367 = vtanh.f32 %v1644_v37 }
 0x3a9   : > { %1764 = vst [vmem:[%s2997_s27 + $0xa8] sm:$0xff] %v1732_v28  ;;  %v1734_v36 = vadd.f32 0.5, %v1702_v30  ;;  %v2350_v46 = vpop.eup %2349  ;;  %v1703_v47 = vmul.f32 0.5, %v2348_v17  ;;  %2369 = vtanh.f32 %v1621_v38 }
 0x3aa   : > { %1765 = vst [vmem:[%s2997_s27 + $0xb0] sm:$0xff] %v1733_v33  ;;  %v2352_v48 = vpop.eup %2351  ;;  %v1711_v53 = vadd.f32 0.5, %v1679_v44  ;;  %v1680_v18 = vmul.f32 0.5, %v2350_v46  ;;  %2371 = vtanh.f32 %v1645_v40 }
 0x3ab   : > { %1766 = vst [vmem:[%s2997_s27 + $0xb8] sm:$0xff] %v1734_v36  ;;  %v2354_v54 = vpop.eup %2353  ;;  %v1735_v56 = vadd.f32 0.5, %v1703_v47  ;;  %v1704_v57 = vmul.f32 0.5, %v2352_v48  ;;  %2373 = vtanh.f32 %v1622_v41 }
 0x3ac   : > { %v2356_v58 = vpop.eup %2355  ;;  %1743 = vst [vmem:[%s2997_s27] sm:$0xff] %v1711_v53  ;;  %v1712_v59 = vadd.f32 0.5, %v1680_v18  ;;  %v1681_v61 = vmul.f32 0.5, %v2354_v54  ;;  %2375 = vtanh.f32 %v1646_v43 }
 0x3ad   : > { %v2358_v19 = vpop.eup %2357  ;;  %1767 = vst [vmem:[%s2997_s27 + $0xc0] sm:$0xff] %v1735_v56  ;;  %v1736_v62 = vadd.f32 0.5, %v1704_v57  ;;  %v1705_v63 = vmul.f32 0.5, %v2356_v58 }
 0x3ae   : > { %v2360_v0 = vpop.eup %2359  ;;  %1744 = vst [vmem:[%s2997_s27 + $0x8] sm:$0xff] %v1712_v59  ;;  %v1713_v3 = vadd.f32 0.5, %v1681_v61  ;;  %v1682_v4 = vmul.f32 0.5, %v2358_v19 }
 0x3af   : > { %v2362_v5 = vpop.eup %2361  ;;  %1768 = vst [vmem:[%s2997_s27 + $0xc8] sm:$0xff] %v1736_v62  ;;  %v1737_v6 = vadd.f32 0.5, %v1705_v63  ;;  %v1706_v9 = vmul.f32 0.5, %v2360_v0 }
 0x3b0   : > { %v2364_v7 = vpop.eup %2363  ;;  %1745 = vst [vmem:[%s2997_s27 + $0x10] sm:$0xff] %v1713_v3  ;;  %v1714_v10 = vadd.f32 0.5, %v1682_v4  ;;  %v1683_v11 = vmul.f32 0.5, %v2362_v5 }
 0x3b1   : > { %v2366_v12 = vpop.eup %2365  ;;  %1769 = vst [vmem:[%s2997_s27 + $0xd0] sm:$0xff] %v1737_v6  ;;  %v1738_v8 = vadd.f32 0.5, %v1706_v9  ;;  %v1707_v45 = vmul.f32 0.5, %v2364_v7 }
 0x3b2   : > { %v2368_v13 = vpop.eup %2367  ;;  %1746 = vst [vmem:[%s2997_s27 + $0x18] sm:$0xff] %v1714_v10  ;;  %v1715_v14 = vadd.f32 0.5, %v1683_v11  ;;  %v1684_v16 = vmul.f32 0.5, %v2366_v12 }
 0x3b3   : > { %v2370_v20 = vpop.eup %2369  ;;  %1770 = vst [vmem:[%s2997_s27 + $0xd8] sm:$0xff] %v1738_v8  ;;  %v1739_v22 = vadd.f32 0.5, %v1707_v45  ;;  %v1708_v24 = vmul.f32 0.5, %v2368_v13 }
 0x3b4   : > { %v2372_v26 = vpop.eup %2371  ;;  %1747 = vst [vmem:[%s2997_s27 + $0x20] sm:$0xff] %v1715_v14  ;;  %v1716_v28 = vadd.f32 0.5, %v1684_v16  ;;  %v1685_v30 = vmul.f32 0.5, %v2370_v20 }
 0x3b5   : > { %v2374_v31 = vpop.eup %2373  ;;  %1771 = vst [vmem:[%s2997_s27 + $0xe0] sm:$0xff] %v1739_v22  ;;  %v1740_v33 = vadd.f32 0.5, %v1708_v24  ;;  %v1709_v35 = vmul.f32 0.5, %v2372_v26 }
 0x3b6   : > { %v2376_v15 = vpop.eup %2375  ;;  %1748 = vst [vmem:[%s2997_s27 + $0x28] sm:$0xff] %v1716_v28  ;;  %v1717_v36 = vadd.f32 0.5, %v1685_v30  ;;  %v1686_v37 = vmul.f32 0.5, %v2374_v31 }
 0x3b7   : > { %1772 = vst [vmem:[%s2997_s27 + $0xe8] sm:$0xff] %v1740_v33  ;;  %v1741_v38 = vadd.f32 0.5, %v1709_v35  ;;  %v1710_v40 = vmul.f32 0.5, %v2376_v15 }
 0x3b8   : > { %1749 = vst [vmem:[%s2997_s27 + $0x30] sm:$0xff] %v1717_v36  ;;  %v1718_v2 = vadd.f32 0.5, %v1686_v37 }
 0x3b9   : > { %1773 = vst [vmem:[%s2997_s27 + $0xf0] sm:$0xff] %v1741_v38  ;;  %v1742_v41 = vadd.f32 0.5, %v1710_v40 }
 0x3ba   : > { %1750 = vst [vmem:[%s2997_s27 + $0x38] sm:$0xff] %v1718_v2 }
 0x3bb   : > { %1774 = vst [vmem:[%s2997_s27 + $0xf8] sm:$0xff] %v1742_v41 }
 0x3bc   : > { %2422 = shalt.err (!%p2419_p5)
}
 0x3bd   : > { %s2423_s16 = scalar_lea.hbm %s3034_s15, 4096  ;;  %s2427_s28 = scalar_lea.hbm %s3136_s9, 8192 }
 0x3be   : > { %p2424_p6 = scmp.ne.s32.totalorder %s3034_s15, %s2423_s16  ;;  %p2428_p10 = scmp.lt.u32.totalorder %s3034_s15, %s3136_s9 }
 0x3bf   : > { %p2429_p11 = scmp.lt.u32.totalorder %s2427_s28, %s2423_s16  ;;  %p2431_p13 = scmp.lt.u32.totalorder %s2423_s16, %s3034_s15 }
 0x3c0   : > { %p2425_p7 = pnand %p2424_p6, %p2583_p4 }
 0x3c1   : > { %p2430_p12 = por %p2429_p11, %p2428_p10 }
 0x3c2   : > { %p2426_p9 = pneg %p2425_p7 }
 0x3c3   : > { %p2432_p0 = por %p2431_p13, %p2430_p12 }
 0x3c5   : > { %p2433_p1 = pnand %p2432_p0, %p2426_p9 }
 0x3c7   : > { %2436 = shalt.err (!%p2433_p1)
}
 0x3c8   : > { %s2491_s13 = smov 256   ;;  %s2492_s18 = smov 16  }
 0x3c9   : > { %2135 = dma.vmem_to_hbm [thread:$0]  (%p2583_p4), %s3036_s23, 4096, %s3034_s15, %s3043_s12, %s2491_s13, %s2491_s13, %s2492_s18  }
 0x3ca   : > { %s1924_s20 = sshll.u32 %s3151_s25, 3 }
 0x3cb   : > { %s3071_s26 = scalar_lea.vmem %s3135_s8, %s1924_s20 }
 0x3f6   : > { %v1251_v17 = vpop.xlane.xlu0 %1250 }
 0x3f7   : > { %2377 = vlog2.f32 %v1251_v17 }
 0x3fa   : > { %v1253_v44 = vpop.xlane.xlu1 %1252  ;;  %v1247_v43 = vpop.xlane.xlu0 %1246 }
 0x3fb   : > { %2379 = vlog2.f32 %v1253_v44 }
 0x3fc   : > { %2381 = vlog2.f32 %v1247_v43 }
 0x3fe   : > { %v1249_v46 = vpop.xlane.xlu1 %1248 }
 0x3ff   : > { %2383 = vlog2.f32 %v1249_v46 }
 0x401   : > { %v2378_v47 = vpop.eup %2377 }
 0x402   : > { %v1283_v48 = vmul.f32 0.6931472, %v2378_v47 }
 0x404   : > { %v1312_v53 = vsub.f32 %v2937_v21, %v1283_v48 }
 0x405   : > { %v2380_v18 = vpop.eup %2379 }
 0x406   : > { %v2382_v54 = vpop.eup %2381  ;;  %1328 = vst [vmem:[%s3071_s26 + $0x10] sm:$0xff] %v1312_v53  ;;  %v1285_v56 = vmul.f32 0.6931472, %v2380_v18  ;;  %v1259_v57 = vpop.xlane.xlu0 %1258 }
 0x407   : > { %v1279_v58 = vmul.f32 0.6931472, %v2382_v54  ;;  %2385 = vlog2.f32 %v1259_v57 }
 0x408   : > { %v1313_v59 = vsub.f32 %v2943_v27, %v1285_v56  ;;  %v1261_v61 = vpop.xlane.xlu1 %1260 }
 0x409   : > { %v2384_v19 = vpop.eup %2383  ;;  %v1310_v62 = vsub.f32 %v2939_v23, %v1279_v58  ;;  %2387 = vlog2.f32 %v1261_v61 }
 0x40a   : > { %1329 = vst [vmem:[%s3071_s26 + $0x18] sm:$0xff] %v1313_v59  ;;  %v1281_v63 = vmul.f32 0.6931472, %v2384_v19  ;;  %v1255_v21 = vpop.xlane.xlu0 %1254 }
 0x40b   : > { %1326 = vst [vmem:[%s3071_s26] sm:$0xff] %v1310_v62  ;;  %2389 = vlog2.f32 %v1255_v21 }
 0x40c   : > { %v1311_v0 = vsub.f32 %v2945_v29, %v1281_v63  ;;  %v1257_v3 = vpop.xlane.xlu1 %1256 }
 0x40d   : > { %2391 = vlog2.f32 %v1257_v3 }
 0x40e   : > { %1327 = vst [vmem:[%s3071_s26 + $0x8] sm:$0xff] %v1311_v0 }
 0x411   : > { %v2386_v4 = vpop.eup %2385 }
 0x412   : > { %v1291_v5 = vmul.f32 0.6931472, %v2386_v4 }
 0x413   : > { %v2388_v27 = vpop.eup %2387 }
 0x414   : > { %v1316_v6 = vsub.f32 %v2949_v34, %v1291_v5  ;;  %v1293_v23 = vmul.f32 0.6931472, %v2388_v27 }
 0x415   : > { %v2390_v9 = vpop.eup %2389 }
 0x416   : > { %1332 = vst [vmem:[%s3071_s26 + $0x30] sm:$0xff] %v1316_v6  ;;  %v1317_v7 = vsub.f32 %v2952_v39, %v1293_v23  ;;  %v1287_v10 = vmul.f32 0.6931472, %v2390_v9  ;;  %v1267_v11 = vpop.xlane.xlu0 %1266 }
 0x417   : > { %v2392_v12 = vpop.eup %2391  ;;  %2393 = vlog2.f32 %v1267_v11 }
 0x418   : > { %1333 = vst [vmem:[%s3071_s26 + $0x38] sm:$0xff] %v1317_v7  ;;  %v1314_v29 = vsub.f32 %v2956_v50, %v1287_v10  ;;  %v1289_v8 = vmul.f32 0.6931472, %v2392_v12  ;;  %v1269_v45 = vpop.xlane.xlu1 %1268 }
 0x419   : > { %2395 = vlog2.f32 %v1269_v45 }
 0x41a   : > { %1330 = vst [vmem:[%s3071_s26 + $0x20] sm:$0xff] %v1314_v29  ;;  %v1315_v34 = vsub.f32 %v2960_v42, %v1289_v8  ;;  %v1263_v13 = vpop.xlane.xlu0 %1262 }
 0x41b   : > { %2397 = vlog2.f32 %v1263_v13 }
 0x41c   : > { %1331 = vst [vmem:[%s3071_s26 + $0x28] sm:$0xff] %v1315_v34  ;;  %v1265_v14 = vpop.xlane.xlu1 %1264 }
 0x41d   : > { %2399 = vlog2.f32 %v1265_v14 }
 0x421   : > { %v2394_v39 = vpop.eup %2393 }
 0x422   : > { %v1299_v16 = vmul.f32 0.6931472, %v2394_v39 }
 0x423   : > { %v2396_v20 = vpop.eup %2395 }
 0x424   : > { %v1320_v22 = vsub.f32 %v2964_v51, %v1299_v16  ;;  %v1301_v50 = vmul.f32 0.6931472, %v2396_v20 }
 0x425   : > { %v2398_v24 = vpop.eup %2397 }
 0x426   : > { %1336 = vst [vmem:[%s3071_s26 + $0x50] sm:$0xff] %v1320_v22  ;;  %v1321_v26 = vsub.f32 %v2968_v55, %v1301_v50  ;;  %v1295_v28 = vmul.f32 0.6931472, %v2398_v24 }
 0x427   : > { %v2400_v42 = vpop.eup %2399  ;;  %v1271_v30 = vpop.xlane.xlu0 %1270 }
 0x428   : > { %1337 = vst [vmem:[%s3071_s26 + $0x58] sm:$0xff] %v1321_v26  ;;  %v1318_v31 = vsub.f32 %v2972_v60, %v1295_v28  ;;  %v1297_v33 = vmul.f32 0.6931472, %v2400_v42  ;;  %2401 = vlog2.f32 %v1271_v30 }
 0x429   : > { %v1273_v35 = vpop.xlane.xlu1 %1272 }
 0x42a   : > { %1334 = vst [vmem:[%s3071_s26 + $0x40] sm:$0xff] %v1318_v31  ;;  %v1319_v15 = vsub.f32 %v2976_v1, %v1297_v33  ;;  %2403 = vlog2.f32 %v1273_v35 }
 0x42b   : > { %v1275_v51 = vpop.xlane.xlu0 %1274 }
 0x42c   : > { %1335 = vst [vmem:[%s3071_s26 + $0x48] sm:$0xff] %v1319_v15  ;;  %2405 = vlog2.f32 %v1275_v51 }
 0x42d   : > { %v1277_v55 = vpop.xlane.xlu1 %1276 }
 0x42e   : > { %2407 = vlog2.f32 %v1277_v55 }
 0x432   : > { %v2402_v36 = vpop.eup %2401 }
 0x433   : > { %v1303_v37 = vmul.f32 0.6931472, %v2402_v36 }
 0x434   : > { %v2404_v38 = vpop.eup %2403 }
 0x435   : > { %v1322_v60 = vsub.f32 %v2980_v25, %v1303_v37  ;;  %v1305_v40 = vmul.f32 0.6931472, %v2404_v38 }
 0x436   : > { %v2406_v2 = vpop.eup %2405 }
 0x437   : > { %1338 = vst [vmem:[%s3071_s26 + $0x60] sm:$0xff] %v1322_v60  ;;  %v1323_v41 = vsub.f32 %v2987_v32, %v1305_v40  ;;  %v1307_v1 = vmul.f32 0.6931472, %v2406_v2 }
 0x438   : > { %v2408_v17 = vpop.eup %2407 }
 0x439   : > { %1339 = vst [vmem:[%s3071_s26 + $0x68] sm:$0xff] %v1323_v41  ;;  %v1324_v44 = vsub.f32 %v2991_v49, %v1307_v1  ;;  %v1309_v43 = vmul.f32 0.6931472, %v2408_v17 }
 0x43b   : > { %1340 = vst [vmem:[%s3071_s26 + $0x70] sm:$0xff] %v1324_v44  ;;  %v1325_v46 = vsub.f32 %v2995_v52, %v1309_v43 }
 0x43d   : > { %1341 = vst [vmem:[%s3071_s26 + $0x78] sm:$0xff] %v1325_v46 }
 0x43e PF: > { %p2141_p4 = scmp.ge.s32.totalorder %s2487_s14, 2  ;;  %s1824_s19 = sand.u32 1, %s2467_s30  }
 0x43f   : > { %s1825_s25 = scalar_lea.sflag [#allocation3], %s1824_s19 }
 0x440   : > { %p2138_p2 = pnand %p2141_p4, %p2590_p8 }
 0x442   : > { %2462 = dma.done.wait (!%p2138_p2), %s1825_s25, 4096  }
 0x443   : > { %2464 = vsyncadd (!%p2138_p2), %s1825_s25, 4294963200  ;;  %s23_s14 = sadd.s32 1, %s2487_s14   ;;  %s3143_s12 = sld [smem:[#allocation5_spill]] }
 0x444   : > { %p20_p3 = scmp.ge.s32.totalorder %s23_s14, 4   ;;  %s3144_s13 = sld [smem:[#allocation6_spill]] }
 0x445   : > { %s3145_s30 = smov %s2471_s10  ;;  %s3146_s10 = smov %s2475_s11 }
 0x446   : > { %s3147_s11 = smov %s2596_s22  ;;  %22 = sbr.rel (!%p20_p3) target bundleno = 4 (0x4), region = 106 }
 0x44d   :  { %1830 = vsyncpa [#allocation3], 1 }
 0x44e   :  { %1832 = vsyncpa [#allocation3 + $0x1], 1 }

</bundles_post_ra>
